<compile_context>
chip_gen: v6e
topology: v6e:2x2x1
jax: 0.10.0
libtpu: 0.0.40
codegen_flags: <defaults>
</compile_context>

<pallas_src>
import functools

import jax
import jax.numpy as jnp
from jax.experimental import pallas as pl
from jax.experimental.pallas import tpu as pltpu


def _round_up(x, m):
    return ((x + m - 1) // m) * m


# ---------------------------------------------------------------------------
# Kernels
# ---------------------------------------------------------------------------

def _lstm_recurrence(x_ref, wih_ref, whh_ref, b_ref, h_sc, c_sc, hout_ref, t_valid):
    """Run t_blk LSTM steps for the current (batch-block, time-block) grid cell.

    x_ref:   (t_blk, b_blk, D)   input block
    wih_ref: (D, 4*Hp)           W_ih^T, gates pre-permuted to [i, f, o, g]
    whh_ref: (Hp, 4*Hp)          W_hh^T, same permutation
    b_ref:   (1, 4*Hp)           b_ih + b_hh (same permutation)
    h_sc/c_sc: (b_blk, Hp) f32 scratch, persistent across time blocks
    hout_ref: (t_blk, b_blk, Hp) output block, or None (last layer keeps h on-chip)
    t_valid: python int (real T) when T was padded, else None (no masking).
    """
    t_blk, b_blk, d_in = x_ref.shape
    hp = whh_ref.shape[0]
    ti = pl.program_id(1)  # time-block index — MUST be the innermost grid axis

    @pl.when(ti == 0)
    def _():
        h_sc[...] = jnp.zeros_like(h_sc)
        c_sc[...] = jnp.zeros_like(c_sc)

    wih = wih_ref[...]
    whh = whh_ref[...]

    # Hoisted input projection: one (t_blk*b_blk, D) @ (D, 4Hp) GEMM per time
    # block (no recurrent dependency) instead of t_blk tiny per-step matmuls.
    x2d = x_ref[...].reshape(t_blk * b_blk, d_in).astype(wih.dtype)
    z_in = (
        jnp.dot(x2d, wih, preferred_element_type=jnp.float32) + b_ref[...]
    ).reshape(t_blk, b_blk, 4 * hp)

    h = h_sc[...]  # f32
    c = c_sc[...]  # f32
    for s in range(t_blk):  # static unroll; the recurrence itself is serial
        z = z_in[s] + jnp.dot(
            h.astype(whh.dtype), whh, preferred_element_type=jnp.float32
        )
        # Gates pre-permuted to [i, f, o, g]: one sigmoid over a 3*Hp slab + one
        # tanh. sigmoid(x) = 0.5*tanh(0.5*x) + 0.5 keeps everything on the EUP.
        sig = 0.5 * jnp.tanh(0.5 * z[:, : 3 * hp]) + 0.5
        i_g = sig[:, 0 * hp:1 * hp]
        f_g = sig[:, 1 * hp:2 * hp]
        o_g = sig[:, 2 * hp:3 * hp]
        g_g = jnp.tanh(z[:, 3 * hp:])
        c_new = f_g * c + i_g * g_g
        h_new = o_g * jnp.tanh(c_new)
        if t_valid is not None:
            # Padded (beyond real T) steps must not advance the state.
            valid = (ti * t_blk + s) < t_valid
            c = jnp.where(valid, c_new, c)
            h = jnp.where(valid, h_new, h)
        else:
            c, h = c_new, h_new
        if hout_ref is not None:
            hout_ref[s] = h.astype(hout_ref.dtype)
    h_sc[...] = h
    c_sc[...] = c


def _lstm_seq_kernel(x_ref, wih_ref, whh_ref, b_ref, hout_ref, h_sc, c_sc, *, t_valid):
    """Intermediate layer: emits all hidden states (feeds the next layer)."""
    _lstm_recurrence(x_ref, wih_ref, whh_ref, b_ref, h_sc, c_sc, hout_ref, t_valid)


def _lstm_last_fc_kernel(x_ref, wih_ref, whh_ref, b_ref, fcw_ref, fcb_ref,
                         out_ref, h_sc, c_sc, *, t_valid):
    """Last layer: keeps hidden states on-chip and fuses the final Linear."""
    _lstm_recurrence(x_ref, wih_ref, whh_ref, b_ref, h_sc, c_sc, None, t_valid)

    @pl.when(pl.program_id(1) == pl.num_programs(1) - 1)
    def _():
        out_ref[...] = (
            jnp.dot(h_sc[...].astype(fcw_ref.dtype), fcw_ref[...],
                    preferred_element_type=jnp.float32)
            + fcb_ref[...]
        ).astype(out_ref.dtype)


# ---------------------------------------------------------------------------
# Spec / sizing helpers
# ---------------------------------------------------------------------------

def _const_spec(shape):
    """Constant-index block (weights / biases): resident; single-buffered since
    its index_map never changes (double-buffering would be pure VMEM waste)."""
    index_map = lambda b, t: (0, 0)
    try:
        return pl.BlockSpec(shape, index_map, pipeline_mode=pl.Buffered(1))
    except TypeError:  # very old jax without pipeline_mode: default buffering
        return pl.BlockSpec(shape, index_map)


def _physical_vmem_bytes():
    try:
        info = pltpu.get_tpu_info()
        cap = getattr(info, "vmem_capacity_bytes", None)
        if cap:
            return int(cap)
    except Exception:
        pass
    return 64 << 20  # conservative: v7x per-TensorCore VMEM


def _vmem_limit_bytes(*, t_blk, b_blk, d_in, h_p, o_p, x_bytes, w_bytes, out_block_bytes):
    x_blk = 2 * t_blk * b_blk * d_in * x_bytes                 # double-buffered input
    weights = (d_in + h_p) * 4 * h_p * w_bytes                 # single-buffered, resident
    weights += 4 * h_p * 4                                     # fused bias (f32)
    if o_p:
        weights += h_p * o_p * w_bytes + o_p * 4               # fc W^T + fc bias
    z_in = t_blk * b_blk * 4 * h_p * 4                         # hoisted input projection
    state = 2 * b_blk * h_p * 4                                # h, c scratch
    total = x_blk + weights + z_in + state + 2 * out_block_bytes
    limit = int(2 * total + (4 << 20))                         # headroom for temps/spills
    cap = _physical_vmem_bytes()
    return max(min(limit, int(cap * 0.9)), 32 << 20)


def _pick_time_block(T, b_blk, target_m=256, max_unroll=32):
    """Size t_blk so the hoisted GEMM has M = t_blk*b_blk near the MXU height,
    preferring an exact divisor of T (no padded time steps)."""
    cap = max(1, min(T, max(1, target_m // max(b_blk, 1)), max_unroll))
    for cand in range(cap, max(cap // 2, 1) - 1, -1):
        if T % cand == 0:
            return cand
    return cap


# ---------------------------------------------------------------------------
# Per-layer pallas_call wrappers
# ---------------------------------------------------------------------------

def _lstm_layer_seq(x_tbd, layer_p, *, t_blk, b_blk, t_valid):
    """One non-final LSTM layer. x_tbd: (T, B, D) time-major -> (T, B, Hp)."""
    T, B, D = x_tbd.shape
    Hp = layer_p["w_hh_t"].shape[0]
    w_bytes = layer_p["w_ih_t"].dtype.itemsize
    seq_dtype = layer_p["w_ih_t"].dtype if w_bytes < 4 else jnp.float32
    seq_bytes = w_bytes if w_bytes < 4 else 4
    grid = (B // b_blk, T // t_blk)

    vmem_limit = _vmem_limit_bytes(
        t_blk=t_blk, b_blk=b_blk, d_in=D, h_p=Hp, o_p=0,
        x_bytes=x_tbd.dtype.itemsize, w_bytes=w_bytes,
        out_block_bytes=t_blk * b_blk * Hp * seq_bytes)

    cost = pl.CostEstimate(
        flops=2 * T * B * (D + Hp) * 4 * Hp,
        transcendentals=5 * T * B * Hp,
        bytes_accessed=(T * B * D * x_tbd.dtype.itemsize
                        + T * B * Hp * seq_bytes
                        + (D + Hp) * 4 * Hp * w_bytes))

    return pl.pallas_call(
        functools.partial(_lstm_seq_kernel, t_valid=t_valid),
        out_shape=jax.ShapeDtypeStruct((T, B, Hp), seq_dtype),
        grid_spec=pltpu.PrefetchScalarGridSpec(
            num_scalar_prefetch=0,
            grid=grid,
            in_specs=[
                pl.BlockSpec((t_blk, b_blk, D), lambda b, t: (t, b, 0)),  # x block
                _const_spec((D, 4 * Hp)),                                 # W_ih^T
                _const_spec((Hp, 4 * Hp)),                                # W_hh^T
                _const_spec((1, 4 * Hp)),                                 # fused bias
            ],
            out_specs=pl.BlockSpec((t_blk, b_blk, Hp), lambda b, t: (t, b, 0)),
            scratch_shapes=[
                pltpu.VMEM((b_blk, Hp), jnp.float32),  # h state
                pltpu.VMEM((b_blk, Hp), jnp.float32),  # c state
            ],
        ),
        compiler_params=pltpu.CompilerParams(
            dimension_semantics=("parallel", "arbitrary"),  # batch ||, time serial
            vmem_limit_bytes=vmem_limit),
        cost_estimate=cost,
    )(x_tbd, layer_p["w_ih_t"], layer_p["w_hh_t"], layer_p["bias"])


def _lstm_last_layer_fc(x_tbd, layer_p, fc_w_t, fc_b, *, t_blk, b_blk, t_valid):
    """Final LSTM layer with the Linear head fused. Returns (B, Op)."""
    T, B, D = x_tbd.shape
    Hp = layer_p["w_hh_t"].shape[0]
    Op = fc_w_t.shape[1]
    w_bytes = layer_p["w_ih_t"].dtype.itemsize
    grid = (B // b_blk, T // t_blk)

    vmem_limit = _vmem_limit_bytes(
        t_blk=t_blk, b_blk=b_blk, d_in=D, h_p=Hp, o_p=Op,
        x_bytes=x_tbd.dtype.itemsize, w_bytes=w_bytes,
        out_block_bytes=b_blk * Op * 4)

    cost = pl.CostEstimate(
        flops=2 * T * B * (D + Hp) * 4 * Hp + 2 * B * Hp * Op,
        transcendentals=5 * T * B * Hp,
        bytes_accessed=(T * B * D * x_tbd.dtype.itemsize
                        + B * Op * 4
                        + ((D + Hp) * 4 * Hp + Hp * Op) * w_bytes))

    return pl.pallas_call(
        functools.partial(_lstm_last_fc_kernel, t_valid=t_valid),
        out_shape=jax.ShapeDtypeStruct((B, Op), jnp.float32),
        grid_spec=pltpu.PrefetchScalarGridSpec(
            num_scalar_prefetch=0,
            grid=grid,
            in_specs=[
                pl.BlockSpec((t_blk, b_blk, D), lambda b, t: (t, b, 0)),  # x block
                _const_spec((D, 4 * Hp)),                                 # W_ih^T
                _const_spec((Hp, 4 * Hp)),                                # W_hh^T
                _const_spec((1, 4 * Hp)),                                 # fused bias
                _const_spec((Hp, Op)),                                    # fc W^T
                _const_spec((1, Op)),                                     # fc bias
            ],
            out_specs=pl.BlockSpec((b_blk, Op), lambda b, t: (b, 0)),     # resident
            scratch_shapes=[
                pltpu.VMEM((b_blk, Hp), jnp.float32),
                pltpu.VMEM((b_blk, Hp), jnp.float32),
            ],
        ),
        compiler_params=pltpu.CompilerParams(
            dimension_semantics=("parallel", "arbitrary"),
            vmem_limit_bytes=vmem_limit),
        cost_estimate=cost,
    )(x_tbd, layer_p["w_ih_t"], layer_p["w_hh_t"], layer_p["bias"], fc_w_t, fc_b)


# ---------------------------------------------------------------------------
# Parameters
# ---------------------------------------------------------------------------

def init_lstm_params(key, input_size, hidden_size, num_layers, output_size):
    """PyTorch-layout params with U(-1/sqrt(H), 1/sqrt(H)) init (deterministic)."""
    params = {"layers": []}
    bound = 1.0 / jnp.sqrt(jnp.float32(hidden_size))
    for l in range(num_layers):
        in_dim = input_size if l == 0 else hidden_size
        key, k1, k2, k3, k4 = jax.random.split(key, 5)
        params["layers"].append({
            "w_ih": jax.random.uniform(k1, (4 * hidden_size, in_dim), jnp.float32, -bound, bound),
            "w_hh": jax.random.uniform(k2, (4 * hidden_size, hidden_size), jnp.float32, -bound, bound),
            "b_ih": jax.random.uniform(k3, (4 * hidden_size,), jnp.float32, -bound, bound),
            "b_hh": jax.random.uniform(k4, (4 * hidden_size,), jnp.float32, -bound, bound),
        })
    key, k1, k2 = jax.random.split(key, 3)
    params["fc_w"] = jax.random.uniform(k1, (output_size, hidden_size), jnp.float32, -bound, bound)
    params["fc_b"] = jax.random.uniform(k2, (output_size,), jnp.float32, -bound, bound)
    return params


def prepare_params(raw, param_dtype=jnp.bfloat16, lane=128):
    """One-time weight prep: gate permutation [i,f,g,o]->[i,f,o,g], pad hidden /
    output widths to lane multiples, transpose for (row @ W) layout, fuse biases,
    cast weights to param_dtype (bf16 default; biases stay f32).

    Zero-padding is exact: padded gate columns get bias 0 -> i=f=o=0.5, g=0, so
    padded c and h stay exactly 0 and never influence the real columns."""
    H = raw["layers"][0]["w_hh"].shape[1]
    Hp = _round_up(H, lane)
    O = raw["fc_w"].shape[0]
    Op = _round_up(O, lane)
    perm = jnp.array([0, 1, 3, 2])  # [i, f, g, o] -> [i, f, o, g]

    def prep_w(w, in_dim_p):
        # w: (4H, in_dim) -> (in_dim_p, 4Hp), gates permuted + zero-padded.
        in_dim = w.shape[1]
        w4 = w.reshape(4, H, in_dim)[perm]
        w4 = jnp.pad(w4, ((0, 0), (0, Hp - H), (0, in_dim_p - in_dim)))
        return jnp.transpose(w4.reshape(4 * Hp, in_dim_p)).astype(param_dtype)

    layers = []
    for li, lp in enumerate(raw["layers"]):
        in_dim = lp["w_ih"].shape[1]
        in_dim_p = in_dim if li == 0 else Hp  # later layers read the padded hidden seq
        bias = (lp["b_ih"] + lp["b_hh"]).reshape(4, H)[perm]
        bias = jnp.pad(bias, ((0, 0), (0, Hp - H))).reshape(1, 4 * Hp).astype(jnp.float32)
        layers.append({
            "w_ih_t": prep_w(lp["w_ih"], in_dim_p),   # (D_in_p, 4Hp)
            "w_hh_t": prep_w(lp["w_hh"], Hp),         # (Hp, 4Hp)
            "bias": bias,                             # (1, 4Hp)
        })
    fc_w_t = jnp.pad(raw["fc_w"].T, ((0, Hp - H), (0, Op - O))).astype(param_dtype)  # (Hp, Op)
    fc_b = jnp.pad(raw["fc_b"], (0, Op - O)).reshape(1, Op).astype(jnp.float32)      # (1, Op)
    return {"layers": layers, "fc_w_t": fc_w_t, "fc_b": fc_b}


# ---------------------------------------------------------------------------
# Forward (equivalent of LSTM.forward)
# ---------------------------------------------------------------------------

def lstm_forward(params, x_btd, *, output_size):
    """x (B, T, input_size) batch_first -> (B, output_size). Matches the PyTorch module."""
    B, T, _ = x_btd.shape
    w_dtype = params["layers"][0]["w_ih_t"].dtype
    sublane = 8 if w_dtype.itemsize >= 4 else 16

    # One batch block, sublane-aligned so the in-kernel (t,b,D)->(t*b,D) reshape
    # is layout-free. TODO(synk): split the batch across the two TensorCores on
    # v7x (grid[0] >= 2) for large B; on 1-TC chips a split is pure overhead.
    b_blk = _round_up(B, sublane)
    t_blk = _pick_time_block(T, b_blk)
    T_pad = _round_up(T, t_blk)
    t_valid = T if T_pad != T else None  # mask padded steps inside the kernel

    x_tbd = jnp.transpose(x_btd, (1, 0, 2)).astype(jnp.float32)  # time-major
    if (T_pad, b_blk) != (T, B):
        x_tbd = jnp.pad(x_tbd, ((0, T_pad - T), (0, b_blk - B), (0, 0)))

    h_seq = x_tbd
    # TODO(synk): for small T*B*H the whole multi-layer stack could be fused into
    # one kernel with a VMEM ping-pong; kept as per-layer pallas_calls (with bf16
    # inter-layer traffic) for generality.
    for layer_p in params["layers"][:-1]:
        h_seq = _lstm_layer_seq(h_seq, layer_p, t_blk=t_blk, b_blk=b_blk, t_valid=t_valid)
    out_pad = _lstm_last_layer_fc(h_seq, params["layers"][-1],
                                  params["fc_w_t"], params["fc_b"],
                                  t_blk=t_blk, b_blk=b_blk, t_valid=t_valid)
    return out_pad[:B, :output_size]


def lstm_reference(raw, x_btd):
    """Pure-JAX f32 reference from the RAW (PyTorch-layout) params."""
    x = jnp.transpose(x_btd, (1, 0, 2)).astype(jnp.float32)
    T, B, _ = x.shape
    h_seq = x
    for lp in raw["layers"]:
        H = lp["w_hh"].shape[1]
        w_ih, w_hh = lp["w_ih"], lp["w_hh"]
        b = lp["b_ih"] + lp["b_hh"]
        h = jnp.zeros((B, H), jnp.float32)
        c = jnp.zeros((B, H), jnp.float32)
        outs = []
        for t in range(T):
            z = h_seq[t] @ w_ih.T + h @ w_hh.T + b
            i = jax.nn.sigmoid(z[:, :H])
            f = jax.nn.sigmoid(z[:, H:2 * H])
            g = jnp.tanh(z[:, 2 * H:3 * H])
            o = jax.nn.sigmoid(z[:, 3 * H:])
            c = f * c + i * g
            h = o * jnp.tanh(c)
            outs.append(h)
        h_seq = jnp.stack(outs)
    return h_seq[-1] @ raw["fc_w"].T + raw["fc_b"]


if __name__ == "__main__":
    input_size, hidden_size, num_layers, output_size = 16, 32, 2, 8
    B, T = 4, 8

    key = jax.random.PRNGKey(0)
    key, xkey, pkey = jax.random.split(key, 3)
    x = jax.random.normal(xkey, (B, T, input_size), jnp.float32)

    raw_params = init_lstm_params(pkey, input_size, hidden_size, num_layers, output_size)
    params = prepare_params(raw_params)  # bf16 weights, gate permute, lane padding

    fwd = jax.jit(functools.partial(lstm_forward, output_size=output_size))
    out = fwd(params, x)
    jax.block_until_ready(out)
    assert out.shape == (B, output_size)

    ref = lstm_reference(raw_params, x)  # full-f32 PyTorch-equivalent reference
    err = float(jnp.max(jnp.abs(out - ref)))
    assert err < 3e-2, f"mismatch vs f32 reference: {err}"

    print("KERNEL_OK")
</pallas_src>

<mosaic_0001>
module attributes {stable_mosaic.version = 11 : i64} {
  func.func @_lstm_last_fc_kernel(%arg0: i32, %arg1: i32, %arg2: memref<8x16x128xbf16, #tpu.memory_space<vmem>>, %arg3: memref<128x512xbf16, #tpu.memory_space<vmem>>, %arg4: memref<128x512xbf16, #tpu.memory_space<vmem>>, %arg5: memref<1x512xf32, #tpu.memory_space<vmem>>, %arg6: memref<128x128xbf16, #tpu.memory_space<vmem>>, %arg7: memref<1x128xf32, #tpu.memory_space<vmem>>, %arg8: memref<16x128xf32, #tpu.memory_space<vmem>>, %arg9: memref<16x128xf32, #tpu.memory_space<vmem>>, %arg10: memref<16x128xf32, #tpu.memory_space<vmem>>) attributes {dimension_semantics = [#tpu.dimension_semantics<parallel>, #tpu.dimension_semantics<arbitrary>], iteration_bounds = array<i64: 1, 1>, scalar_prefetch = 0 : i64, scratch_operands = 2 : i64, tpu.core_type = #tpu.core_type<tc>, window_params = [{transform_indices = @transform_0, window_bounds = array<i64: 8, 16, 128>}, {pipeline_mode = #tpu.pipeline_mode<synchronous>, transform_indices = @transform_1, window_bounds = array<i64: 128, 512>}, {pipeline_mode = #tpu.pipeline_mode<synchronous>, transform_indices = @transform_2, window_bounds = array<i64: 128, 512>}, {pipeline_mode = #tpu.pipeline_mode<synchronous>, transform_indices = @transform_3, window_bounds = array<i64: 1, 512>}, {pipeline_mode = #tpu.pipeline_mode<synchronous>, transform_indices = @transform_4, window_bounds = array<i64: 128, 128>}, {pipeline_mode = #tpu.pipeline_mode<synchronous>, transform_indices = @transform_5, window_bounds = array<i64: 1, 128>}, {transform_indices = @transform_6, window_bounds = array<i64: 16, 128>}]} {
    %c0_i32 = arith.constant 0 : i32
    %0 = arith.cmpi eq, %arg1, %c0_i32 : i32
    %1 = arith.extui %0 : i1 to i32
    %c0_i32_0 = arith.constant 0 : i32
    %2 = arith.cmpi ne, %1, %c0_i32_0 : i32
    scf.if %2 {
      %cst_51 = arith.constant 0.000000e+00 : f32
      %203 = vector.broadcast %cst_51 : f32 to vector<16x128xf32>
      %c0_52 = arith.constant 0 : index
      %c0_53 = arith.constant 0 : index
      %204 = vector.load %arg9[%c0_52, %c0_53] : memref<16x128xf32, #tpu.memory_space<vmem>>, vector<16x128xf32>
      tpu.vector_store %arg9[%c0_52, %c0_53], %203 {strides = array<i32>} : memref<16x128xf32, #tpu.memory_space<vmem>>, vector<16x128xf32>,
      %cst_54 = arith.constant 0.000000e+00 : f32
      %205 = vector.broadcast %cst_54 : f32 to vector<16x128xf32>
      %c0_55 = arith.constant 0 : index
      %c0_56 = arith.constant 0 : index
      %206 = vector.load %arg10[%c0_55, %c0_56] : memref<16x128xf32, #tpu.memory_space<vmem>>, vector<16x128xf32>
      tpu.vector_store %arg10[%c0_55, %c0_56], %205 {strides = array<i32>} : memref<16x128xf32, #tpu.memory_space<vmem>>, vector<16x128xf32>,
    } else {
    }
    %c0 = arith.constant 0 : index
    %c0_1 = arith.constant 0 : index
    %3 = vector.load %arg3[%c0, %c0_1] : memref<128x512xbf16, #tpu.memory_space<vmem>>, vector<128x512xbf16>
    %c0_2 = arith.constant 0 : index
    %c0_3 = arith.constant 0 : index
    %4 = vector.load %arg4[%c0_2, %c0_3] : memref<128x512xbf16, #tpu.memory_space<vmem>>, vector<128x512xbf16>
    %c0_4 = arith.constant 0 : index
    %c0_5 = arith.constant 0 : index
    %c0_6 = arith.constant 0 : index
    %5 = vector.load %arg2[%c0_4, %c0_5, %c0_6] : memref<8x16x128xbf16, #tpu.memory_space<vmem>>, vector<8x16x128xbf16>
    %6 = vector.shape_cast %5 : vector<8x16x128xbf16> to vector<128x128xbf16>
    %cst = arith.constant dense<0.000000e+00> : vector<128x512xf32>
    %7 = tpu.matmul %6, %3, %cst {dimension_numbers = #tpu.dot_dimension_numbers<[1], [0], [0], [1], [0, 0, 1, 1], [], []>} : vector<128x128xbf16>, vector<128x512xbf16>, vector<128x512xf32> -> vector<128x512xf32>
    %c0_7 = arith.constant 0 : index
    %c0_8 = arith.constant 0 : index
    %8 = vector.load %arg5[%c0_7, %c0_8] : memref<1x512xf32, #tpu.memory_space<vmem>>, vector<1x512xf32>
    %9 = vector.broadcast %8 : vector<1x512xf32> to vector<128x512xf32>
    %10 = arith.addf %7, %9 : vector<128x512xf32>
    %11 = vector.shape_cast %10 : vector<128x512xf32> to vector<8x16x512xf32>
    %c0_9 = arith.constant 0 : index
    %c0_10 = arith.constant 0 : index
    %12 = vector.load %arg9[%c0_9, %c0_10] : memref<16x128xf32, #tpu.memory_space<vmem>>, vector<16x128xf32>
    %c0_11 = arith.constant 0 : index
    %c0_12 = arith.constant 0 : index
    %13 = vector.load %arg10[%c0_11, %c0_12] : memref<16x128xf32, #tpu.memory_space<vmem>>, vector<16x128xf32>
    %14 = vector.extract_strided_slice %11 {offsets = [0, 0, 0], sizes = [1, 16, 512], strides = [1, 1, 1]} : vector<8x16x512xf32> to vector<1x16x512xf32>
    %15 = vector.shape_cast %14 : vector<1x16x512xf32> to vector<16x512xf32>
    %16 = arith.truncf %12 : vector<16x128xf32> to vector<16x128xbf16>
    %cst_13 = arith.constant dense<0.000000e+00> : vector<16x512xf32>
    %17 = tpu.matmul %16, %4, %cst_13 {dimension_numbers = #tpu.dot_dimension_numbers<[1], [0], [0], [1], [0, 0, 1, 1], [], []>} : vector<16x128xbf16>, vector<128x512xbf16>, vector<16x512xf32> -> vector<16x512xf32>
    %18 = arith.addf %15, %17 : vector<16x512xf32>
    %19 = vector.extract_strided_slice %18 {offsets = [0, 0], sizes = [16, 384], strides = [1, 1]} : vector<16x512xf32> to vector<16x384xf32>
    %cst_14 = arith.constant 5.000000e-01 : f32
    %20 = vector.broadcast %cst_14 : f32 to vector<16x384xf32>
    %21 = arith.mulf %20, %19 : vector<16x384xf32>
    %22 = math.tanh %21 : vector<16x384xf32>
    %cst_15 = arith.constant 5.000000e-01 : f32
    %23 = vector.broadcast %cst_15 : f32 to vector<16x384xf32>
    %24 = arith.mulf %23, %22 : vector<16x384xf32>
    %cst_16 = arith.constant 5.000000e-01 : f32
    %25 = vector.broadcast %cst_16 : f32 to vector<16x384xf32>
    %26 = arith.addf %24, %25 : vector<16x384xf32>
    %27 = vector.extract_strided_slice %26 {offsets = [0, 0], sizes = [16, 128], strides = [1, 1]} : vector<16x384xf32> to vector<16x128xf32>
    %28 = vector.extract_strided_slice %26 {offsets = [0, 128], sizes = [16, 128], strides = [1, 1]} : vector<16x384xf32> to vector<16x128xf32>
    %29 = vector.extract_strided_slice %26 {offsets = [0, 256], sizes = [16, 128], strides = [1, 1]} : vector<16x384xf32> to vector<16x128xf32>
    %30 = vector.extract_strided_slice %18 {offsets = [0, 384], sizes = [16, 128], strides = [1, 1]} : vector<16x512xf32> to vector<16x128xf32>
    %31 = math.tanh %30 : vector<16x128xf32>
    %32 = arith.mulf %28, %13 : vector<16x128xf32>
    %33 = arith.mulf %27, %31 : vector<16x128xf32>
    %34 = arith.addf %32, %33 : vector<16x128xf32>
    %35 = math.tanh %34 : vector<16x128xf32>
    %36 = arith.mulf %29, %35 : vector<16x128xf32>
    %37 = vector.extract_strided_slice %11 {offsets = [1, 0, 0], sizes = [1, 16, 512], strides = [1, 1, 1]} : vector<8x16x512xf32> to vector<1x16x512xf32>
    %38 = vector.shape_cast %37 : vector<1x16x512xf32> to vector<16x512xf32>
    %39 = arith.truncf %36 : vector<16x128xf32> to vector<16x128xbf16>
    %cst_17 = arith.constant dense<0.000000e+00> : vector<16x512xf32>
    %40 = tpu.matmul %39, %4, %cst_17 {dimension_numbers = #tpu.dot_dimension_numbers<[1], [0], [0], [1], [0, 0, 1, 1], [], []>} : vector<16x128xbf16>, vector<128x512xbf16>, vector<16x512xf32> -> vector<16x512xf32>
    %41 = arith.addf %38, %40 : vector<16x512xf32>
    %42 = vector.extract_strided_slice %41 {offsets = [0, 0], sizes = [16, 384], strides = [1, 1]} : vector<16x512xf32> to vector<16x384xf32>
    %cst_18 = arith.constant 5.000000e-01 : f32
    %43 = vector.broadcast %cst_18 : f32 to vector<16x384xf32>
    %44 = arith.mulf %43, %42 : vector<16x384xf32>
    %45 = math.tanh %44 : vector<16x384xf32>
    %cst_19 = arith.constant 5.000000e-01 : f32
    %46 = vector.broadcast %cst_19 : f32 to vector<16x384xf32>
    %47 = arith.mulf %46, %45 : vector<16x384xf32>
    %cst_20 = arith.constant 5.000000e-01 : f32
    %48 = vector.broadcast %cst_20 : f32 to vector<16x384xf32>
    %49 = arith.addf %47, %48 : vector<16x384xf32>
    %50 = vector.extract_strided_slice %49 {offsets = [0, 0], sizes = [16, 128], strides = [1, 1]} : vector<16x384xf32> to vector<16x128xf32>
    %51 = vector.extract_strided_slice %49 {offsets = [0, 128], sizes = [16, 128], strides = [1, 1]} : vector<16x384xf32> to vector<16x128xf32>
    %52 = vector.extract_strided_slice %49 {offsets = [0, 256], sizes = [16, 128], strides = [1, 1]} : vector<16x384xf32> to vector<16x128xf32>
    %53 = vector.extract_strided_slice %41 {offsets = [0, 384], sizes = [16, 128], strides = [1, 1]} : vector<16x512xf32> to vector<16x128xf32>
    %54 = math.tanh %53 : vector<16x128xf32>
    %55 = arith.mulf %51, %34 : vector<16x128xf32>
    %56 = arith.mulf %50, %54 : vector<16x128xf32>
    %57 = arith.addf %55, %56 : vector<16x128xf32>
    %58 = math.tanh %57 : vector<16x128xf32>
    %59 = arith.mulf %52, %58 : vector<16x128xf32>
    %60 = vector.extract_strided_slice %11 {offsets = [2, 0, 0], sizes = [1, 16, 512], strides = [1, 1, 1]} : vector<8x16x512xf32> to vector<1x16x512xf32>
    %61 = vector.shape_cast %60 : vector<1x16x512xf32> to vector<16x512xf32>
    %62 = arith.truncf %59 : vector<16x128xf32> to vector<16x128xbf16>
    %cst_21 = arith.constant dense<0.000000e+00> : vector<16x512xf32>
    %63 = tpu.matmul %62, %4, %cst_21 {dimension_numbers = #tpu.dot_dimension_numbers<[1], [0], [0], [1], [0, 0, 1, 1], [], []>} : vector<16x128xbf16>, vector<128x512xbf16>, vector<16x512xf32> -> vector<16x512xf32>
    %64 = arith.addf %61, %63 : vector<16x512xf32>
    %65 = vector.extract_strided_slice %64 {offsets = [0, 0], sizes = [16, 384], strides = [1, 1]} : vector<16x512xf32> to vector<16x384xf32>
    %cst_22 = arith.constant 5.000000e-01 : f32
    %66 = vector.broadcast %cst_22 : f32 to vector<16x384xf32>
    %67 = arith.mulf %66, %65 : vector<16x384xf32>
    %68 = math.tanh %67 : vector<16x384xf32>
    %cst_23 = arith.constant 5.000000e-01 : f32
    %69 = vector.broadcast %cst_23 : f32 to vector<16x384xf32>
    %70 = arith.mulf %69, %68 : vector<16x384xf32>
    %cst_24 = arith.constant 5.000000e-01 : f32
    %71 = vector.broadcast %cst_24 : f32 to vector<16x384xf32>
    %72 = arith.addf %70, %71 : vector<16x384xf32>
    %73 = vector.extract_strided_slice %72 {offsets = [0, 0], sizes = [16, 128], strides = [1, 1]} : vector<16x384xf32> to vector<16x128xf32>
    %74 = vector.extract_strided_slice %72 {offsets = [0, 128], sizes = [16, 128], strides = [1, 1]} : vector<16x384xf32> to vector<16x128xf32>
    %75 = vector.extract_strided_slice %72 {offsets = [0, 256], sizes = [16, 128], strides = [1, 1]} : vector<16x384xf32> to vector<16x128xf32>
    %76 = vector.extract_strided_slice %64 {offsets = [0, 384], sizes = [16, 128], strides = [1, 1]} : vector<16x512xf32> to vector<16x128xf32>
    %77 = math.tanh %76 : vector<16x128xf32>
    %78 = arith.mulf %74, %57 : vector<16x128xf32>
    %79 = arith.mulf %73, %77 : vector<16x128xf32>
    %80 = arith.addf %78, %79 : vector<16x128xf32>
    %81 = math.tanh %80 : vector<16x128xf32>
    %82 = arith.mulf %75, %81 : vector<16x128xf32>
    %83 = vector.extract_strided_slice %11 {offsets = [3, 0, 0], sizes = [1, 16, 512], strides = [1, 1, 1]} : vector<8x16x512xf32> to vector<1x16x512xf32>
    %84 = vector.shape_cast %83 : vector<1x16x512xf32> to vector<16x512xf32>
    %85 = arith.truncf %82 : vector<16x128xf32> to vector<16x128xbf16>
    %cst_25 = arith.constant dense<0.000000e+00> : vector<16x512xf32>
    %86 = tpu.matmul %85, %4, %cst_25 {dimension_numbers = #tpu.dot_dimension_numbers<[1], [0], [0], [1], [0, 0, 1, 1], [], []>} : vector<16x128xbf16>, vector<128x512xbf16>, vector<16x512xf32> -> vector<16x512xf32>
    %87 = arith.addf %84, %86 : vector<16x512xf32>
    %88 = vector.extract_strided_slice %87 {offsets = [0, 0], sizes = [16, 384], strides = [1, 1]} : vector<16x512xf32> to vector<16x384xf32>
    %cst_26 = arith.constant 5.000000e-01 : f32
    %89 = vector.broadcast %cst_26 : f32 to vector<16x384xf32>
    %90 = arith.mulf %89, %88 : vector<16x384xf32>
    %91 = math.tanh %90 : vector<16x384xf32>
    %cst_27 = arith.constant 5.000000e-01 : f32
    %92 = vector.broadcast %cst_27 : f32 to vector<16x384xf32>
    %93 = arith.mulf %92, %91 : vector<16x384xf32>
    %cst_28 = arith.constant 5.000000e-01 : f32
    %94 = vector.broadcast %cst_28 : f32 to vector<16x384xf32>
    %95 = arith.addf %93, %94 : vector<16x384xf32>
    %96 = vector.extract_strided_slice %95 {offsets = [0, 0], sizes = [16, 128], strides = [1, 1]} : vector<16x384xf32> to vector<16x128xf32>
    %97 = vector.extract_strided_slice %95 {offsets = [0, 128], sizes = [16, 128], strides = [1, 1]} : vector<16x384xf32> to vector<16x128xf32>
    %98 = vector.extract_strided_slice %95 {offsets = [0, 256], sizes = [16, 128], strides = [1, 1]} : vector<16x384xf32> to vector<16x128xf32>
    %99 = vector.extract_strided_slice %87 {offsets = [0, 384], sizes = [16, 128], strides = [1, 1]} : vector<16x512xf32> to vector<16x128xf32>
    %100 = math.tanh %99 : vector<16x128xf32>
    %101 = arith.mulf %97, %80 : vector<16x128xf32>
    %102 = arith.mulf %96, %100 : vector<16x128xf32>
    %103 = arith.addf %101, %102 : vector<16x128xf32>
    %104 = math.tanh %103 : vector<16x128xf32>
    %105 = arith.mulf %98, %104 : vector<16x128xf32>
    %106 = vector.extract_strided_slice %11 {offsets = [4, 0, 0], sizes = [1, 16, 512], strides = [1, 1, 1]} : vector<8x16x512xf32> to vector<1x16x512xf32>
    %107 = vector.shape_cast %106 : vector<1x16x512xf32> to vector<16x512xf32>
    %108 = arith.truncf %105 : vector<16x128xf32> to vector<16x128xbf16>
    %cst_29 = arith.constant dense<0.000000e+00> : vector<16x512xf32>
    %109 = tpu.matmul %108, %4, %cst_29 {dimension_numbers = #tpu.dot_dimension_numbers<[1], [0], [0], [1], [0, 0, 1, 1], [], []>} : vector<16x128xbf16>, vector<128x512xbf16>, vector<16x512xf32> -> vector<16x512xf32>
    %110 = arith.addf %107, %109 : vector<16x512xf32>
    %111 = vector.extract_strided_slice %110 {offsets = [0, 0], sizes = [16, 384], strides = [1, 1]} : vector<16x512xf32> to vector<16x384xf32>
    %cst_30 = arith.constant 5.000000e-01 : f32
    %112 = vector.broadcast %cst_30 : f32 to vector<16x384xf32>
    %113 = arith.mulf %112, %111 : vector<16x384xf32>
    %114 = math.tanh %113 : vector<16x384xf32>
    %cst_31 = arith.constant 5.000000e-01 : f32
    %115 = vector.broadcast %cst_31 : f32 to vector<16x384xf32>
    %116 = arith.mulf %115, %114 : vector<16x384xf32>
    %cst_32 = arith.constant 5.000000e-01 : f32
    %117 = vector.broadcast %cst_32 : f32 to vector<16x384xf32>
    %118 = arith.addf %116, %117 : vector<16x384xf32>
    %119 = vector.extract_strided_slice %118 {offsets = [0, 0], sizes = [16, 128], strides = [1, 1]} : vector<16x384xf32> to vector<16x128xf32>
    %120 = vector.extract_strided_slice %118 {offsets = [0, 128], sizes = [16, 128], strides = [1, 1]} : vector<16x384xf32> to vector<16x128xf32>
    %121 = vector.extract_strided_slice %118 {offsets = [0, 256], sizes = [16, 128], strides = [1, 1]} : vector<16x384xf32> to vector<16x128xf32>
    %122 = vector.extract_strided_slice %110 {offsets = [0, 384], sizes = [16, 128], strides = [1, 1]} : vector<16x512xf32> to vector<16x128xf32>
    %123 = math.tanh %122 : vector<16x128xf32>
    %124 = arith.mulf %120, %103 : vector<16x128xf32>
    %125 = arith.mulf %119, %123 : vector<16x128xf32>
    %126 = arith.addf %124, %125 : vector<16x128xf32>
    %127 = math.tanh %126 : vector<16x128xf32>
    %128 = arith.mulf %121, %127 : vector<16x128xf32>
    %129 = vector.extract_strided_slice %11 {offsets = [5, 0, 0], sizes = [1, 16, 512], strides = [1, 1, 1]} : vector<8x16x512xf32> to vector<1x16x512xf32>
    %130 = vector.shape_cast %129 : vector<1x16x512xf32> to vector<16x512xf32>
    %131 = arith.truncf %128 : vector<16x128xf32> to vector<16x128xbf16>
    %cst_33 = arith.constant dense<0.000000e+00> : vector<16x512xf32>
    %132 = tpu.matmul %131, %4, %cst_33 {dimension_numbers = #tpu.dot_dimension_numbers<[1], [0], [0], [1], [0, 0, 1, 1], [], []>} : vector<16x128xbf16>, vector<128x512xbf16>, vector<16x512xf32> -> vector<16x512xf32>
    %133 = arith.addf %130, %132 : vector<16x512xf32>
    %134 = vector.extract_strided_slice %133 {offsets = [0, 0], sizes = [16, 384], strides = [1, 1]} : vector<16x512xf32> to vector<16x384xf32>
    %cst_34 = arith.constant 5.000000e-01 : f32
    %135 = vector.broadcast %cst_34 : f32 to vector<16x384xf32>
    %136 = arith.mulf %135, %134 : vector<16x384xf32>
    %137 = math.tanh %136 : vector<16x384xf32>
    %cst_35 = arith.constant 5.000000e-01 : f32
    %138 = vector.broadcast %cst_35 : f32 to vector<16x384xf32>
    %139 = arith.mulf %138, %137 : vector<16x384xf32>
    %cst_36 = arith.constant 5.000000e-01 : f32
    %140 = vector.broadcast %cst_36 : f32 to vector<16x384xf32>
    %141 = arith.addf %139, %140 : vector<16x384xf32>
    %142 = vector.extract_strided_slice %141 {offsets = [0, 0], sizes = [16, 128], strides = [1, 1]} : vector<16x384xf32> to vector<16x128xf32>
    %143 = vector.extract_strided_slice %141 {offsets = [0, 128], sizes = [16, 128], strides = [1, 1]} : vector<16x384xf32> to vector<16x128xf32>
    %144 = vector.extract_strided_slice %141 {offsets = [0, 256], sizes = [16, 128], strides = [1, 1]} : vector<16x384xf32> to vector<16x128xf32>
    %145 = vector.extract_strided_slice %133 {offsets = [0, 384], sizes = [16, 128], strides = [1, 1]} : vector<16x512xf32> to vector<16x128xf32>
    %146 = math.tanh %145 : vector<16x128xf32>
    %147 = arith.mulf %143, %126 : vector<16x128xf32>
    %148 = arith.mulf %142, %146 : vector<16x128xf32>
    %149 = arith.addf %147, %148 : vector<16x128xf32>
    %150 = math.tanh %149 : vector<16x128xf32>
    %151 = arith.mulf %144, %150 : vector<16x128xf32>
    %152 = vector.extract_strided_slice %11 {offsets = [6, 0, 0], sizes = [1, 16, 512], strides = [1, 1, 1]} : vector<8x16x512xf32> to vector<1x16x512xf32>
    %153 = vector.shape_cast %152 : vector<1x16x512xf32> to vector<16x512xf32>
    %154 = arith.truncf %151 : vector<16x128xf32> to vector<16x128xbf16>
    %cst_37 = arith.constant dense<0.000000e+00> : vector<16x512xf32>
    %155 = tpu.matmul %154, %4, %cst_37 {dimension_numbers = #tpu.dot_dimension_numbers<[1], [0], [0], [1], [0, 0, 1, 1], [], []>} : vector<16x128xbf16>, vector<128x512xbf16>, vector<16x512xf32> -> vector<16x512xf32>
    %156 = arith.addf %153, %155 : vector<16x512xf32>
    %157 = vector.extract_strided_slice %156 {offsets = [0, 0], sizes = [16, 384], strides = [1, 1]} : vector<16x512xf32> to vector<16x384xf32>
    %cst_38 = arith.constant 5.000000e-01 : f32
    %158 = vector.broadcast %cst_38 : f32 to vector<16x384xf32>
    %159 = arith.mulf %158, %157 : vector<16x384xf32>
    %160 = math.tanh %159 : vector<16x384xf32>
    %cst_39 = arith.constant 5.000000e-01 : f32
    %161 = vector.broadcast %cst_39 : f32 to vector<16x384xf32>
    %162 = arith.mulf %161, %160 : vector<16x384xf32>
    %cst_40 = arith.constant 5.000000e-01 : f32
    %163 = vector.broadcast %cst_40 : f32 to vector<16x384xf32>
    %164 = arith.addf %162, %163 : vector<16x384xf32>
    %165 = vector.extract_strided_slice %164 {offsets = [0, 0], sizes = [16, 128], strides = [1, 1]} : vector<16x384xf32> to vector<16x128xf32>
    %166 = vector.extract_strided_slice %164 {offsets = [0, 128], sizes = [16, 128], strides = [1, 1]} : vector<16x384xf32> to vector<16x128xf32>
    %167 = vector.extract_strided_slice %164 {offsets = [0, 256], sizes = [16, 128], strides = [1, 1]} : vector<16x384xf32> to vector<16x128xf32>
    %168 = vector.extract_strided_slice %156 {offsets = [0, 384], sizes = [16, 128], strides = [1, 1]} : vector<16x512xf32> to vector<16x128xf32>
    %169 = math.tanh %168 : vector<16x128xf32>
    %170 = arith.mulf %166, %149 : vector<16x128xf32>
    %171 = arith.mulf %165, %169 : vector<16x128xf32>
    %172 = arith.addf %170, %171 : vector<16x128xf32>
    %173 = math.tanh %172 : vector<16x128xf32>
    %174 = arith.mulf %167, %173 : vector<16x128xf32>
    %175 = vector.extract_strided_slice %11 {offsets = [7, 0, 0], sizes = [1, 16, 512], strides = [1, 1, 1]} : vector<8x16x512xf32> to vector<1x16x512xf32>
    %176 = vector.shape_cast %175 : vector<1x16x512xf32> to vector<16x512xf32>
    %177 = arith.truncf %174 : vector<16x128xf32> to vector<16x128xbf16>
    %cst_41 = arith.constant dense<0.000000e+00> : vector<16x512xf32>
    %178 = tpu.matmul %177, %4, %cst_41 {dimension_numbers = #tpu.dot_dimension_numbers<[1], [0], [0], [1], [0, 0, 1, 1], [], []>} : vector<16x128xbf16>, vector<128x512xbf16>, vector<16x512xf32> -> vector<16x512xf32>
    %179 = arith.addf %176, %178 : vector<16x512xf32>
    %180 = vector.extract_strided_slice %179 {offsets = [0, 0], sizes = [16, 384], strides = [1, 1]} : vector<16x512xf32> to vector<16x384xf32>
    %cst_42 = arith.constant 5.000000e-01 : f32
    %181 = vector.broadcast %cst_42 : f32 to vector<16x384xf32>
    %182 = arith.mulf %181, %180 : vector<16x384xf32>
    %183 = math.tanh %182 : vector<16x384xf32>
    %cst_43 = arith.constant 5.000000e-01 : f32
    %184 = vector.broadcast %cst_43 : f32 to vector<16x384xf32>
    %185 = arith.mulf %184, %183 : vector<16x384xf32>
    %cst_44 = arith.constant 5.000000e-01 : f32
    %186 = vector.broadcast %cst_44 : f32 to vector<16x384xf32>
    %187 = arith.addf %185, %186 : vector<16x384xf32>
    %188 = vector.extract_strided_slice %187 {offsets = [0, 0], sizes = [16, 128], strides = [1, 1]} : vector<16x384xf32> to vector<16x128xf32>
    %189 = vector.extract_strided_slice %187 {offsets = [0, 128], sizes = [16, 128], strides = [1, 1]} : vector<16x384xf32> to vector<16x128xf32>
    %190 = vector.extract_strided_slice %187 {offsets = [0, 256], sizes = [16, 128], strides = [1, 1]} : vector<16x384xf32> to vector<16x128xf32>
    %191 = vector.extract_strided_slice %179 {offsets = [0, 384], sizes = [16, 128], strides = [1, 1]} : vector<16x512xf32> to vector<16x128xf32>
    %192 = math.tanh %191 : vector<16x128xf32>
    %193 = arith.mulf %189, %172 : vector<16x128xf32>
    %194 = arith.mulf %188, %192 : vector<16x128xf32>
    %195 = arith.addf %193, %194 : vector<16x128xf32>
    %196 = math.tanh %195 : vector<16x128xf32>
    %197 = arith.mulf %190, %196 : vector<16x128xf32>
    %c0_45 = arith.constant 0 : index
    %c0_46 = arith.constant 0 : index
    %198 = vector.load %arg9[%c0_45, %c0_46] : memref<16x128xf32, #tpu.memory_space<vmem>>, vector<16x128xf32>
    tpu.vector_store %arg9[%c0_45, %c0_46], %197 {strides = array<i32>} : memref<16x128xf32, #tpu.memory_space<vmem>>, vector<16x128xf32>,
    %c0_47 = arith.constant 0 : index
    %c0_48 = arith.constant 0 : index
    %199 = vector.load %arg10[%c0_47, %c0_48] : memref<16x128xf32, #tpu.memory_space<vmem>>, vector<16x128xf32>
    tpu.vector_store %arg10[%c0_47, %c0_48], %195 {strides = array<i32>} : memref<16x128xf32, #tpu.memory_space<vmem>>, vector<16x128xf32>,
    %c0_i32_49 = arith.constant 0 : i32
    %200 = arith.cmpi eq, %arg1, %c0_i32_49 : i32
    %201 = arith.extui %200 : i1 to i32
    %c0_i32_50 = arith.constant 0 : i32
    %202 = arith.cmpi ne, %201, %c0_i32_50 : i32
    scf.if %202 {
      %c0_51 = arith.constant 0 : index
      %c0_52 = arith.constant 0 : index
      %203 = vector.load %arg9[%c0_51, %c0_52] : memref<16x128xf32, #tpu.memory_space<vmem>>, vector<16x128xf32>
      %204 = arith.truncf %203 : vector<16x128xf32> to vector<16x128xbf16>
      %c0_53 = arith.constant 0 : index
      %c0_54 = arith.constant 0 : index
      %205 = vector.load %arg6[%c0_53, %c0_54] : memref<128x128xbf16, #tpu.memory_space<vmem>>, vector<128x128xbf16>
      %cst_55 = arith.constant dense<0.000000e+00> : vector<16x128xf32>
      %206 = tpu.matmul %204, %205, %cst_55 {dimension_numbers = #tpu.dot_dimension_numbers<[1], [0], [0], [1], [0, 0, 1, 1], [], []>} : vector<16x128xbf16>, vector<128x128xbf16>, vector<16x128xf32> -> vector<16x128xf32>
      %c0_56 = arith.constant 0 : index
      %c0_57 = arith.constant 0 : index
      %207 = vector.load %arg7[%c0_56, %c0_57] : memref<1x128xf32, #tpu.memory_space<vmem>>, vector<1x128xf32>
      %208 = vector.broadcast %207 : vector<1x128xf32> to vector<16x128xf32>
      %209 = arith.addf %206, %208 : vector<16x128xf32>
      %c0_58 = arith.constant 0 : index
      %c0_59 = arith.constant 0 : index
      %210 = vector.load %arg8[%c0_58, %c0_59] : memref<16x128xf32, #tpu.memory_space<vmem>>, vector<16x128xf32>
      tpu.vector_store %arg8[%c0_58, %c0_59], %209 {strides = array<i32>} : memref<16x128xf32, #tpu.memory_space<vmem>>, vector<16x128xf32>,
    } else {
    }
    return
  }
  func.func @transform_0(%arg0: i32, %arg1: i32) -> (i32, i32, i32) {
    %c0_i32 = arith.constant 0 : i32
    %c0_i32_0 = arith.constant 0 : i32
    return %arg1, %arg0, %c0_i32 : i32, i32, i32
  }
  func.func @transform_1(%arg0: i32, %arg1: i32) -> (i32, i32) {
    %c0_i32 = arith.constant 0 : i32
    %c0_i32_0 = arith.constant 0 : i32
    %c0_i32_1 = arith.constant 0 : i32
    return %c0_i32, %c0_i32_0 : i32, i32
  }
  func.func @transform_2(%arg0: i32, %arg1: i32) -> (i32, i32) {
    %c0_i32 = arith.constant 0 : i32
    %c0_i32_0 = arith.constant 0 : i32
    %c0_i32_1 = arith.constant 0 : i32
    return %c0_i32, %c0_i32_0 : i32, i32
  }
  func.func @transform_3(%arg0: i32, %arg1: i32) -> (i32, i32) {
    %c0_i32 = arith.constant 0 : i32
    %c0_i32_0 = arith.constant 0 : i32
    %c0_i32_1 = arith.constant 0 : i32
    return %c0_i32, %c0_i32_0 : i32, i32
  }
  func.func @transform_4(%arg0: i32, %arg1: i32) -> (i32, i32) {
    %c0_i32 = arith.constant 0 : i32
    %c0_i32_0 = arith.constant 0 : i32
    %c0_i32_1 = arith.constant 0 : i32
    return %c0_i32, %c0_i32_0 : i32, i32
  }
  func.func @transform_5(%arg0: i32, %arg1: i32) -> (i32, i32) {
    %c0_i32 = arith.constant 0 : i32
    %c0_i32_0 = arith.constant 0 : i32
    %c0_i32_1 = arith.constant 0 : i32
    return %c0_i32, %c0_i32_0 : i32, i32
  }
  func.func @transform_6(%arg0: i32, %arg1: i32) -> (i32, i32) {
    %c0_i32 = arith.constant 0 : i32
    %c0_i32_0 = arith.constant 0 : i32
    return %arg0, %c0_i32 : i32, i32
  }
}

module attributes {stable_mosaic.version = 11 : i64} {
  func.func @_lstm_seq_kernel(%arg0: i32, %arg1: i32, %arg2: memref<8x16x16xf32, #tpu.memory_space<vmem>>, %arg3: memref<16x512xbf16, #tpu.memory_space<vmem>>, %arg4: memref<128x512xbf16, #tpu.memory_space<vmem>>, %arg5: memref<1x512xf32, #tpu.memory_space<vmem>>, %arg6: memref<8x16x128xbf16, #tpu.memory_space<vmem>>, %arg7: memref<16x128xf32, #tpu.memory_space<vmem>>, %arg8: memref<16x128xf32, #tpu.memory_space<vmem>>) attributes {dimension_semantics = [#tpu.dimension_semantics<parallel>, #tpu.dimension_semantics<arbitrary>], iteration_bounds = array<i64: 1, 1>, scalar_prefetch = 0 : i64, scratch_operands = 2 : i64, tpu.core_type = #tpu.core_type<tc>, window_params = [{transform_indices = @transform_0, window_bounds = array<i64: 8, 16, 16>}, {pipeline_mode = #tpu.pipeline_mode<synchronous>, transform_indices = @transform_1, window_bounds = array<i64: 16, 512>}, {pipeline_mode = #tpu.pipeline_mode<synchronous>, transform_indices = @transform_2, window_bounds = array<i64: 128, 512>}, {pipeline_mode = #tpu.pipeline_mode<synchronous>, transform_indices = @transform_3, window_bounds = array<i64: 1, 512>}, {transform_indices = @transform_4, window_bounds = array<i64: 8, 16, 128>}]} {
    %c0_i32 = arith.constant 0 : i32
    %0 = arith.cmpi eq, %arg1, %c0_i32 : i32
    %1 = arith.extui %0 : i1 to i32
    %c0_i32_0 = arith.constant 0 : i32
    %2 = arith.cmpi ne, %1, %c0_i32_0 : i32
    scf.if %2 {
      %cst_66 = arith.constant 0.000000e+00 : f32
      %233 = vector.broadcast %cst_66 : f32 to vector<16x128xf32>
      %c0_67 = arith.constant 0 : index
      %c0_68 = arith.constant 0 : index
      %234 = vector.load %arg7[%c0_67, %c0_68] : memref<16x128xf32, #tpu.memory_space<vmem>>, vector<16x128xf32>
      tpu.vector_store %arg7[%c0_67, %c0_68], %233 {strides = array<i32>} : memref<16x128xf32, #tpu.memory_space<vmem>>, vector<16x128xf32>,
      %cst_69 = arith.constant 0.000000e+00 : f32
      %235 = vector.broadcast %cst_69 : f32 to vector<16x128xf32>
      %c0_70 = arith.constant 0 : index
      %c0_71 = arith.constant 0 : index
      %236 = vector.load %arg8[%c0_70, %c0_71] : memref<16x128xf32, #tpu.memory_space<vmem>>, vector<16x128xf32>
      tpu.vector_store %arg8[%c0_70, %c0_71], %235 {strides = array<i32>} : memref<16x128xf32, #tpu.memory_space<vmem>>, vector<16x128xf32>,
    } else {
    }
    %c0 = arith.constant 0 : index
    %c0_1 = arith.constant 0 : index
    %3 = vector.load %arg3[%c0, %c0_1] : memref<16x512xbf16, #tpu.memory_space<vmem>>, vector<16x512xbf16>
    %c0_2 = arith.constant 0 : index
    %c0_3 = arith.constant 0 : index
    %4 = vector.load %arg4[%c0_2, %c0_3] : memref<128x512xbf16, #tpu.memory_space<vmem>>, vector<128x512xbf16>
    %c0_4 = arith.constant 0 : index
    %c0_5 = arith.constant 0 : index
    %c0_6 = arith.constant 0 : index
    %5 = vector.load %arg2[%c0_4, %c0_5, %c0_6] : memref<8x16x16xf32, #tpu.memory_space<vmem>>, vector<8x16x16xf32>
    %6 = vector.shape_cast %5 : vector<8x16x16xf32> to vector<128x16xf32>
    %7 = arith.truncf %6 : vector<128x16xf32> to vector<128x16xbf16>
    %cst = arith.constant dense<0.000000e+00> : vector<128x512xf32>
    %8 = tpu.matmul %7, %3, %cst {dimension_numbers = #tpu.dot_dimension_numbers<[1], [0], [0], [1], [0, 0, 1, 1], [], []>} : vector<128x16xbf16>, vector<16x512xbf16>, vector<128x512xf32> -> vector<128x512xf32>
    %c0_7 = arith.constant 0 : index
    %c0_8 = arith.constant 0 : index
    %9 = vector.load %arg5[%c0_7, %c0_8] : memref<1x512xf32, #tpu.memory_space<vmem>>, vector<1x512xf32>
    %10 = vector.broadcast %9 : vector<1x512xf32> to vector<128x512xf32>
    %11 = arith.addf %8, %10 : vector<128x512xf32>
    %12 = vector.shape_cast %11 : vector<128x512xf32> to vector<8x16x512xf32>
    %c0_9 = arith.constant 0 : index
    %c0_10 = arith.constant 0 : index
    %13 = vector.load %arg7[%c0_9, %c0_10] : memref<16x128xf32, #tpu.memory_space<vmem>>, vector<16x128xf32>
    %c0_11 = arith.constant 0 : index
    %c0_12 = arith.constant 0 : index
    %14 = vector.load %arg8[%c0_11, %c0_12] : memref<16x128xf32, #tpu.memory_space<vmem>>, vector<16x128xf32>
    %15 = vector.extract_strided_slice %12 {offsets = [0, 0, 0], sizes = [1, 16, 512], strides = [1, 1, 1]} : vector<8x16x512xf32> to vector<1x16x512xf32>
    %16 = vector.shape_cast %15 : vector<1x16x512xf32> to vector<16x512xf32>
    %17 = arith.truncf %13 : vector<16x128xf32> to vector<16x128xbf16>
    %cst_13 = arith.constant dense<0.000000e+00> : vector<16x512xf32>
    %18 = tpu.matmul %17, %4, %cst_13 {dimension_numbers = #tpu.dot_dimension_numbers<[1], [0], [0], [1], [0, 0, 1, 1], [], []>} : vector<16x128xbf16>, vector<128x512xbf16>, vector<16x512xf32> -> vector<16x512xf32>
    %19 = arith.addf %16, %18 : vector<16x512xf32>
    %20 = vector.extract_strided_slice %19 {offsets = [0, 0], sizes = [16, 384], strides = [1, 1]} : vector<16x512xf32> to vector<16x384xf32>
    %cst_14 = arith.constant 5.000000e-01 : f32
    %21 = vector.broadcast %cst_14 : f32 to vector<16x384xf32>
    %22 = arith.mulf %21, %20 : vector<16x384xf32>
    %23 = math.tanh %22 : vector<16x384xf32>
    %cst_15 = arith.constant 5.000000e-01 : f32
    %24 = vector.broadcast %cst_15 : f32 to vector<16x384xf32>
    %25 = arith.mulf %24, %23 : vector<16x384xf32>
    %cst_16 = arith.constant 5.000000e-01 : f32
    %26 = vector.broadcast %cst_16 : f32 to vector<16x384xf32>
    %27 = arith.addf %25, %26 : vector<16x384xf32>
    %28 = vector.extract_strided_slice %27 {offsets = [0, 0], sizes = [16, 128], strides = [1, 1]} : vector<16x384xf32> to vector<16x128xf32>
    %29 = vector.extract_strided_slice %27 {offsets = [0, 128], sizes = [16, 128], strides = [1, 1]} : vector<16x384xf32> to vector<16x128xf32>
    %30 = vector.extract_strided_slice %27 {offsets = [0, 256], sizes = [16, 128], strides = [1, 1]} : vector<16x384xf32> to vector<16x128xf32>
    %31 = vector.extract_strided_slice %19 {offsets = [0, 384], sizes = [16, 128], strides = [1, 1]} : vector<16x512xf32> to vector<16x128xf32>
    %32 = math.tanh %31 : vector<16x128xf32>
    %33 = arith.mulf %29, %14 : vector<16x128xf32>
    %34 = arith.mulf %28, %32 : vector<16x128xf32>
    %35 = arith.addf %33, %34 : vector<16x128xf32>
    %36 = math.tanh %35 : vector<16x128xf32>
    %37 = arith.mulf %30, %36 : vector<16x128xf32>
    %38 = arith.truncf %37 : vector<16x128xf32> to vector<16x128xbf16>
    %c0_17 = arith.constant 0 : index
    %c0_18 = arith.constant 0 : index
    %c0_19 = arith.constant 0 : index
    %39 = vector.load %arg6[%c0_17, %c0_18, %c0_19] : memref<8x16x128xbf16, #tpu.memory_space<vmem>>, vector<1x16x128xbf16>
    %40 = vector.shape_cast %39 : vector<1x16x128xbf16> to vector<16x128xbf16>
    %41 = vector.shape_cast %38 : vector<16x128xbf16> to vector<1x16x128xbf16>
    tpu.vector_store %arg6[%c0_17, %c0_18, %c0_19], %41 {strides = array<i32>} : memref<8x16x128xbf16, #tpu.memory_space<vmem>>, vector<1x16x128xbf16>,
    %42 = vector.extract_strided_slice %12 {offsets = [1, 0, 0], sizes = [1, 16, 512], strides = [1, 1, 1]} : vector<8x16x512xf32> to vector<1x16x512xf32>
    %43 = vector.shape_cast %42 : vector<1x16x512xf32> to vector<16x512xf32>
    %44 = arith.truncf %37 : vector<16x128xf32> to vector<16x128xbf16>
    %cst_20 = arith.constant dense<0.000000e+00> : vector<16x512xf32>
    %45 = tpu.matmul %44, %4, %cst_20 {dimension_numbers = #tpu.dot_dimension_numbers<[1], [0], [0], [1], [0, 0, 1, 1], [], []>} : vector<16x128xbf16>, vector<128x512xbf16>, vector<16x512xf32> -> vector<16x512xf32>
    %46 = arith.addf %43, %45 : vector<16x512xf32>
    %47 = vector.extract_strided_slice %46 {offsets = [0, 0], sizes = [16, 384], strides = [1, 1]} : vector<16x512xf32> to vector<16x384xf32>
    %cst_21 = arith.constant 5.000000e-01 : f32
    %48 = vector.broadcast %cst_21 : f32 to vector<16x384xf32>
    %49 = arith.mulf %48, %47 : vector<16x384xf32>
    %50 = math.tanh %49 : vector<16x384xf32>
    %cst_22 = arith.constant 5.000000e-01 : f32
    %51 = vector.broadcast %cst_22 : f32 to vector<16x384xf32>
    %52 = arith.mulf %51, %50 : vector<16x384xf32>
    %cst_23 = arith.constant 5.000000e-01 : f32
    %53 = vector.broadcast %cst_23 : f32 to vector<16x384xf32>
    %54 = arith.addf %52, %53 : vector<16x384xf32>
    %55 = vector.extract_strided_slice %54 {offsets = [0, 0], sizes = [16, 128], strides = [1, 1]} : vector<16x384xf32> to vector<16x128xf32>
    %56 = vector.extract_strided_slice %54 {offsets = [0, 128], sizes = [16, 128], strides = [1, 1]} : vector<16x384xf32> to vector<16x128xf32>
    %57 = vector.extract_strided_slice %54 {offsets = [0, 256], sizes = [16, 128], strides = [1, 1]} : vector<16x384xf32> to vector<16x128xf32>
    %58 = vector.extract_strided_slice %46 {offsets = [0, 384], sizes = [16, 128], strides = [1, 1]} : vector<16x512xf32> to vector<16x128xf32>
    %59 = math.tanh %58 : vector<16x128xf32>
    %60 = arith.mulf %56, %35 : vector<16x128xf32>
    %61 = arith.mulf %55, %59 : vector<16x128xf32>
    %62 = arith.addf %60, %61 : vector<16x128xf32>
    %63 = math.tanh %62 : vector<16x128xf32>
    %64 = arith.mulf %57, %63 : vector<16x128xf32>
    %65 = arith.truncf %64 : vector<16x128xf32> to vector<16x128xbf16>
    %c1 = arith.constant 1 : index
    %c0_24 = arith.constant 0 : index
    %c0_25 = arith.constant 0 : index
    %66 = vector.load %arg6[%c1, %c0_24, %c0_25] : memref<8x16x128xbf16, #tpu.memory_space<vmem>>, vector<1x16x128xbf16>
    %67 = vector.shape_cast %66 : vector<1x16x128xbf16> to vector<16x128xbf16>
    %68 = vector.shape_cast %65 : vector<16x128xbf16> to vector<1x16x128xbf16>
    tpu.vector_store %arg6[%c1, %c0_24, %c0_25], %68 {strides = array<i32>} : memref<8x16x128xbf16, #tpu.memory_space<vmem>>, vector<1x16x128xbf16>,
    %69 = vector.extract_strided_slice %12 {offsets = [2, 0, 0], sizes = [1, 16, 512], strides = [1, 1, 1]} : vector<8x16x512xf32> to vector<1x16x512xf32>
    %70 = vector.shape_cast %69 : vector<1x16x512xf32> to vector<16x512xf32>
    %71 = arith.truncf %64 : vector<16x128xf32> to vector<16x128xbf16>
    %cst_26 = arith.constant dense<0.000000e+00> : vector<16x512xf32>
    %72 = tpu.matmul %71, %4, %cst_26 {dimension_numbers = #tpu.dot_dimension_numbers<[1], [0], [0], [1], [0, 0, 1, 1], [], []>} : vector<16x128xbf16>, vector<128x512xbf16>, vector<16x512xf32> -> vector<16x512xf32>
    %73 = arith.addf %70, %72 : vector<16x512xf32>
    %74 = vector.extract_strided_slice %73 {offsets = [0, 0], sizes = [16, 384], strides = [1, 1]} : vector<16x512xf32> to vector<16x384xf32>
    %cst_27 = arith.constant 5.000000e-01 : f32
    %75 = vector.broadcast %cst_27 : f32 to vector<16x384xf32>
    %76 = arith.mulf %75, %74 : vector<16x384xf32>
    %77 = math.tanh %76 : vector<16x384xf32>
    %cst_28 = arith.constant 5.000000e-01 : f32
    %78 = vector.broadcast %cst_28 : f32 to vector<16x384xf32>
    %79 = arith.mulf %78, %77 : vector<16x384xf32>
    %cst_29 = arith.constant 5.000000e-01 : f32
    %80 = vector.broadcast %cst_29 : f32 to vector<16x384xf32>
    %81 = arith.addf %79, %80 : vector<16x384xf32>
    %82 = vector.extract_strided_slice %81 {offsets = [0, 0], sizes = [16, 128], strides = [1, 1]} : vector<16x384xf32> to vector<16x128xf32>
    %83 = vector.extract_strided_slice %81 {offsets = [0, 128], sizes = [16, 128], strides = [1, 1]} : vector<16x384xf32> to vector<16x128xf32>
    %84 = vector.extract_strided_slice %81 {offsets = [0, 256], sizes = [16, 128], strides = [1, 1]} : vector<16x384xf32> to vector<16x128xf32>
    %85 = vector.extract_strided_slice %73 {offsets = [0, 384], sizes = [16, 128], strides = [1, 1]} : vector<16x512xf32> to vector<16x128xf32>
    %86 = math.tanh %85 : vector<16x128xf32>
    %87 = arith.mulf %83, %62 : vector<16x128xf32>
    %88 = arith.mulf %82, %86 : vector<16x128xf32>
    %89 = arith.addf %87, %88 : vector<16x128xf32>
    %90 = math.tanh %89 : vector<16x128xf32>
    %91 = arith.mulf %84, %90 : vector<16x128xf32>
    %92 = arith.truncf %91 : vector<16x128xf32> to vector<16x128xbf16>
    %c2 = arith.constant 2 : index
    %c0_30 = arith.constant 0 : index
    %c0_31 = arith.constant 0 : index
    %93 = vector.load %arg6[%c2, %c0_30, %c0_31] : memref<8x16x128xbf16, #tpu.memory_space<vmem>>, vector<1x16x128xbf16>
    %94 = vector.shape_cast %93 : vector<1x16x128xbf16> to vector<16x128xbf16>
    %95 = vector.shape_cast %92 : vector<16x128xbf16> to vector<1x16x128xbf16>
    tpu.vector_store %arg6[%c2, %c0_30, %c0_31], %95 {strides = array<i32>} : memref<8x16x128xbf16, #tpu.memory_space<vmem>>, vector<1x16x128xbf16>,
    %96 = vector.extract_strided_slice %12 {offsets = [3, 0, 0], sizes = [1, 16, 512], strides = [1, 1, 1]} : vector<8x16x512xf32> to vector<1x16x512xf32>
    %97 = vector.shape_cast %96 : vector<1x16x512xf32> to vector<16x512xf32>
    %98 = arith.truncf %91 : vector<16x128xf32> to vector<16x128xbf16>
    %cst_32 = arith.constant dense<0.000000e+00> : vector<16x512xf32>
    %99 = tpu.matmul %98, %4, %cst_32 {dimension_numbers = #tpu.dot_dimension_numbers<[1], [0], [0], [1], [0, 0, 1, 1], [], []>} : vector<16x128xbf16>, vector<128x512xbf16>, vector<16x512xf32> -> vector<16x512xf32>
    %100 = arith.addf %97, %99 : vector<16x512xf32>
    %101 = vector.extract_strided_slice %100 {offsets = [0, 0], sizes = [16, 384], strides = [1, 1]} : vector<16x512xf32> to vector<16x384xf32>
    %cst_33 = arith.constant 5.000000e-01 : f32
    %102 = vector.broadcast %cst_33 : f32 to vector<16x384xf32>
    %103 = arith.mulf %102, %101 : vector<16x384xf32>
    %104 = math.tanh %103 : vector<16x384xf32>
    %cst_34 = arith.constant 5.000000e-01 : f32
    %105 = vector.broadcast %cst_34 : f32 to vector<16x384xf32>
    %106 = arith.mulf %105, %104 : vector<16x384xf32>
    %cst_35 = arith.constant 5.000000e-01 : f32
    %107 = vector.broadcast %cst_35 : f32 to vector<16x384xf32>
    %108 = arith.addf %106, %107 : vector<16x384xf32>
    %109 = vector.extract_strided_slice %108 {offsets = [0, 0], sizes = [16, 128], strides = [1, 1]} : vector<16x384xf32> to vector<16x128xf32>
    %110 = vector.extract_strided_slice %108 {offsets = [0, 128], sizes = [16, 128], strides = [1, 1]} : vector<16x384xf32> to vector<16x128xf32>
    %111 = vector.extract_strided_slice %108 {offsets = [0, 256], sizes = [16, 128], strides = [1, 1]} : vector<16x384xf32> to vector<16x128xf32>
    %112 = vector.extract_strided_slice %100 {offsets = [0, 384], sizes = [16, 128], strides = [1, 1]} : vector<16x512xf32> to vector<16x128xf32>
    %113 = math.tanh %112 : vector<16x128xf32>
    %114 = arith.mulf %110, %89 : vector<16x128xf32>
    %115 = arith.mulf %109, %113 : vector<16x128xf32>
    %116 = arith.addf %114, %115 : vector<16x128xf32>
    %117 = math.tanh %116 : vector<16x128xf32>
    %118 = arith.mulf %111, %117 : vector<16x128xf32>
    %119 = arith.truncf %118 : vector<16x128xf32> to vector<16x128xbf16>
    %c3 = arith.constant 3 : index
    %c0_36 = arith.constant 0 : index
    %c0_37 = arith.constant 0 : index
    %120 = vector.load %arg6[%c3, %c0_36, %c0_37] : memref<8x16x128xbf16, #tpu.memory_space<vmem>>, vector<1x16x128xbf16>
    %121 = vector.shape_cast %120 : vector<1x16x128xbf16> to vector<16x128xbf16>
    %122 = vector.shape_cast %119 : vector<16x128xbf16> to vector<1x16x128xbf16>
    tpu.vector_store %arg6[%c3, %c0_36, %c0_37], %122 {strides = array<i32>} : memref<8x16x128xbf16, #tpu.memory_space<vmem>>, vector<1x16x128xbf16>,
    %123 = vector.extract_strided_slice %12 {offsets = [4, 0, 0], sizes = [1, 16, 512], strides = [1, 1, 1]} : vector<8x16x512xf32> to vector<1x16x512xf32>
    %124 = vector.shape_cast %123 : vector<1x16x512xf32> to vector<16x512xf32>
    %125 = arith.truncf %118 : vector<16x128xf32> to vector<16x128xbf16>
    %cst_38 = arith.constant dense<0.000000e+00> : vector<16x512xf32>
    %126 = tpu.matmul %125, %4, %cst_38 {dimension_numbers = #tpu.dot_dimension_numbers<[1], [0], [0], [1], [0, 0, 1, 1], [], []>} : vector<16x128xbf16>, vector<128x512xbf16>, vector<16x512xf32> -> vector<16x512xf32>
    %127 = arith.addf %124, %126 : vector<16x512xf32>
    %128 = vector.extract_strided_slice %127 {offsets = [0, 0], sizes = [16, 384], strides = [1, 1]} : vector<16x512xf32> to vector<16x384xf32>
    %cst_39 = arith.constant 5.000000e-01 : f32
    %129 = vector.broadcast %cst_39 : f32 to vector<16x384xf32>
    %130 = arith.mulf %129, %128 : vector<16x384xf32>
    %131 = math.tanh %130 : vector<16x384xf32>
    %cst_40 = arith.constant 5.000000e-01 : f32
    %132 = vector.broadcast %cst_40 : f32 to vector<16x384xf32>
    %133 = arith.mulf %132, %131 : vector<16x384xf32>
    %cst_41 = arith.constant 5.000000e-01 : f32
    %134 = vector.broadcast %cst_41 : f32 to vector<16x384xf32>
    %135 = arith.addf %133, %134 : vector<16x384xf32>
    %136 = vector.extract_strided_slice %135 {offsets = [0, 0], sizes = [16, 128], strides = [1, 1]} : vector<16x384xf32> to vector<16x128xf32>
    %137 = vector.extract_strided_slice %135 {offsets = [0, 128], sizes = [16, 128], strides = [1, 1]} : vector<16x384xf32> to vector<16x128xf32>
    %138 = vector.extract_strided_slice %135 {offsets = [0, 256], sizes = [16, 128], strides = [1, 1]} : vector<16x384xf32> to vector<16x128xf32>
    %139 = vector.extract_strided_slice %127 {offsets = [0, 384], sizes = [16, 128], strides = [1, 1]} : vector<16x512xf32> to vector<16x128xf32>
    %140 = math.tanh %139 : vector<16x128xf32>
    %141 = arith.mulf %137, %116 : vector<16x128xf32>
    %142 = arith.mulf %136, %140 : vector<16x128xf32>
    %143 = arith.addf %141, %142 : vector<16x128xf32>
    %144 = math.tanh %143 : vector<16x128xf32>
    %145 = arith.mulf %138, %144 : vector<16x128xf32>
    %146 = arith.truncf %145 : vector<16x128xf32> to vector<16x128xbf16>
    %c4 = arith.constant 4 : index
    %c0_42 = arith.constant 0 : index
    %c0_43 = arith.constant 0 : index
    %147 = vector.load %arg6[%c4, %c0_42, %c0_43] : memref<8x16x128xbf16, #tpu.memory_space<vmem>>, vector<1x16x128xbf16>
    %148 = vector.shape_cast %147 : vector<1x16x128xbf16> to vector<16x128xbf16>
    %149 = vector.shape_cast %146 : vector<16x128xbf16> to vector<1x16x128xbf16>
    tpu.vector_store %arg6[%c4, %c0_42, %c0_43], %149 {strides = array<i32>} : memref<8x16x128xbf16, #tpu.memory_space<vmem>>, vector<1x16x128xbf16>,
    %150 = vector.extract_strided_slice %12 {offsets = [5, 0, 0], sizes = [1, 16, 512], strides = [1, 1, 1]} : vector<8x16x512xf32> to vector<1x16x512xf32>
    %151 = vector.shape_cast %150 : vector<1x16x512xf32> to vector<16x512xf32>
    %152 = arith.truncf %145 : vector<16x128xf32> to vector<16x128xbf16>
    %cst_44 = arith.constant dense<0.000000e+00> : vector<16x512xf32>
    %153 = tpu.matmul %152, %4, %cst_44 {dimension_numbers = #tpu.dot_dimension_numbers<[1], [0], [0], [1], [0, 0, 1, 1], [], []>} : vector<16x128xbf16>, vector<128x512xbf16>, vector<16x512xf32> -> vector<16x512xf32>
    %154 = arith.addf %151, %153 : vector<16x512xf32>
    %155 = vector.extract_strided_slice %154 {offsets = [0, 0], sizes = [16, 384], strides = [1, 1]} : vector<16x512xf32> to vector<16x384xf32>
    %cst_45 = arith.constant 5.000000e-01 : f32
    %156 = vector.broadcast %cst_45 : f32 to vector<16x384xf32>
    %157 = arith.mulf %156, %155 : vector<16x384xf32>
    %158 = math.tanh %157 : vector<16x384xf32>
    %cst_46 = arith.constant 5.000000e-01 : f32
    %159 = vector.broadcast %cst_46 : f32 to vector<16x384xf32>
    %160 = arith.mulf %159, %158 : vector<16x384xf32>
    %cst_47 = arith.constant 5.000000e-01 : f32
    %161 = vector.broadcast %cst_47 : f32 to vector<16x384xf32>
    %162 = arith.addf %160, %161 : vector<16x384xf32>
    %163 = vector.extract_strided_slice %162 {offsets = [0, 0], sizes = [16, 128], strides = [1, 1]} : vector<16x384xf32> to vector<16x128xf32>
    %164 = vector.extract_strided_slice %162 {offsets = [0, 128], sizes = [16, 128], strides = [1, 1]} : vector<16x384xf32> to vector<16x128xf32>
    %165 = vector.extract_strided_slice %162 {offsets = [0, 256], sizes = [16, 128], strides = [1, 1]} : vector<16x384xf32> to vector<16x128xf32>
    %166 = vector.extract_strided_slice %154 {offsets = [0, 384], sizes = [16, 128], strides = [1, 1]} : vector<16x512xf32> to vector<16x128xf32>
    %167 = math.tanh %166 : vector<16x128xf32>
    %168 = arith.mulf %164, %143 : vector<16x128xf32>
    %169 = arith.mulf %163, %167 : vector<16x128xf32>
    %170 = arith.addf %168, %169 : vector<16x128xf32>
    %171 = math.tanh %170 : vector<16x128xf32>
    %172 = arith.mulf %165, %171 : vector<16x128xf32>
    %173 = arith.truncf %172 : vector<16x128xf32> to vector<16x128xbf16>
    %c5 = arith.constant 5 : index
    %c0_48 = arith.constant 0 : index
    %c0_49 = arith.constant 0 : index
    %174 = vector.load %arg6[%c5, %c0_48, %c0_49] : memref<8x16x128xbf16, #tpu.memory_space<vmem>>, vector<1x16x128xbf16>
    %175 = vector.shape_cast %174 : vector<1x16x128xbf16> to vector<16x128xbf16>
    %176 = vector.shape_cast %173 : vector<16x128xbf16> to vector<1x16x128xbf16>
    tpu.vector_store %arg6[%c5, %c0_48, %c0_49], %176 {strides = array<i32>} : memref<8x16x128xbf16, #tpu.memory_space<vmem>>, vector<1x16x128xbf16>,
    %177 = vector.extract_strided_slice %12 {offsets = [6, 0, 0], sizes = [1, 16, 512], strides = [1, 1, 1]} : vector<8x16x512xf32> to vector<1x16x512xf32>
    %178 = vector.shape_cast %177 : vector<1x16x512xf32> to vector<16x512xf32>
    %179 = arith.truncf %172 : vector<16x128xf32> to vector<16x128xbf16>
    %cst_50 = arith.constant dense<0.000000e+00> : vector<16x512xf32>
    %180 = tpu.matmul %179, %4, %cst_50 {dimension_numbers = #tpu.dot_dimension_numbers<[1], [0], [0], [1], [0, 0, 1, 1], [], []>} : vector<16x128xbf16>, vector<128x512xbf16>, vector<16x512xf32> -> vector<16x512xf32>
    %181 = arith.addf %178, %180 : vector<16x512xf32>
    %182 = vector.extract_strided_slice %181 {offsets = [0, 0], sizes = [16, 384], strides = [1, 1]} : vector<16x512xf32> to vector<16x384xf32>
    %cst_51 = arith.constant 5.000000e-01 : f32
    %183 = vector.broadcast %cst_51 : f32 to vector<16x384xf32>
    %184 = arith.mulf %183, %182 : vector<16x384xf32>
    %185 = math.tanh %184 : vector<16x384xf32>
    %cst_52 = arith.constant 5.000000e-01 : f32
    %186 = vector.broadcast %cst_52 : f32 to vector<16x384xf32>
    %187 = arith.mulf %186, %185 : vector<16x384xf32>
    %cst_53 = arith.constant 5.000000e-01 : f32
    %188 = vector.broadcast %cst_53 : f32 to vector<16x384xf32>
    %189 = arith.addf %187, %188 : vector<16x384xf32>
    %190 = vector.extract_strided_slice %189 {offsets = [0, 0], sizes = [16, 128], strides = [1, 1]} : vector<16x384xf32> to vector<16x128xf32>
    %191 = vector.extract_strided_slice %189 {offsets = [0, 128], sizes = [16, 128], strides = [1, 1]} : vector<16x384xf32> to vector<16x128xf32>
    %192 = vector.extract_strided_slice %189 {offsets = [0, 256], sizes = [16, 128], strides = [1, 1]} : vector<16x384xf32> to vector<16x128xf32>
    %193 = vector.extract_strided_slice %181 {offsets = [0, 384], sizes = [16, 128], strides = [1, 1]} : vector<16x512xf32> to vector<16x128xf32>
    %194 = math.tanh %193 : vector<16x128xf32>
    %195 = arith.mulf %191, %170 : vector<16x128xf32>
    %196 = arith.mulf %190, %194 : vector<16x128xf32>
    %197 = arith.addf %195, %196 : vector<16x128xf32>
    %198 = math.tanh %197 : vector<16x128xf32>
    %199 = arith.mulf %192, %198 : vector<16x128xf32>
    %200 = arith.truncf %199 : vector<16x128xf32> to vector<16x128xbf16>
    %c6 = arith.constant 6 : index
    %c0_54 = arith.constant 0 : index
    %c0_55 = arith.constant 0 : index
    %201 = vector.load %arg6[%c6, %c0_54, %c0_55] : memref<8x16x128xbf16, #tpu.memory_space<vmem>>, vector<1x16x128xbf16>
    %202 = vector.shape_cast %201 : vector<1x16x128xbf16> to vector<16x128xbf16>
    %203 = vector.shape_cast %200 : vector<16x128xbf16> to vector<1x16x128xbf16>
    tpu.vector_store %arg6[%c6, %c0_54, %c0_55], %203 {strides = array<i32>} : memref<8x16x128xbf16, #tpu.memory_space<vmem>>, vector<1x16x128xbf16>,
    %204 = vector.extract_strided_slice %12 {offsets = [7, 0, 0], sizes = [1, 16, 512], strides = [1, 1, 1]} : vector<8x16x512xf32> to vector<1x16x512xf32>
    %205 = vector.shape_cast %204 : vector<1x16x512xf32> to vector<16x512xf32>
    %206 = arith.truncf %199 : vector<16x128xf32> to vector<16x128xbf16>
    %cst_56 = arith.constant dense<0.000000e+00> : vector<16x512xf32>
    %207 = tpu.matmul %206, %4, %cst_56 {dimension_numbers = #tpu.dot_dimension_numbers<[1], [0], [0], [1], [0, 0, 1, 1], [], []>} : vector<16x128xbf16>, vector<128x512xbf16>, vector<16x512xf32> -> vector<16x512xf32>
    %208 = arith.addf %205, %207 : vector<16x512xf32>
    %209 = vector.extract_strided_slice %208 {offsets = [0, 0], sizes = [16, 384], strides = [1, 1]} : vector<16x512xf32> to vector<16x384xf32>
    %cst_57 = arith.constant 5.000000e-01 : f32
    %210 = vector.broadcast %cst_57 : f32 to vector<16x384xf32>
    %211 = arith.mulf %210, %209 : vector<16x384xf32>
    %212 = math.tanh %211 : vector<16x384xf32>
    %cst_58 = arith.constant 5.000000e-01 : f32
    %213 = vector.broadcast %cst_58 : f32 to vector<16x384xf32>
    %214 = arith.mulf %213, %212 : vector<16x384xf32>
    %cst_59 = arith.constant 5.000000e-01 : f32
    %215 = vector.broadcast %cst_59 : f32 to vector<16x384xf32>
    %216 = arith.addf %214, %215 : vector<16x384xf32>
    %217 = vector.extract_strided_slice %216 {offsets = [0, 0], sizes = [16, 128], strides = [1, 1]} : vector<16x384xf32> to vector<16x128xf32>
    %218 = vector.extract_strided_slice %216 {offsets = [0, 128], sizes = [16, 128], strides = [1, 1]} : vector<16x384xf32> to vector<16x128xf32>
    %219 = vector.extract_strided_slice %216 {offsets = [0, 256], sizes = [16, 128], strides = [1, 1]} : vector<16x384xf32> to vector<16x128xf32>
    %220 = vector.extract_strided_slice %208 {offsets = [0, 384], sizes = [16, 128], strides = [1, 1]} : vector<16x512xf32> to vector<16x128xf32>
    %221 = math.tanh %220 : vector<16x128xf32>
    %222 = arith.mulf %218, %197 : vector<16x128xf32>
    %223 = arith.mulf %217, %221 : vector<16x128xf32>
    %224 = arith.addf %222, %223 : vector<16x128xf32>
    %225 = math.tanh %224 : vector<16x128xf32>
    %226 = arith.mulf %219, %225 : vector<16x128xf32>
    %227 = arith.truncf %226 : vector<16x128xf32> to vector<16x128xbf16>
    %c7 = arith.constant 7 : index
    %c0_60 = arith.constant 0 : index
    %c0_61 = arith.constant 0 : index
    %228 = vector.load %arg6[%c7, %c0_60, %c0_61] : memref<8x16x128xbf16, #tpu.memory_space<vmem>>, vector<1x16x128xbf16>
    %229 = vector.shape_cast %228 : vector<1x16x128xbf16> to vector<16x128xbf16>
    %230 = vector.shape_cast %227 : vector<16x128xbf16> to vector<1x16x128xbf16>
    tpu.vector_store %arg6[%c7, %c0_60, %c0_61], %230 {strides = array<i32>} : memref<8x16x128xbf16, #tpu.memory_space<vmem>>, vector<1x16x128xbf16>,
    %c0_62 = arith.constant 0 : index
    %c0_63 = arith.constant 0 : index
    %231 = vector.load %arg7[%c0_62, %c0_63] : memref<16x128xf32, #tpu.memory_space<vmem>>, vector<16x128xf32>
    tpu.vector_store %arg7[%c0_62, %c0_63], %226 {strides = array<i32>} : memref<16x128xf32, #tpu.memory_space<vmem>>, vector<16x128xf32>,
    %c0_64 = arith.constant 0 : index
    %c0_65 = arith.constant 0 : index
    %232 = vector.load %arg8[%c0_64, %c0_65] : memref<16x128xf32, #tpu.memory_space<vmem>>, vector<16x128xf32>
    tpu.vector_store %arg8[%c0_64, %c0_65], %224 {strides = array<i32>} : memref<16x128xf32, #tpu.memory_space<vmem>>, vector<16x128xf32>,
    return
  }
  func.func @transform_0(%arg0: i32, %arg1: i32) -> (i32, i32, i32) {
    %c0_i32 = arith.constant 0 : i32
    %c0_i32_0 = arith.constant 0 : i32
    return %arg1, %arg0, %c0_i32 : i32, i32, i32
  }
  func.func @transform_1(%arg0: i32, %arg1: i32) -> (i32, i32) {
    %c0_i32 = arith.constant 0 : i32
    %c0_i32_0 = arith.constant 0 : i32
    %c0_i32_1 = arith.constant 0 : i32
    return %c0_i32, %c0_i32_0 : i32, i32
  }
  func.func @transform_2(%arg0: i32, %arg1: i32) -> (i32, i32) {
    %c0_i32 = arith.constant 0 : i32
    %c0_i32_0 = arith.constant 0 : i32
    %c0_i32_1 = arith.constant 0 : i32
    return %c0_i32, %c0_i32_0 : i32, i32
  }
  func.func @transform_3(%arg0: i32, %arg1: i32) -> (i32, i32) {
    %c0_i32 = arith.constant 0 : i32
    %c0_i32_0 = arith.constant 0 : i32
    %c0_i32_1 = arith.constant 0 : i32
    return %c0_i32, %c0_i32_0 : i32, i32
  }
  func.func @transform_4(%arg0: i32, %arg1: i32) -> (i32, i32, i32) {
    %c0_i32 = arith.constant 0 : i32
    %c0_i32_0 = arith.constant 0 : i32
    return %arg1, %arg0, %c0_i32 : i32, i32, i32
  }
}

</mosaic_0001>

<bundles_post_ra>
// kernel: lstm_forward.3
= control target key start
LH: loop header
LB: loop body
LE: loop exit
PB: predicated region body
PF: predicated region fallthrough
CT: control target
= control target key end

     0   :  { %v3456_v1 = vmov 0   ;;  %vm2329_vm0 = vmmov 0   ;;  %s3449_s1 = inlined_call_operand.vmem [shape: bf16[128,512], index: 1, kind: input, shape index: {}]   ;;  %s3450_s0 = inlined_call_operand.vmem [shape: bf16[8,16,128], index: 0, kind: input, shape index: {}]   ;;  %s3451_s2 = inlined_call_operand.vmem [shape: bf16[128,512], index: 2, kind: input, shape index: {}]   ;;  %s3452_s3 = inlined_call_operand.vmem [shape: f32[1,512], index: 3, kind: input, shape index: {}]   ;;  %s3453_s4 = inlined_call_operand.vmem [shape: bf16[128,128], index: 4, kind: input, shape index: {}]   ;;  %s3454_s5 = inlined_call_operand.vmem [shape: f32[1,128], index: 5, kind: input, shape index: {}]   ;;  %s3455_s6 = inlined_call_operand.vmem [shape: f32[16,128], index: 6, kind: output, shape index: {}]  }
   0x1   :  { %v2022_v0 = vld [vmem:[%s3449_s1 + $0xe4] ss:$16 sps:$4 sm:$0xff]   ;;  %374 = vmatprep.mubr.bf16.mxu0 %v3456_v1  ;;  %487 = vmatprep.mubr.bf16.mxu1 %v3456_v1  ;;  %v2024_v2 = vld [vmem:[%s3449_s1 + $0xec] ss:$16 sps:$4 sm:$0xff]   ;;  %v2026_v3 = vld [vmem:[%s3449_s1 + $0xe0] ss:$16 sps:$4 sm:$0xff]  }
   0x2   :  { %342 = vmatprep.subr.bf16.mxu0 %v2022_v0  ;;  %v2027_v4 = vld [vmem:[%s3449_s1 + $0xe8] ss:$16 sps:$4 sm:$0xff]   ;;  %455 = vmatprep.subr.bf16.mxu1 %v2024_v2  ;;  %v2028_v5 = vld [vmem:[%s3449_s1 + $0xc4] ss:$16 sps:$4 sm:$0xff]   ;;  %v2030_v6 = vld [vmem:[%s3449_s1 + $0xcc] ss:$16 sps:$4 sm:$0xff]  }
   0x3   :  { %343 = vmatpush1.bf16.msra.mxu0 %v2026_v3  ;;  %456 = vmatpush1.bf16.msra.mxu1 %v2027_v4  ;;  %v2032_v7 = vld [vmem:[%s3449_s1 + $0xc0] ss:$16 sps:$4 sm:$0xff]   ;;  %v2033_v8 = vld [vmem:[%s3449_s1 + $0xc8] ss:$16 sps:$4 sm:$0xff]   ;;  %v2034_v9 = vld [vmem:[%s3449_s1 + $0xa4] ss:$16 sps:$4 sm:$0xff]  }
   0x4   :  { %344 = vmatprep.subr.bf16.mxu0 %v2028_v5  ;;  %457 = vmatprep.subr.bf16.mxu1 %v2030_v6  ;;  %v2036_v10 = vld [vmem:[%s3449_s1 + $0xac] ss:$16 sps:$4 sm:$0xff]   ;;  %v2038_v11 = vld [vmem:[%s3449_s1 + $0xa0] ss:$16 sps:$4 sm:$0xff]   ;;  %v2039_v12 = vld [vmem:[%s3449_s1 + $0xa8] ss:$16 sps:$4 sm:$0xff]  }
   0x5   :  { %v2040_v13 = vld [vmem:[%s3449_s1 + $0x84] ss:$16 sps:$4 sm:$0xff]   ;;  %v2042_v14 = vld [vmem:[%s3449_s1 + $0x8c] ss:$16 sps:$4 sm:$0xff]   ;;  %v2044_v15 = vld [vmem:[%s3449_s1 + $0x80] ss:$16 sps:$4 sm:$0xff]  }
   0x6   :  { %v2045_v16 = vld [vmem:[%s3449_s1 + $0x88] ss:$16 sps:$4 sm:$0xff]   ;;  %v2046_v17 = vld [vmem:[%s3449_s1 + $0x64] ss:$16 sps:$4 sm:$0xff]   ;;  %v2048_v18 = vld [vmem:[%s3449_s1 + $0x6c] ss:$16 sps:$4 sm:$0xff]  }
   0x7   :  { %345 = vmatpush1.bf16.msra.mxu0 %v2032_v7  ;;  %458 = vmatpush1.bf16.msra.mxu1 %v2033_v8  ;;  %v2050_v19 = vld [vmem:[%s3449_s1 + $0x60] ss:$16 sps:$4 sm:$0xff]   ;;  %v2051_v20 = vld [vmem:[%s3449_s1 + $0x68] ss:$16 sps:$4 sm:$0xff]   ;;  %v2052_v21 = vld [vmem:[%s3449_s1 + $0x44] ss:$16 sps:$4 sm:$0xff]  }
   0x8   :  { %346 = vmatprep.subr.bf16.mxu0 %v2034_v9  ;;  %459 = vmatprep.subr.bf16.mxu1 %v2036_v10  ;;  %v2054_v22 = vld [vmem:[%s3449_s1 + $0x4c] ss:$16 sps:$4 sm:$0xff]   ;;  %v2056_v23 = vld [vmem:[%s3449_s1 + $0x40] ss:$16 sps:$4 sm:$0xff]   ;;  %v2057_v24 = vld [vmem:[%s3449_s1 + $0x48] ss:$16 sps:$4 sm:$0xff]  }
   0x9   :  { %v2058_v25 = vld [vmem:[%s3449_s1 + $0x24] ss:$16 sps:$4 sm:$0xff]   ;;  %v2060_v26 = vld [vmem:[%s3449_s1 + $0x2c] ss:$16 sps:$4 sm:$0xff]   ;;  %v2062_v27 = vld [vmem:[%s3449_s1 + $0x20] ss:$16 sps:$4 sm:$0xff]  }
   0xa   :  { %v2063_v28 = vld [vmem:[%s3449_s1 + $0x28] ss:$16 sps:$4 sm:$0xff]   ;;  %v2064_v29 = vld [vmem:[%s3449_s1 + $0x4] ss:$16 sps:$4 sm:$0xff]   ;;  %v2066_v30 = vld [vmem:[%s3449_s1 + $0xc] ss:$16 sps:$4 sm:$0xff]  }
   0xb   :  { %347 = vmatpush1.bf16.msra.mxu0 %v2038_v11  ;;  %460 = vmatpush1.bf16.msra.mxu1 %v2039_v12  ;;  %v2068_v31 = vld [vmem:[%s3449_s1] ss:$16 sps:$4 sm:$0xff]   ;;  %v2069_v32 = vld [vmem:[%s3449_s1 + $0x8] ss:$16 sps:$4 sm:$0xff]   ;;  %v2466_v33 = vld [vmem:[%s3451_s2 + $0xe4] ss:$16 sps:$4 sm:$0xff]   ;;  %v114_v11 = vlaneseq }
   0xc   :  { %348 = vmatprep.subr.bf16.mxu0 %v2040_v13  ;;  %461 = vmatprep.subr.bf16.mxu1 %v2042_v14  ;;  %v2471_v34 = vld [vmem:[%s3451_s2 + $0xec] ss:$16 sps:$4 sm:$0xff]   ;;  %v2070_v35 = vld [vmem:[%s3450_s0] sm:$0xff]   ;;  %v2486_v37 = vld [vmem:[%s3451_s2 + $0xe8] ss:$16 sps:$4 sm:$0xff]   ;;  %v2327_v10 = vmov 0.0|0.0  }
   0xd   :  { %v2479_v36 = vld [vmem:[%s3451_s2 + $0xe0] ss:$16 sps:$4 sm:$0xff]   ;;  %v2491_v38 = vld [vmem:[%s3451_s2 + $0xc4] ss:$16 sps:$4 sm:$0xff]   ;;  %v2496_v39 = vld [vmem:[%s3451_s2 + $0xcc] ss:$16 sps:$4 sm:$0xff]  }
   0xe   :  { %v2501_v40 = vld [vmem:[%s3451_s2 + $0xc0] ss:$16 sps:$4 sm:$0xff]   ;;  %v2508_v41 = vld [vmem:[%s3451_s2 + $0xc8] ss:$16 sps:$4 sm:$0xff]   ;;  %v2515_v42 = vld [vmem:[%s3451_s2 + $0xa4] ss:$16 sps:$4 sm:$0xff]  }
   0xf   :  { %349 = vmatpush1.bf16.msra.mxu0 %v2044_v15  ;;  %462 = vmatpush1.bf16.msra.mxu1 %v2045_v16  ;;  %v2522_v43 = vld [vmem:[%s3451_s2 + $0xac] ss:$16 sps:$4 sm:$0xff]   ;;  %v2531_v45 = vld [vmem:[%s3451_s2 + $0xa0] ss:$16 sps:$4 sm:$0xff]   ;;  %v2538_v46 = vld [vmem:[%s3451_s2 + $0xa8] ss:$16 sps:$4 sm:$0xff]  }
  0x10   :  { %350 = vmatprep.subr.bf16.mxu0 %v2046_v17  ;;  %463 = vmatprep.subr.bf16.mxu1 %v2048_v18  ;;  %v2077_v44 = vld [vmem:[%s3450_s0 + $0x8] sm:$0xff]   ;;  %v2543_v47 = vld [vmem:[%s3451_s2 + $0x84] ss:$16 sps:$4 sm:$0xff]   ;;  %v2558_v49 = vld [vmem:[%s3451_s2 + $0x80] ss:$16 sps:$4 sm:$0xff]   ;;  %v115_v12 = vshrl.u32 %v114_v11, 7 }
  0x11   :  { %v2549_v48 = vld [vmem:[%s3451_s2 + $0x8c] ss:$16 sps:$4 sm:$0xff]   ;;  %v2563_v50 = vld [vmem:[%s3451_s2 + $0x88] ss:$16 sps:$4 sm:$0xff]   ;;  %v2570_v51 = vld [vmem:[%s3451_s2 + $0x64] ss:$16 sps:$4 sm:$0xff]  }
  0x12   :  { %v2575_v52 = vld [vmem:[%s3451_s2 + $0x6c] ss:$16 sps:$4 sm:$0xff]   ;;  %v2084_v53 = vld [vmem:[%s3450_s0 + $0x10] sm:$0xff]   ;;  %v2590_v55 = vld [vmem:[%s3451_s2 + $0x68] ss:$16 sps:$4 sm:$0xff]   ;;  %v116_v17 = vsub.s32 0, %v115_v12 }
  0x13   :  { %351 = vmatpush1.bf16.msra.mxu0 %v2050_v19  ;;  %464 = vmatpush1.bf16.msra.mxu1 %v2051_v20  ;;  %v2583_v54 = vld [vmem:[%s3451_s2 + $0x60] ss:$16 sps:$4 sm:$0xff]   ;;  %v2597_v56 = vld [vmem:[%s3451_s2 + $0x44] ss:$16 sps:$4 sm:$0xff]   ;;  %v2602_v57 = vld [vmem:[%s3451_s2 + $0x4c] ss:$16 sps:$4 sm:$0xff]  }
  0x14   :  { %352 = vmatprep.subr.bf16.mxu0 %v2052_v21  ;;  %465 = vmatprep.subr.bf16.mxu1 %v2054_v22  ;;  %v2611_v58 = vld [vmem:[%s3451_s2 + $0x40] ss:$16 sps:$4 sm:$0xff]   ;;  %v2616_v59 = vld [vmem:[%s3451_s2 + $0x48] ss:$16 sps:$4 sm:$0xff]   ;;  %v2623_v60 = vld [vmem:[%s3451_s2 + $0x24] ss:$16 sps:$4 sm:$0xff]  }
  0x15   :  { %v2628_v61 = vld [vmem:[%s3451_s2 + $0x2c] ss:$16 sps:$4 sm:$0xff]   ;;  %v2638_v63 = vld [vmem:[%s3451_s2 + $0x20] ss:$16 sps:$4 sm:$0xff]   ;;  %v2643_v0 = vld [vmem:[%s3451_s2 + $0x28] ss:$16 sps:$4 sm:$0xff]  }
  0x16   :  { %v2091_v62 = vld [vmem:[%s3450_s0 + $0x18] sm:$0xff]   ;;  %v2650_v2 = vld [vmem:[%s3451_s2 + $0x4] ss:$16 sps:$4 sm:$0xff]   ;;  %v2664_v4 = vld [vmem:[%s3451_s2] ss:$16 sps:$4 sm:$0xff]   ;;  %v124_v18 = vsub.s32 2, %v115_v12 }
  0x17   :  { %353 = vmatpush1.bf16.msra.mxu0 %v2056_v23  ;;  %466 = vmatpush1.bf16.msra.mxu1 %v2057_v24  ;;  %v2655_v3 = vld [vmem:[%s3451_s2 + $0xc] ss:$16 sps:$4 sm:$0xff]   ;;  %v2669_v5 = vld [vmem:[%s3451_s2 + $0x8] ss:$16 sps:$4 sm:$0xff]   ;;  %v2098_v6 = vld [vmem:[%s3450_s0 + $0x20] sm:$0xff]   ;;  %v120_v22 = vsub.s32 1, %v115_v12 }
  0x18   :  { %354 = vmatprep.subr.bf16.mxu0 %v2058_v25  ;;  %467 = vmatprep.subr.bf16.mxu1 %v2060_v26  ;;  %v2105_v7 = vld [vmem:[%s3450_s0 + $0x28] sm:$0xff]   ;;  %v2112_v8 = vld [vmem:[%s3450_s0 + $0x30] sm:$0xff]   ;;  %v2119_v9 = vld [vmem:[%s3450_s0 + $0x38] sm:$0xff]   ;;  %v128_v23 = vsub.s32 3, %v115_v12 }
  0x19   :  { %v112_v19 = vld [vmem:[%s3452_s3] sm:$0xf] }
  0x1a   :  { %v2750_v26 = vrot.slane %v112_v19, %v116_v17 }
  0x1b   :  { %355 = vmatpush1.bf16.msra.mxu0 %v2062_v27  ;;  %468 = vmatpush1.bf16.msra.mxu1 %v2063_v28  ;;  %v2752_v27 = vrot.slane %v112_v19, %v124_v18 }
  0x1c   :  { %356 = vmatprep.subr.bf16.mxu0 %v2064_v29  ;;  %469 = vmatprep.subr.bf16.mxu1 %v2066_v30  ;;  %v2754_v30 = vrot.slane %v112_v19, %v120_v22 }
  0x1f   :  { %357 = vmatpush1.bf16.msra.mxu0 %v2068_v31  ;;  %470 = vmatpush1.bf16.msra.mxu1 %v2069_v32  ;;  %v2756_v31 = vrot.slane %v112_v19, %v128_v23 }
  0x20   :  { %733 = vmatprep.subr.bf16.mxu0 %v2466_v33  ;;  %776 = vmatprep.subr.bf16.mxu1 %v2471_v34 }
  0x22   :  { %375 = vmatmul.mubr.bf16.vlgmr.msra.gmra.mxu0 %v2070_v35  ;;  %488 = vmatmul.mubr.bf16.vlgmr.msra.gmra.mxu1 %v2070_v35 }
  0x23   :  { %734 = vmatpush1.bf16.msra.mxu0 %v2479_v36  ;;  %384 = vmatprep.mubr.bf16.mxu0 %v3456_v1 }
  0x24   :  { %497 = vmatprep.mubr.bf16.mxu1 %v3456_v1  ;;  %777 = vmatpush1.bf16.msra.mxu1 %v2486_v37 }
  0x25   :  { %735 = vmatprep.subr.bf16.mxu0 %v2491_v38  ;;  %778 = vmatprep.subr.bf16.mxu1 %v2496_v39 }
  0x27   :  { %736 = vmatpush1.bf16.msra.mxu0 %v2501_v40 }
  0x28   :  { %779 = vmatpush1.bf16.msra.mxu1 %v2508_v41  ;;  %737 = vmatprep.subr.bf16.mxu0 %v2515_v42 }
  0x29   :  { %780 = vmatprep.subr.bf16.mxu1 %v2522_v43 }
  0x2a   :  { %385 = vmatmul.mubr.bf16.gmra.mxu0 %v2077_v44  ;;  %498 = vmatmul.mubr.bf16.gmra.mxu1 %v2077_v44 }
  0x2b   :  { %394 = vmatprep.mubr.bf16.mxu0 %v3456_v1  ;;  %507 = vmatprep.mubr.bf16.mxu1 %v3456_v1 }
  0x2c   :  { %738 = vmatpush1.bf16.msra.mxu0 %v2531_v45  ;;  %781 = vmatpush1.bf16.msra.mxu1 %v2538_v46 }
  0x2d   :  { %739 = vmatprep.subr.bf16.mxu0 %v2543_v47  ;;  %782 = vmatprep.subr.bf16.mxu1 %v2549_v48 }
  0x30   :  { %740 = vmatpush1.bf16.msra.mxu0 %v2558_v49  ;;  %783 = vmatpush1.bf16.msra.mxu1 %v2563_v50 }
  0x31   :  { %741 = vmatprep.subr.bf16.mxu0 %v2570_v51  ;;  %784 = vmatprep.subr.bf16.mxu1 %v2575_v52 }
  0x32   :  { %395 = vmatmul.mubr.bf16.gmra.mxu0 %v2084_v53  ;;  %508 = vmatmul.mubr.bf16.gmra.mxu1 %v2084_v53 }
  0x33   :  { %404 = vmatprep.mubr.bf16.mxu0 %v3456_v1  ;;  %517 = vmatprep.mubr.bf16.mxu1 %v3456_v1 }
  0x34   :  { %742 = vmatpush1.bf16.msra.mxu0 %v2583_v54  ;;  %785 = vmatpush1.bf16.msra.mxu1 %v2590_v55 }
  0x35   :  { %743 = vmatprep.subr.bf16.mxu0 %v2597_v56  ;;  %786 = vmatprep.subr.bf16.mxu1 %v2602_v57 }
  0x38   :  { %744 = vmatpush1.bf16.msra.mxu0 %v2611_v58  ;;  %787 = vmatpush1.bf16.msra.mxu1 %v2616_v59 }
  0x39   :  { %745 = vmatprep.subr.bf16.mxu0 %v2623_v60  ;;  %788 = vmatprep.subr.bf16.mxu1 %v2628_v61 }
  0x3a   :  { %405 = vmatmul.mubr.bf16.gmra.mxu0 %v2091_v62  ;;  %518 = vmatmul.mubr.bf16.gmra.mxu1 %v2091_v62 }
  0x3b   :  { %414 = vmatprep.mubr.bf16.mxu0 %v3456_v1  ;;  %527 = vmatprep.mubr.bf16.mxu1 %v3456_v1 }
  0x3c   :  { %746 = vmatpush1.bf16.msra.mxu0 %v2638_v63  ;;  %789 = vmatpush1.bf16.msra.mxu1 %v2643_v0 }
  0x3d   :  { %747 = vmatprep.subr.bf16.mxu0 %v2650_v2  ;;  %790 = vmatprep.subr.bf16.mxu1 %v2655_v3 }
  0x40   :  { %748 = vmatpush1.bf16.msra.mxu0 %v2664_v4  ;;  %791 = vmatpush1.bf16.msra.mxu1 %v2669_v5 }
  0x41   :  { %864 = vmatprep.subr.bf16.mxu0 %v2466_v33  ;;  %907 = vmatprep.subr.bf16.mxu1 %v2471_v34 }
  0x42   :  { %415 = vmatmul.mubr.bf16.gmra.mxu0 %v2098_v6  ;;  %528 = vmatmul.mubr.bf16.gmra.mxu1 %v2098_v6 }
  0x43   :  { %424 = vmatprep.mubr.bf16.mxu0 %v3456_v1  ;;  %537 = vmatprep.mubr.bf16.mxu1 %v3456_v1 }
  0x4a   :  { %425 = vmatmul.mubr.bf16.gmra.mxu0 %v2105_v7  ;;  %538 = vmatmul.mubr.bf16.gmra.mxu1 %v2105_v7 }
  0x4b   :  { %434 = vmatprep.mubr.bf16.mxu0 %v3456_v1  ;;  %547 = vmatprep.mubr.bf16.mxu1 %v3456_v1 }
  0x52   :  { %435 = vmatmul.mubr.bf16.gmra.mxu0 %v2112_v8  ;;  %548 = vmatmul.mubr.bf16.gmra.mxu1 %v2112_v8 }
  0x53   :  { %444 = vmatprep.mubr.bf16.mxu0 %v3456_v1  ;;  %557 = vmatprep.mubr.bf16.mxu1 %v3456_v1 }
  0x5a   :  { %445 = vmatmul.mubr.bf16.gmra.mxu0 %v2119_v9  ;;  %558 = vmatmul.mubr.bf16.gmra.mxu1 %v2119_v9 }
  0x5b   :  { %765 = vmatprep.mubr.bf16.mxu0 %v3456_v1  ;;  %808 = vmatprep.mubr.bf16.mxu1 %v3456_v1 }
  0x62   :  { %766 = vmatmul.mubr.bf16.vlgmr.msra.gmra.mxu0 %v2327_v10  ;;  %809 = vmatmul.mubr.bf16.vlgmr.msra.gmra.mxu1 %v2327_v10 }
  0x63   :  { %865 = vmatpush1.bf16.msra.mxu0 %v2479_v36  ;;  %908 = vmatpush1.bf16.msra.mxu1 %v2486_v37 }
  0x64   :  { %866 = vmatprep.subr.bf16.mxu0 %v2491_v38  ;;  %909 = vmatprep.subr.bf16.mxu1 %v2496_v39 }
  0x65   :  { %896 = vmatprep.mubr.bf16.mxu0 %v3456_v1  ;;  %939 = vmatprep.mubr.bf16.mxu1 %v3456_v1 }
  0x67   :  { %867 = vmatpush1.bf16.msra.mxu0 %v2501_v40  ;;  %910 = vmatpush1.bf16.msra.mxu1 %v2508_v41 }
  0x68   :  { %868 = vmatprep.subr.bf16.mxu0 %v2515_v42  ;;  %911 = vmatprep.subr.bf16.mxu1 %v2522_v43 }
  0x6b   :  { %869 = vmatpush1.bf16.msra.mxu0 %v2531_v45  ;;  %912 = vmatpush1.bf16.msra.mxu1 %v2538_v46 }
  0x6c   :  { %870 = vmatprep.subr.bf16.mxu0 %v2543_v47  ;;  %913 = vmatprep.subr.bf16.mxu1 %v2549_v48 }
  0x6f   :  { %871 = vmatpush1.bf16.msra.mxu0 %v2558_v49  ;;  %914 = vmatpush1.bf16.msra.mxu1 %v2563_v50 }
  0x70   :  { %872 = vmatprep.subr.bf16.mxu0 %v2570_v51  ;;  %915 = vmatprep.subr.bf16.mxu1 %v2575_v52 }
  0x73   :  { %873 = vmatpush1.bf16.msra.mxu0 %v2583_v54  ;;  %916 = vmatpush1.bf16.msra.mxu1 %v2590_v55 }
  0x74   :  { %874 = vmatprep.subr.bf16.mxu0 %v2597_v56  ;;  %917 = vmatprep.subr.bf16.mxu1 %v2602_v57 }
  0x77   :  { %875 = vmatpush1.bf16.msra.mxu0 %v2611_v58  ;;  %918 = vmatpush1.bf16.msra.mxu1 %v2616_v59 }
  0x78   :  { %876 = vmatprep.subr.bf16.mxu0 %v2623_v60  ;;  %919 = vmatprep.subr.bf16.mxu1 %v2628_v61 }
  0x7b   :  { %877 = vmatpush1.bf16.msra.mxu0 %v2638_v63  ;;  %920 = vmatpush1.bf16.msra.mxu1 %v2643_v0 }
  0x7c   :  { %878 = vmatprep.subr.bf16.mxu0 %v2650_v2  ;;  %921 = vmatprep.subr.bf16.mxu1 %v2655_v3 }
  0x7f   :  { %879 = vmatpush1.bf16.msra.mxu0 %v2664_v4  ;;  %922 = vmatpush1.bf16.msra.mxu1 %v2669_v5 }
  0x80   :  { %995 = vmatprep.subr.bf16.mxu0 %v2466_v33  ;;  %1038 = vmatprep.subr.bf16.mxu1 %v2471_v34 }
  0xe2   :  { %v2731_v13 = vpop.f32.mrf.mxu0  ;;  %v2733_v14 = vpop.f32.mrf.mxu1 }
  0xe4   :  { %v2735_v15 = vpop.f32.mrf.mxu0  ;;  %v2737_v16 = vpop.f32.mrf.mxu1 }
  0xe6   :  { %v2742_v20 = vpop.f32.mrf.mxu0  ;;  %v2744_v21 = vpop.f32.mrf.mxu1 }
  0xe8   :  { %v2746_v24 = vpop.f32.mrf.mxu0  ;;  %v2748_v25 = vpop.f32.mrf.mxu1 }
  0xea   :  { %v386_v28 = vpop.f32.mrf.mxu0  ;;  %v499_v29 = vpop.f32.mrf.mxu1 }
  0xeb   :  { %v2759_v32 = vadd.f32 %v386_v28, %v2750_v26  ;;  %v2762_v35 = vadd.f32 %v499_v29, %v2752_v27 }
  0xec   :  { %v388_v44 = vpop.f32.mrf.mxu0  ;;  %v501_v53 = vpop.f32.mrf.mxu1 }
  0xed   :  { %3458 = vst [vmem:[#allocation4_spill] sm:$0xff] %v2762_v35  ;;  %v2765_v62 = vadd.f32 %v388_v44, %v2754_v30  ;;  %v2768_v6 = vadd.f32 %v501_v53, %v2756_v31 }
  0xee   :  { %v390_v7 = vpop.f32.mrf.mxu0  ;;  %v503_v8 = vpop.f32.mrf.mxu1 }
  0xef   :  { %v2771_v9 = vadd.f32 %v390_v7, %v2750_v26  ;;  %v2774_v10 = vadd.f32 %v503_v8, %v2752_v27 }
  0xf0   :  { %v392_v11 = vpop.f32.mrf.mxu0  ;;  %v505_v12 = vpop.f32.mrf.mxu1 }
  0xf1   :  { %3459 = vst [vmem:[#allocation5_spill] sm:$0xff] %v2774_v10  ;;  %v2777_v17 = vadd.f32 %v392_v11, %v2754_v30  ;;  %v2780_v18 = vadd.f32 %v505_v12, %v2756_v31 }
  0xf2   :  { %v396_v19 = vpop.f32.mrf.mxu0  ;;  %v509_v22 = vpop.f32.mrf.mxu1 }
  0xf3   :  { %3460 = vst [vmem:[#allocation6_spill] sm:$0xff] %v2777_v17  ;;  %3461 = vst [vmem:[#allocation7_spill] sm:$0xff] %v2780_v18  ;;  %v2783_v23 = vadd.f32 %v396_v19, %v2750_v26  ;;  %v2786_v28 = vadd.f32 %v509_v22, %v2752_v27 }
  0xf4   :  { %v398_v29 = vpop.f32.mrf.mxu0  ;;  %v511_v44 = vpop.f32.mrf.mxu1 }
  0xf5   :  { %3462 = vst [vmem:[#allocation8_spill] sm:$0xff] %v2783_v23  ;;  %3463 = vst [vmem:[#allocation9_spill] sm:$0xff] %v2786_v28  ;;  %v2789_v53 = vadd.f32 %v398_v29, %v2754_v30  ;;  %v2792_v7 = vadd.f32 %v511_v44, %v2756_v31 }
  0xf6   :  { %v400_v8 = vpop.f32.mrf.mxu0  ;;  %v513_v11 = vpop.f32.mrf.mxu1 }
  0xf7   :  { %3464 = vst [vmem:[#allocation10_spill] sm:$0xff] %v2789_v53  ;;  %3465 = vst [vmem:[#allocation11_spill] sm:$0xff] %v2792_v7  ;;  %v2795_v12 = vadd.f32 %v400_v8, %v2750_v26  ;;  %v2798_v1 = vadd.f32 %v513_v11, %v2752_v27 }
  0xf8   :  { %v402_v19 = vpop.f32.mrf.mxu0  ;;  %v515_v23 = vpop.f32.mrf.mxu1 }
  0xf9   :  { %3466 = vst [vmem:[#allocation12_spill] sm:$0xff] %v2795_v12  ;;  %3467 = vst [vmem:[#allocation13_spill] sm:$0xff] %v2798_v1  ;;  %v2801_v22 = vadd.f32 %v402_v19, %v2754_v30  ;;  %v2804_v28 = vadd.f32 %v515_v23, %v2756_v31 }
  0xfa   :  { %v406_v29 = vpop.f32.mrf.mxu0  ;;  %v519_v53 = vpop.f32.mrf.mxu1 }
  0xfb   :  { %3468 = vst [vmem:[#allocation14_spill] sm:$0xff] %v2801_v22  ;;  %3469 = vst [vmem:[#allocation15_spill] sm:$0xff] %v2804_v28  ;;  %v2807_v44 = vadd.f32 %v406_v29, %v2750_v26  ;;  %v2810_v7 = vadd.f32 %v519_v53, %v2752_v27 }
  0xfc   :  { %v408_v8 = vpop.f32.mrf.mxu0  ;;  %v521_v12 = vpop.f32.mrf.mxu1 }
  0xfd   :  { %3470 = vst [vmem:[#allocation16_spill] sm:$0xff] %v2807_v44  ;;  %3471 = vst [vmem:[#allocation17_spill] sm:$0xff] %v2810_v7  ;;  %v2813_v11 = vadd.f32 %v408_v8, %v2754_v30  ;;  %v2816_v1 = vadd.f32 %v521_v12, %v2756_v31 }
  0xfe   :  { %v410_v19 = vpop.f32.mrf.mxu0  ;;  %v523_v22 = vpop.f32.mrf.mxu1 }
  0xff   :  { %3472 = vst [vmem:[#allocation18_spill] sm:$0xff] %v2813_v11  ;;  %3473 = vst [vmem:[#allocation19_spill] sm:$0xff] %v2816_v1  ;;  %v2819_v23 = vadd.f32 %v410_v19, %v2750_v26  ;;  %v2822_v28 = vadd.f32 %v523_v22, %v2752_v27 }
 0x100   :  { %v412_v29 = vpop.f32.mrf.mxu0  ;;  %v525_v44 = vpop.f32.mrf.mxu1 }
 0x101   :  { %3474 = vst [vmem:[#allocation20_spill] sm:$0xff] %v2819_v23  ;;  %3475 = vst [vmem:[#allocation21_spill] sm:$0xff] %v2822_v28  ;;  %v2825_v53 = vadd.f32 %v412_v29, %v2754_v30  ;;  %v2828_v7 = vadd.f32 %v525_v44, %v2756_v31 }
 0x102   :  { %v416_v8 = vpop.f32.mrf.mxu0  ;;  %v529_v11 = vpop.f32.mrf.mxu1 }
 0x103   :  { %3476 = vst [vmem:[#allocation22_spill] sm:$0xff] %v2825_v53  ;;  %3477 = vst [vmem:[#allocation23_spill] sm:$0xff] %v2828_v7  ;;  %v2831_v12 = vadd.f32 %v416_v8, %v2750_v26  ;;  %v2834_v1 = vadd.f32 %v529_v11, %v2752_v27 }
 0x104   :  { %v418_v19 = vpop.f32.mrf.mxu0  ;;  %v531_v23 = vpop.f32.mrf.mxu1 }
 0x105   :  { %3478 = vst [vmem:[#allocation24_spill] sm:$0xff] %v2831_v12  ;;  %3479 = vst [vmem:[#allocation25_spill] sm:$0xff] %v2834_v1  ;;  %v2837_v22 = vadd.f32 %v418_v19, %v2754_v30  ;;  %v2840_v28 = vadd.f32 %v531_v23, %v2756_v31 }
 0x106   :  { %v420_v29 = vpop.f32.mrf.mxu0  ;;  %v533_v53 = vpop.f32.mrf.mxu1 }
 0x107   :  { %3480 = vst [vmem:[#allocation26_spill] sm:$0xff] %v2837_v22  ;;  %3481 = vst [vmem:[#allocation27_spill] sm:$0xff] %v2840_v28  ;;  %v2843_v44 = vadd.f32 %v420_v29, %v2750_v26  ;;  %v2846_v7 = vadd.f32 %v533_v53, %v2752_v27 }
 0x108   :  { %v422_v8 = vpop.f32.mrf.mxu0  ;;  %v535_v12 = vpop.f32.mrf.mxu1 }
 0x109   :  { %3482 = vst [vmem:[#allocation28_spill] sm:$0xff] %v2843_v44  ;;  %3483 = vst [vmem:[#allocation29_spill] sm:$0xff] %v2846_v7  ;;  %v2849_v11 = vadd.f32 %v422_v8, %v2754_v30  ;;  %v2852_v1 = vadd.f32 %v535_v12, %v2756_v31 }
 0x10a   :  { %v426_v19 = vpop.f32.mrf.mxu0  ;;  %v539_v22 = vpop.f32.mrf.mxu1 }
 0x10b   :  { %3484 = vst [vmem:[#allocation30_spill] sm:$0xff] %v2849_v11  ;;  %3485 = vst [vmem:[#allocation31_spill] sm:$0xff] %v2852_v1  ;;  %v2855_v23 = vadd.f32 %v426_v19, %v2750_v26  ;;  %v2858_v28 = vadd.f32 %v539_v22, %v2752_v27 }
 0x10c   :  { %v428_v29 = vpop.f32.mrf.mxu0  ;;  %v541_v44 = vpop.f32.mrf.mxu1 }
 0x10d   :  { %3486 = vst [vmem:[#allocation32_spill] sm:$0xff] %v2855_v23  ;;  %3487 = vst [vmem:[#allocation33_spill] sm:$0xff] %v2858_v28  ;;  %v2861_v53 = vadd.f32 %v428_v29, %v2754_v30  ;;  %v2864_v7 = vadd.f32 %v541_v44, %v2756_v31 }
 0x10e   :  { %v430_v8 = vpop.f32.mrf.mxu0  ;;  %v543_v11 = vpop.f32.mrf.mxu1 }
 0x10f   :  { %3488 = vst [vmem:[#allocation34_spill] sm:$0xff] %v2861_v53  ;;  %3489 = vst [vmem:[#allocation35_spill] sm:$0xff] %v2864_v7  ;;  %v2867_v12 = vadd.f32 %v430_v8, %v2750_v26  ;;  %v2870_v1 = vadd.f32 %v543_v11, %v2752_v27 }
 0x110   :  { %v432_v19 = vpop.f32.mrf.mxu0  ;;  %v545_v23 = vpop.f32.mrf.mxu1 }
 0x111   :  { %3490 = vst [vmem:[#allocation36_spill] sm:$0xff] %v2867_v12  ;;  %3491 = vst [vmem:[#allocation37_spill] sm:$0xff] %v2870_v1  ;;  %v2873_v22 = vadd.f32 %v432_v19, %v2754_v30  ;;  %v2876_v28 = vadd.f32 %v545_v23, %v2756_v31 }
 0x112   :  { %v436_v29 = vpop.f32.mrf.mxu0  ;;  %v549_v53 = vpop.f32.mrf.mxu1 }
 0x113   :  { %3492 = vst [vmem:[#allocation38_spill] sm:$0xff] %v2873_v22  ;;  %3493 = vst [vmem:[#allocation39_spill] sm:$0xff] %v2876_v28  ;;  %v2879_v44 = vadd.f32 %v436_v29, %v2750_v26  ;;  %v2882_v7 = vadd.f32 %v549_v53, %v2752_v27 }
 0x114   :  { %v438_v8 = vpop.f32.mrf.mxu0  ;;  %v551_v12 = vpop.f32.mrf.mxu1 }
 0x115   :  { %3494 = vst [vmem:[#allocation40_spill] sm:$0xff] %v2879_v44  ;;  %3495 = vst [vmem:[#allocation41_spill] sm:$0xff] %v2882_v7  ;;  %v2885_v11 = vadd.f32 %v438_v8, %v2754_v30  ;;  %v2888_v1 = vadd.f32 %v551_v12, %v2756_v31 }
 0x116   :  { %v440_v19 = vpop.f32.mrf.mxu0  ;;  %v553_v22 = vpop.f32.mrf.mxu1 }
 0x117   :  { %3496 = vst [vmem:[#allocation42_spill] sm:$0xff] %v2885_v11  ;;  %3497 = vst [vmem:[#allocation43_spill] sm:$0xff] %v2888_v1  ;;  %v2891_v23 = vadd.f32 %v440_v19, %v2750_v26  ;;  %v2894_v28 = vadd.f32 %v553_v22, %v2752_v27 }
 0x118   :  { %v442_v29 = vpop.f32.mrf.mxu0  ;;  %v555_v44 = vpop.f32.mrf.mxu1 }
 0x119   :  { %3498 = vst [vmem:[#allocation44_spill] sm:$0xff] %v2891_v23  ;;  %3499 = vst [vmem:[#allocation45_spill] sm:$0xff] %v2894_v28  ;;  %v2897_v53 = vadd.f32 %v442_v29, %v2754_v30  ;;  %v2900_v7 = vadd.f32 %v555_v44, %v2756_v31 }
 0x11a   :  { %v446_v8 = vpop.f32.mrf.mxu0  ;;  %v559_v11 = vpop.f32.mrf.mxu1 }
 0x11b   :  { %3500 = vst [vmem:[#allocation46_spill] sm:$0xff] %v2897_v53  ;;  %3501 = vst [vmem:[#allocation47_spill] sm:$0xff] %v2900_v7  ;;  %v2903_v12 = vadd.f32 %v446_v8, %v2750_v26  ;;  %v2906_v1 = vadd.f32 %v559_v11, %v2752_v27  ;;  %v377_v11 = vadd.f32 %v2731_v13, %v2750_v26 }
 0x11c   :  { %v448_v19 = vpop.f32.mrf.mxu0  ;;  %v561_v23 = vpop.f32.mrf.mxu1  ;;  %v381_v13 = vadd.f32 %v2742_v20, %v2750_v26  ;;  %v496_v20 = vadd.f32 %v2748_v25, %v2756_v31 }
 0x11d   :  { %3502 = vst [vmem:[#allocation48_spill] sm:$0xff] %v2903_v12  ;;  %3503 = vst [vmem:[#allocation49_spill] sm:$0xff] %v2906_v1  ;;  %v2909_v22 = vadd.f32 %v448_v19, %v2754_v30  ;;  %v2912_v28 = vadd.f32 %v561_v23, %v2756_v31 }
 0x11e   :  { %v450_v29 = vpop.f32.mrf.mxu0  ;;  %v563_v53 = vpop.f32.mrf.mxu1 }
 0x11f   :  { %3504 = vst [vmem:[#allocation50_spill] sm:$0xff] %v2909_v22  ;;  %3505 = vst [vmem:[#allocation51_spill] sm:$0xff] %v2912_v28  ;;  %v2915_v44 = vadd.f32 %v450_v29, %v2750_v26  ;;  %v2918_v7 = vadd.f32 %v563_v53, %v2752_v27  ;;  %v379_v29 = vadd.f32 %v2735_v15, %v2754_v30 }
 0x120   :  { %v452_v8 = vpop.f32.mrf.mxu0  ;;  %v565_v12 = vpop.f32.mrf.mxu1  ;;  %v492_v53 = vadd.f32 %v2737_v16, %v2756_v31 }
 0x121   :  { %3506 = vst [vmem:[#allocation52_spill] sm:$0xff] %v2915_v44  ;;  %3507 = vst [vmem:[#allocation53_spill] sm:$0xff] %v2918_v7  ;;  %v2923_v1 = vadd.f32 %v452_v8, %v2754_v30  ;;  %v2926_v19 = vadd.f32 %v565_v12, %v2756_v31 }
 0x122   :  { %v767_v23 = vpop.f32.mrf.mxu0  ;;  %v810_v28 = vpop.f32.mrf.mxu1 }
 0x123   :  { %3508 = vst [vmem:[#allocation54_spill] sm:$0xff] %v2923_v1  ;;  %3509 = vst [vmem:[#allocation55_spill] sm:$0xff] %v2926_v19  ;;  %v819_v44 = vadd.f32 %v767_v23, %v377_v11  ;;  %v383_v19 = vadd.f32 %v2746_v24, %v2754_v30  ;;  %v494_v24 = vadd.f32 %v2744_v21, %v2752_v27 }
 0x124   :  { %v769_v7 = vpop.f32.mrf.mxu0  ;;  %v812_v22 = vpop.f32.mrf.mxu1 }
 0x125   :  { %v827_v10 = vmul.f32 0.5, %v819_v44  ;;  %v820_v8 = vadd.f32 %v769_v7, %v379_v29  ;;  %v822_v1 = vadd.f32 %v812_v22, %v492_v53  ;;  %v490_v22 = vadd.f32 %v2733_v14, %v2752_v27 }
 0x126   :  { %v771_v35 = vpop.f32.mrf.mxu0  ;;  %v814_v12 = vpop.f32.mrf.mxu1 }
 0x127   :  { %2134 = vtanh.f32 %v827_v10  ;;  %v828_v18 = vmul.f32 0.5, %v820_v8  ;;  %v823_v15 = vadd.f32 %v771_v35, %v381_v13  ;;  %v821_v30 = vadd.f32 %v810_v28, %v490_v22 }
 0x128   :  { %v773_v11 = vpop.f32.mrf.mxu0  ;;  %v816_v17 = vpop.f32.mrf.mxu1  ;;  %v825_v35 = vadd.f32 %v814_v12, %v494_v24 }
 0x129   :  { %2136 = vtanh.f32 %v828_v18  ;;  %v830_v23 = vmul.f32 0.5, %v823_v15  ;;  %v824_v16 = vadd.f32 %v773_v11, %v383_v19  ;;  %v826_v7 = vadd.f32 %v816_v17, %v496_v20 }
 0x12a   :  { %2138 = vtanh.f32 %v822_v1  ;;  %v829_v44 = vmul.f32 0.5, %v821_v30  ;;  %v832_v31 = vmul.f32 0.5, %v825_v35 }
 0x12b   :  { %2140 = vtanh.f32 %v830_v23  ;;  %v831_v26 = vmul.f32 0.5, %v824_v16 }
 0x12d   :  { %2142 = vtanh.f32 %v831_v26 }
 0x12e   :  { %2144 = vtanh.f32 %v826_v7 }
 0x12f   :  { %2146 = vtanh.f32 %v829_v44 }
 0x130   :  { %2148 = vtanh.f32 %v832_v31 }
 0x134   :  { %v2135_v10 = vpop.eup %2134 }
 0x135   :  { %v839_v18 = vmul.f32 0.5, %v2135_v10 }
 0x136   :  { %v2137_v1 = vpop.eup %2136 }
 0x137   :  { %v2139_v19 = vpop.eup %2138  ;;  %v845_v29 = vadd.f32 0.5, %v839_v18  ;;  %v840_v25 = vmul.f32 0.5, %v2137_v1 }
 0x138   :  { %v2141_v53 = vpop.eup %2140 }
 0x139   :  { %v846_v13 = vadd.f32 0.5, %v840_v25  ;;  %v855_v17 = vmul.f32 %v2139_v19, %v845_v29  ;;  %v842_v8 = vmul.f32 0.5, %v2141_v53  ;;  %v3510_v29 = vmov 0  }
 0x13a   :  { %v2143_v15 = vpop.eup %2142 }
 0x13b   :  { %v853_v14 = vmul.f32 0.0, %v846_v13  ;;  %v848_v11 = vadd.f32 0.5, %v842_v8  ;;  %v843_v21 = vmul.f32 0.5, %v2143_v15  ;;  %v2145_v12 = vpop.eup %2144 }
 0x13c   :  { %v2147_v26 = vpop.eup %2146 }
 0x13d   :  { %v2942_v27 = vadd.f32 %v855_v17, %v853_v14  ;;  %v849_v28 = vadd.f32 0.5, %v843_v21  ;;  %v856_v16 = vmul.f32 %v2145_v12, %v848_v11  ;;  %v2149_v7 = vpop.eup %2148  ;;  %v841_v22 = vmul.f32 0.5, %v2147_v26 }
 0x13e   :  { %v844_v24 = vmul.f32 0.5, %v2149_v7  ;;  %v3512_v7 = vld [vmem:[#allocation7_spill] sm:$0xff] }
 0x13f   :  { %v854_v23 = vmul.f32 0.0, %v849_v28  ;;  %2150 = vtanh.f32 %v2942_v27  ;;  %v847_v35 = vadd.f32 0.5, %v841_v22 }
 0x140   :  { %v850_v10 = vadd.f32 0.5, %v844_v24  ;;  %v3514_v24 = vld [vmem:[#allocation5_spill] sm:$0xff] }
 0x141   :  { %v2945_v20 = vadd.f32 %v856_v16, %v854_v23  ;;  %v3511_v16 = vld [vmem:[#allocation6_spill] sm:$0xff] }
 0x143   :  { %2152 = vtanh.f32 %v2945_v20 }
 0x14c   :  { %v2151_v30 = vpop.eup %2150 }
 0x14d   :  { %v861_v1 = vmul.f32 %v2151_v30, %v847_v35 }
 0x150   :  { %v2153_v18 = vpop.eup %2152 }
 0x151   :  { %v862_v44 = vmul.f32 %v2153_v18, %v850_v10 }
 0x153   :  { %v863_v19 = vpack.c.bf16 %v862_v44, %v861_v1 }
 0x155   :  { %897 = vmatmul.mubr.bf16.vlgmr.msra.gmra.mxu0 %v863_v19  ;;  %940 = vmatmul.mubr.bf16.vlgmr.msra.gmra.mxu1 %v863_v19 }
 0x156   :  { %996 = vmatpush1.bf16.msra.mxu0 %v2479_v36  ;;  %1039 = vmatpush1.bf16.msra.mxu1 %v2486_v37 }
 0x157   :  { %997 = vmatprep.subr.bf16.mxu0 %v2491_v38  ;;  %1040 = vmatprep.subr.bf16.mxu1 %v2496_v39 }
 0x158   :  { %1027 = vmatprep.mubr.bf16.mxu0 %v3510_v29  ;;  %1070 = vmatprep.mubr.bf16.mxu1 %v3510_v29 }
 0x15a   :  { %998 = vmatpush1.bf16.msra.mxu0 %v2501_v40  ;;  %1041 = vmatpush1.bf16.msra.mxu1 %v2508_v41 }
 0x15b   :  { %999 = vmatprep.subr.bf16.mxu0 %v2515_v42  ;;  %1042 = vmatprep.subr.bf16.mxu1 %v2522_v43 }
 0x15e   :  { %1000 = vmatpush1.bf16.msra.mxu0 %v2531_v45  ;;  %1043 = vmatpush1.bf16.msra.mxu1 %v2538_v46 }
 0x15f   :  { %1001 = vmatprep.subr.bf16.mxu0 %v2543_v47  ;;  %1044 = vmatprep.subr.bf16.mxu1 %v2549_v48 }
 0x162   :  { %1002 = vmatpush1.bf16.msra.mxu0 %v2558_v49  ;;  %1045 = vmatpush1.bf16.msra.mxu1 %v2563_v50 }
 0x163   :  { %1003 = vmatprep.subr.bf16.mxu0 %v2570_v51  ;;  %1046 = vmatprep.subr.bf16.mxu1 %v2575_v52 }
 0x166   :  { %1004 = vmatpush1.bf16.msra.mxu0 %v2583_v54  ;;  %1047 = vmatpush1.bf16.msra.mxu1 %v2590_v55 }
 0x167   :  { %1005 = vmatprep.subr.bf16.mxu0 %v2597_v56  ;;  %1048 = vmatprep.subr.bf16.mxu1 %v2602_v57 }
 0x16a   :  { %1006 = vmatpush1.bf16.msra.mxu0 %v2611_v58  ;;  %1049 = vmatpush1.bf16.msra.mxu1 %v2616_v59 }
 0x16b   :  { %1007 = vmatprep.subr.bf16.mxu0 %v2623_v60  ;;  %1050 = vmatprep.subr.bf16.mxu1 %v2628_v61 }
 0x16e   :  { %1008 = vmatpush1.bf16.msra.mxu0 %v2638_v63  ;;  %1051 = vmatpush1.bf16.msra.mxu1 %v2643_v0 }
 0x16f   :  { %1009 = vmatprep.subr.bf16.mxu0 %v2650_v2  ;;  %1052 = vmatprep.subr.bf16.mxu1 %v2655_v3 }
 0x172   :  { %1010 = vmatpush1.bf16.msra.mxu0 %v2664_v4  ;;  %1053 = vmatpush1.bf16.msra.mxu1 %v2669_v5 }
 0x173   :  { %1126 = vmatprep.subr.bf16.mxu0 %v2466_v33  ;;  %1169 = vmatprep.subr.bf16.mxu1 %v2471_v34 }
 0x215   :  { %v898_v25 = vpop.f32.mrf.mxu0  ;;  %v941_v31 = vpop.f32.mrf.mxu1 }
 0x216   :  { %v950_v53 = vadd.f32 %v898_v25, %v2759_v32 }
 0x217   :  { %v900_v13 = vpop.f32.mrf.mxu0  ;;  %v943_v17 = vpop.f32.mrf.mxu1 }
 0x218   :  { %v958_v8 = vmul.f32 0.5, %v950_v53  ;;  %v951_v15 = vadd.f32 %v900_v13, %v2765_v62  ;;  %v953_v14 = vadd.f32 %v943_v17, %v2768_v6  ;;  %v3513_v62 = vld [vmem:[#allocation4_spill] sm:$0xff] }
 0x219   :  { %v902_v11 = vpop.f32.mrf.mxu0  ;;  %v945_v21 = vpop.f32.mrf.mxu1  ;;  %v952_v6 = vadd.f32 %v941_v31, %v3513_v62 }
 0x21a   :  { %2154 = vtanh.f32 %v958_v8  ;;  %v959_v28 = vmul.f32 0.5, %v951_v15  ;;  %v954_v12 = vadd.f32 %v902_v11, %v2771_v9  ;;  %v956_v30 = vadd.f32 %v945_v21, %v3514_v24 }
 0x21b   :  { %v904_v33 = vpop.f32.mrf.mxu0  ;;  %v947_v23 = vpop.f32.mrf.mxu1  ;;  %v960_v18 = vmul.f32 0.5, %v952_v6 }
 0x21c   :  { %2156 = vtanh.f32 %v959_v28  ;;  %v961_v34 = vmul.f32 0.5, %v954_v12  ;;  %v955_v26 = vadd.f32 %v904_v33, %v3511_v16  ;;  %v957_v22 = vadd.f32 %v947_v23, %v3512_v7 }
 0x21d   :  { %2158 = vtanh.f32 %v953_v14  ;;  %v963_v25 = vmul.f32 0.5, %v956_v30 }
 0x21e   :  { %2160 = vtanh.f32 %v961_v34  ;;  %v962_v32 = vmul.f32 0.5, %v955_v26 }
 0x220   :  { %2162 = vtanh.f32 %v962_v32 }
 0x221   :  { %2164 = vtanh.f32 %v957_v22 }
 0x222   :  { %2166 = vtanh.f32 %v960_v18 }
 0x223   :  { %2168 = vtanh.f32 %v963_v25 }
 0x227   :  { %v2155_v35 = vpop.eup %2154 }
 0x228   :  { %v970_v10 = vmul.f32 0.5, %v2155_v35 }
 0x229   :  { %v2157_v9 = vpop.eup %2156 }
 0x22a   :  { %v2159_v1 = vpop.eup %2158  ;;  %v976_v44 = vadd.f32 0.5, %v970_v10  ;;  %v971_v19 = vmul.f32 0.5, %v2157_v9  ;;  %v3519_v10 = vld [vmem:[#allocation14_spill] sm:$0xff] }
 0x22b   :  { %v2161_v53 = vpop.eup %2160 }
 0x22c   :  { %v977_v13 = vadd.f32 0.5, %v971_v19  ;;  %v986_v17 = vmul.f32 %v2159_v1, %v976_v44  ;;  %v973_v8 = vmul.f32 0.5, %v2161_v53  ;;  %v3520_v1 = vld [vmem:[#allocation15_spill] sm:$0xff]  ;;  %v3521_v19 = vld [vmem:[#allocation9_spill] sm:$0xff] }
 0x22d   :  { %v2163_v15 = vpop.eup %2162  ;;  %v3522_v53 = vld [vmem:[#allocation13_spill] sm:$0xff] }
 0x22e   :  { %v984_v14 = vmul.f32 %v977_v13, %v2942_v27  ;;  %v979_v11 = vadd.f32 0.5, %v973_v8  ;;  %v974_v31 = vmul.f32 0.5, %v2163_v15  ;;  %v2165_v21 = vpop.eup %2164 }
 0x22f   :  { %v2167_v16 = vpop.eup %2166 }
 0x230   :  { %v2991_v28 = vadd.f32 %v986_v17, %v984_v14  ;;  %v980_v12 = vadd.f32 0.5, %v974_v31  ;;  %v987_v33 = vmul.f32 %v2165_v21, %v979_v11  ;;  %v2169_v26 = vpop.eup %2168  ;;  %v972_v32 = vmul.f32 0.5, %v2167_v16 }
 0x231   :  { %v975_v27 = vmul.f32 0.5, %v2169_v26 }
 0x232   :  { %v985_v23 = vmul.f32 %v980_v12, %v2945_v20  ;;  %2170 = vtanh.f32 %v2991_v28  ;;  %v978_v22 = vadd.f32 0.5, %v972_v32 }
 0x233   :  { %v981_v62 = vadd.f32 0.5, %v975_v27 }
 0x234   :  { %v2995_v34 = vadd.f32 %v987_v33, %v985_v23 }
 0x236   :  { %2172 = vtanh.f32 %v2995_v34 }
 0x23f   :  { %v2171_v7 = vpop.eup %2170 }
 0x240   :  { %v992_v24 = vmul.f32 %v2171_v7, %v978_v22 }
 0x243   :  { %v2173_v6 = vpop.eup %2172 }
 0x244   :  { %v993_v30 = vmul.f32 %v2173_v6, %v981_v62 }
 0x246   :  { %v994_v35 = vpack.c.bf16 %v993_v30, %v992_v24 }
 0x248   :  { %1028 = vmatmul.mubr.bf16.vlgmr.msra.gmra.mxu0 %v994_v35  ;;  %1071 = vmatmul.mubr.bf16.vlgmr.msra.gmra.mxu1 %v994_v35 }
 0x249   :  { %1127 = vmatpush1.bf16.msra.mxu0 %v2479_v36  ;;  %1170 = vmatpush1.bf16.msra.mxu1 %v2486_v37  ;;  %v3033_v36 = vld [vmem:[%s3451_s2 + $0xe4] ss:$16 sps:$4 sm:$0xff]   ;;  %v3039_v37 = vld [vmem:[%s3451_s2 + $0xec] ss:$16 sps:$4 sm:$0xff]  }
 0x24a   :  { %1128 = vmatprep.subr.bf16.mxu0 %v2491_v38  ;;  %1171 = vmatprep.subr.bf16.mxu1 %v2496_v39 }
 0x24b   :  { %1158 = vmatprep.mubr.bf16.mxu0 %v3510_v29  ;;  %1201 = vmatprep.mubr.bf16.mxu1 %v3510_v29 }
 0x24d   :  { %1129 = vmatpush1.bf16.msra.mxu0 %v2501_v40  ;;  %1172 = vmatpush1.bf16.msra.mxu1 %v2508_v41  ;;  %v3515_v40 = vld [vmem:[#allocation8_spill] sm:$0xff] }
 0x24e   :  { %1130 = vmatprep.subr.bf16.mxu0 %v2515_v42  ;;  %1173 = vmatprep.subr.bf16.mxu1 %v2522_v43 }
 0x251   :  { %1131 = vmatpush1.bf16.msra.mxu0 %v2531_v45  ;;  %1174 = vmatpush1.bf16.msra.mxu1 %v2538_v46  ;;  %v3516_v46 = vld [vmem:[#allocation10_spill] sm:$0xff] }
 0x252   :  { %1132 = vmatprep.subr.bf16.mxu0 %v2543_v47  ;;  %1175 = vmatprep.subr.bf16.mxu1 %v2549_v48  ;;  %v3517_v48 = vld [vmem:[#allocation11_spill] sm:$0xff] }
 0x255   :  { %1133 = vmatpush1.bf16.msra.mxu0 %v2558_v49  ;;  %1176 = vmatpush1.bf16.msra.mxu1 %v2563_v50 }
 0x256   :  { %1134 = vmatprep.subr.bf16.mxu0 %v2570_v51  ;;  %1177 = vmatprep.subr.bf16.mxu1 %v2575_v52 }
 0x259   :  { %1135 = vmatpush1.bf16.msra.mxu0 %v2583_v54  ;;  %1178 = vmatpush1.bf16.msra.mxu1 %v2590_v55  ;;  %v3518_v54 = vld [vmem:[#allocation12_spill] sm:$0xff] }
 0x25a   :  { %1136 = vmatprep.subr.bf16.mxu0 %v2597_v56  ;;  %1179 = vmatprep.subr.bf16.mxu1 %v2602_v57 }
 0x25d   :  { %1137 = vmatpush1.bf16.msra.mxu0 %v2611_v58  ;;  %1180 = vmatpush1.bf16.msra.mxu1 %v2616_v59 }
 0x25e   :  { %1138 = vmatprep.subr.bf16.mxu0 %v2623_v60  ;;  %1181 = vmatprep.subr.bf16.mxu1 %v2628_v61 }
 0x261   :  { %1139 = vmatpush1.bf16.msra.mxu0 %v2638_v63  ;;  %1182 = vmatpush1.bf16.msra.mxu1 %v2643_v0 }
 0x262   :  { %1140 = vmatprep.subr.bf16.mxu0 %v2650_v2  ;;  %1183 = vmatprep.subr.bf16.mxu1 %v2655_v3 }
 0x265   :  { %1141 = vmatpush1.bf16.msra.mxu0 %v2664_v4  ;;  %1184 = vmatpush1.bf16.msra.mxu1 %v2669_v5 }
 0x266   :  { %1257 = vmatprep.subr.bf16.mxu0 %v3033_v36  ;;  %1300 = vmatprep.subr.bf16.mxu1 %v3039_v37 }
 0x308   :  { %v1029_v38 = vpop.f32.mrf.mxu0  ;;  %v1072_v39 = vpop.f32.mrf.mxu1 }
 0x309   :  { %v1081_v41 = vadd.f32 %v1029_v38, %v3515_v40  ;;  %v1083_v25 = vadd.f32 %v1072_v39, %v3521_v19  ;;  %v3147_v19 = vld [vmem:[%s3451_s2 + $0x64] ss:$16 sps:$4 sm:$0xff]  }
 0x30a   :  { %v1031_v42 = vpop.f32.mrf.mxu0  ;;  %v1074_v43 = vpop.f32.mrf.mxu1 }
 0x30b   :  { %v1089_v45 = vmul.f32 0.5, %v1081_v41  ;;  %v1082_v47 = vadd.f32 %v1031_v42, %v3516_v46  ;;  %v1084_v49 = vadd.f32 %v1074_v43, %v3517_v48  ;;  %v1091_v14 = vmul.f32 0.5, %v1083_v25  ;;  %v3153_v25 = vld [vmem:[%s3451_s2 + $0x6c] ss:$16 sps:$4 sm:$0xff]  }
 0x30c   :  { %v1033_v50 = vpop.f32.mrf.mxu0  ;;  %v1076_v51 = vpop.f32.mrf.mxu1 }
 0x30d   :  { %2174 = vtanh.f32 %v1089_v45  ;;  %v1090_v52 = vmul.f32 0.5, %v1082_v47  ;;  %v1085_v55 = vadd.f32 %v1033_v50, %v3518_v54  ;;  %v1087_v13 = vadd.f32 %v1076_v51, %v3522_v53  ;;  %v3067_v50 = vld [vmem:[%s3451_s2 + $0xe8] ss:$16 sps:$4 sm:$0xff]   ;;  %v3073_v51 = vld [vmem:[%s3451_s2 + $0xc4] ss:$16 sps:$4 sm:$0xff]  }
 0x30e   :  { %v1035_v56 = vpop.f32.mrf.mxu0  ;;  %v1078_v57 = vpop.f32.mrf.mxu1  ;;  %v3087_v54 = vld [vmem:[%s3451_s2 + $0xc0] ss:$16 sps:$4 sm:$0xff]  }
 0x30f   :  { %2176 = vtanh.f32 %v1090_v52  ;;  %v1092_v20 = vmul.f32 0.5, %v1085_v55  ;;  %v1086_v9 = vadd.f32 %v1035_v56, %v3519_v10  ;;  %v1088_v44 = vadd.f32 %v1078_v57, %v3520_v1  ;;  %v3079_v52 = vld [vmem:[%s3451_s2 + $0xcc] ss:$16 sps:$4 sm:$0xff]   ;;  %v3093_v55 = vld [vmem:[%s3451_s2 + $0xc8] ss:$16 sps:$4 sm:$0xff]  }
 0x310   :  { %2178 = vtanh.f32 %v1084_v49  ;;  %v1094_v12 = vmul.f32 0.5, %v1087_v13  ;;  %v3099_v56 = vld [vmem:[%s3451_s2 + $0xa4] ss:$16 sps:$4 sm:$0xff]   ;;  %v3105_v57 = vld [vmem:[%s3451_s2 + $0xac] ss:$16 sps:$4 sm:$0xff]  }
 0x311   :  { %2180 = vtanh.f32 %v1092_v20  ;;  %v1093_v18 = vmul.f32 0.5, %v1086_v9  ;;  %v3111_v20 = vld [vmem:[%s3451_s2 + $0xa0] ss:$16 sps:$4 sm:$0xff]   ;;  %v3117_v10 = vld [vmem:[%s3451_s2 + $0xa8] ss:$16 sps:$4 sm:$0xff]  }
 0x312   :  { %v3123_v9 = vld [vmem:[%s3451_s2 + $0x84] ss:$16 sps:$4 sm:$0xff]   ;;  %v3135_v1 = vld [vmem:[%s3451_s2 + $0x80] ss:$16 sps:$4 sm:$0xff]   ;;  %v3165_v13 = vld [vmem:[%s3451_s2 + $0x68] ss:$16 sps:$4 sm:$0xff]  }
 0x313   :  { %2182 = vtanh.f32 %v1093_v18  ;;  %v3129_v18 = vld [vmem:[%s3451_s2 + $0x8c] ss:$16 sps:$4 sm:$0xff]   ;;  %v3159_v53 = vld [vmem:[%s3451_s2 + $0x60] ss:$16 sps:$4 sm:$0xff]  }
 0x314   :  { %2184 = vtanh.f32 %v1088_v44  ;;  %v3141_v44 = vld [vmem:[%s3451_s2 + $0x88] ss:$16 sps:$4 sm:$0xff]  }
 0x315   :  { %2186 = vtanh.f32 %v1091_v14 }
 0x316   :  { %2188 = vtanh.f32 %v1094_v12 }
 0x31a   :  { %v2175_v17 = vpop.eup %2174 }
 0x31b   :  { %v1101_v8 = vmul.f32 0.5, %v2175_v17  ;;  %v3171_v17 = vld [vmem:[%s3451_s2 + $0x44] ss:$16 sps:$4 sm:$0xff]  }
 0x31c   :  { %v2177_v15 = vpop.eup %2176 }
 0x31d   :  { %v2179_v11 = vpop.eup %2178  ;;  %v1107_v31 = vadd.f32 0.5, %v1101_v8  ;;  %v1102_v21 = vmul.f32 0.5, %v2177_v15  ;;  %v3177_v8 = vld [vmem:[%s3451_s2 + $0x4c] ss:$16 sps:$4 sm:$0xff]  }
 0x31e   :  { %v2181_v33 = vpop.eup %2180 }
 0x31f   :  { %v1108_v23 = vadd.f32 0.5, %v1102_v21  ;;  %v1117_v16 = vmul.f32 %v2179_v11, %v1107_v31  ;;  %v1104_v26 = vmul.f32 0.5, %v2181_v33 }
 0x320   :  { %v2183_v32 = vpop.eup %2182 }
 0x321   :  { %v1115_v27 = vmul.f32 %v1108_v23, %v2991_v28  ;;  %v1110_v7 = vadd.f32 0.5, %v1104_v26  ;;  %v1105_v22 = vmul.f32 0.5, %v2183_v32  ;;  %v2185_v62 = vpop.eup %2184  ;;  %v3527_v26 = vld [vmem:[#allocation22_spill] sm:$0xff] }
 0x322   :  { %v2187_v39 = vpop.eup %2186 }
 0x323   :  { %v3051_v6 = vadd.f32 %v1117_v16, %v1115_v27  ;;  %v1111_v24 = vadd.f32 0.5, %v1105_v22  ;;  %v1118_v30 = vmul.f32 %v2185_v62, %v1110_v7  ;;  %v2189_v40 = vpop.eup %2188  ;;  %v1103_v41 = vmul.f32 0.5, %v2187_v39  ;;  %v3528_v7 = vld [vmem:[#allocation23_spill] sm:$0xff]  ;;  %v3529_v62 = vld [vmem:[#allocation17_spill] sm:$0xff] }
 0x324   :  { %v1106_v28 = vmul.f32 0.5, %v2189_v40 }
 0x325   :  { %v1116_v35 = vmul.f32 %v1111_v24, %v2995_v34  ;;  %2190 = vtanh.f32 %v3051_v6  ;;  %v1109_v43 = vadd.f32 0.5, %v1103_v41  ;;  %v3061_v34 = vld [vmem:[%s3451_s2 + $0xe0] ss:$16 sps:$4 sm:$0xff]  }
 0x326   :  { %v1112_v45 = vadd.f32 0.5, %v1106_v28 }
 0x327   :  { %v3055_v38 = vadd.f32 %v1118_v30, %v1116_v35  ;;  %v3530_v30 = vld [vmem:[#allocation21_spill] sm:$0xff] }
 0x329   :  { %2192 = vtanh.f32 %v3055_v38 }
 0x332   :  { %v2191_v42 = vpop.eup %2190 }
 0x333   :  { %v1123_v47 = vmul.f32 %v2191_v42, %v1109_v43 }
 0x336   :  { %v2193_v46 = vpop.eup %2192 }
 0x337   :  { %v1124_v48 = vmul.f32 %v2193_v46, %v1112_v45 }
 0x339   :  { %v1125_v49 = vpack.c.bf16 %v1124_v48, %v1123_v47 }
 0x33b   :  { %1159 = vmatmul.mubr.bf16.vlgmr.msra.gmra.mxu0 %v1125_v49  ;;  %1202 = vmatmul.mubr.bf16.vlgmr.msra.gmra.mxu1 %v1125_v49 }
 0x33c   :  { %1258 = vmatpush1.bf16.msra.mxu0 %v3061_v34  ;;  %1301 = vmatpush1.bf16.msra.mxu1 %v3067_v50 }
 0x33d   :  { %1259 = vmatprep.subr.bf16.mxu0 %v3073_v51  ;;  %1302 = vmatprep.subr.bf16.mxu1 %v3079_v52 }
 0x33e   :  { %1289 = vmatprep.mubr.bf16.mxu0 %v3510_v29  ;;  %1332 = vmatprep.mubr.bf16.mxu1 %v3510_v29 }
 0x340   :  { %1260 = vmatpush1.bf16.msra.mxu0 %v3087_v54  ;;  %1303 = vmatpush1.bf16.msra.mxu1 %v3093_v55 }
 0x341   :  { %1261 = vmatprep.subr.bf16.mxu0 %v3099_v56  ;;  %1304 = vmatprep.subr.bf16.mxu1 %v3105_v57 }
 0x344   :  { %1262 = vmatpush1.bf16.msra.mxu0 %v3111_v20  ;;  %1305 = vmatpush1.bf16.msra.mxu1 %v3117_v10 }
 0x345   :  { %1263 = vmatprep.subr.bf16.mxu0 %v3123_v9  ;;  %1306 = vmatprep.subr.bf16.mxu1 %v3129_v18 }
 0x348   :  { %1264 = vmatpush1.bf16.msra.mxu0 %v3135_v1  ;;  %1307 = vmatpush1.bf16.msra.mxu1 %v3141_v44 }
 0x349   :  { %1265 = vmatprep.subr.bf16.mxu0 %v3147_v19  ;;  %1308 = vmatprep.subr.bf16.mxu1 %v3153_v25 }
 0x34c   :  { %1266 = vmatpush1.bf16.msra.mxu0 %v3159_v53  ;;  %1309 = vmatpush1.bf16.msra.mxu1 %v3165_v13 }
 0x34d   :  { %1267 = vmatprep.subr.bf16.mxu0 %v3171_v17  ;;  %1310 = vmatprep.subr.bf16.mxu1 %v3177_v8 }
 0x350   :  { %1268 = vmatpush1.bf16.msra.mxu0 %v2611_v58  ;;  %1311 = vmatpush1.bf16.msra.mxu1 %v2616_v59 }
 0x351   :  { %1269 = vmatprep.subr.bf16.mxu0 %v2623_v60  ;;  %1312 = vmatprep.subr.bf16.mxu1 %v2628_v61  ;;  %v3523_v60 = vld [vmem:[#allocation16_spill] sm:$0xff] }
 0x354   :  { %1270 = vmatpush1.bf16.msra.mxu0 %v2638_v63  ;;  %1313 = vmatpush1.bf16.msra.mxu1 %v2643_v0  ;;  %v3524_v0 = vld [vmem:[#allocation18_spill] sm:$0xff] }
 0x355   :  { %1271 = vmatprep.subr.bf16.mxu0 %v2650_v2  ;;  %1314 = vmatprep.subr.bf16.mxu1 %v2655_v3  ;;  %v3525_v2 = vld [vmem:[#allocation19_spill] sm:$0xff] }
 0x358   :  { %1272 = vmatpush1.bf16.msra.mxu0 %v2664_v4  ;;  %1315 = vmatpush1.bf16.msra.mxu1 %v2669_v5  ;;  %v3526_v5 = vld [vmem:[#allocation20_spill] sm:$0xff] }
 0x359   :  { %1388 = vmatprep.subr.bf16.mxu0 %v3033_v36  ;;  %1431 = vmatprep.subr.bf16.mxu1 %v3039_v37 }
 0x3fb   :  { %v1160_v58 = vpop.f32.mrf.mxu0  ;;  %v1203_v59 = vpop.f32.mrf.mxu1 }
 0x3fc   :  { %v1212_v61 = vadd.f32 %v1160_v58, %v3523_v60  ;;  %v1214_v24 = vadd.f32 %v1203_v59, %v3529_v62  ;;  %v3257_v62 = vld [vmem:[%s3451_s2 + $0x20] ss:$16 sps:$4 sm:$0xff]  }
 0x3fd   :  { %v1162_v15 = vpop.f32.mrf.mxu0  ;;  %v1205_v63 = vpop.f32.mrf.mxu1 }
 0x3fe   :  { %v1220_v14 = vmul.f32 0.5, %v1212_v61  ;;  %v1213_v11 = vadd.f32 %v1162_v15, %v3524_v0  ;;  %v1215_v31 = vadd.f32 %v1205_v63, %v3525_v2  ;;  %v1222_v28 = vmul.f32 0.5, %v1214_v24  ;;  %v3263_v24 = vld [vmem:[%s3451_s2 + $0x28] ss:$16 sps:$4 sm:$0xff]  }
 0x3ff   :  { %v1164_v3 = vpop.f32.mrf.mxu0  ;;  %v1207_v21 = vpop.f32.mrf.mxu1 }
 0x400   :  { %2194 = vtanh.f32 %v1220_v14  ;;  %v1221_v4 = vmul.f32 0.5, %v1213_v11  ;;  %v1216_v12 = vadd.f32 %v1164_v3, %v3526_v5  ;;  %v1218_v35 = vadd.f32 %v1207_v21, %v3530_v30  ;;  %v3269_v30 = vld [vmem:[%s3451_s2 + $0x4] ss:$16 sps:$4 sm:$0xff]  }
 0x401   :  { %v1166_v33 = vpop.f32.mrf.mxu0  ;;  %v1209_v23 = vpop.f32.mrf.mxu1 }
 0x402   :  { %2196 = vtanh.f32 %v1221_v4  ;;  %v1223_v16 = vmul.f32 0.5, %v1216_v12  ;;  %v1217_v32 = vadd.f32 %v1166_v33, %v3527_v26  ;;  %v1219_v22 = vadd.f32 %v1209_v23, %v3528_v7  ;;  %v3245_v7 = vld [vmem:[%s3451_s2 + $0x24] ss:$16 sps:$4 sm:$0xff]  }
 0x403   :  { %2198 = vtanh.f32 %v1215_v31  ;;  %v1225_v46 = vmul.f32 0.5, %v1218_v35  ;;  %v3275_v35 = vld [vmem:[%s3451_s2 + $0xc] ss:$16 sps:$4 sm:$0xff]  }
 0x404   :  { %2200 = vtanh.f32 %v1223_v16  ;;  %v1224_v27 = vmul.f32 0.5, %v1217_v32 }
 0x406   :  { %2202 = vtanh.f32 %v1224_v27  ;;  %v3239_v27 = vld [vmem:[%s3451_s2 + $0x48] ss:$16 sps:$4 sm:$0xff]  }
 0x407   :  { %2204 = vtanh.f32 %v1219_v22  ;;  %v3251_v22 = vld [vmem:[%s3451_s2 + $0x2c] ss:$16 sps:$4 sm:$0xff]  }
 0x408   :  { %2206 = vtanh.f32 %v1222_v28 }
 0x409   :  { %2208 = vtanh.f32 %v1225_v46 }
 0x40d   :  { %v2195_v39 = vpop.eup %2194 }
 0x40e   :  { %v1232_v40 = vmul.f32 0.5, %v2195_v39  ;;  %v3281_v39 = vld [vmem:[%s3451_s2] ss:$16 sps:$4 sm:$0xff]  }
 0x40f   :  { %v2197_v41 = vpop.eup %2196 }
 0x410   :  { %v2199_v42 = vpop.eup %2198  ;;  %v1238_v43 = vadd.f32 0.5, %v1232_v40  ;;  %v1233_v45 = vmul.f32 0.5, %v2197_v41  ;;  %v3287_v40 = vld [vmem:[%s3451_s2 + $0x8] ss:$16 sps:$4 sm:$0xff]  }
 0x411   :  { %v2201_v47 = vpop.eup %2200 }
 0x412   :  { %v1239_v48 = vadd.f32 0.5, %v1233_v45  ;;  %v1248_v49 = vmul.f32 %v2199_v42, %v1238_v43  ;;  %v1235_v58 = vmul.f32 0.5, %v2201_v47  ;;  %v3531_v42 = vld [vmem:[#allocation24_spill] sm:$0xff] }
 0x413   :  { %v2203_v60 = vpop.eup %2202 }
 0x414   :  { %v1246_v61 = vmul.f32 %v1239_v48, %v3051_v6  ;;  %v1241_v15 = vadd.f32 0.5, %v1235_v58  ;;  %v1236_v59 = vmul.f32 0.5, %v2203_v60  ;;  %v2205_v63 = vpop.eup %2204  ;;  %v3532_v48 = vld [vmem:[#allocation26_spill] sm:$0xff]  ;;  %v3533_v58 = vld [vmem:[#allocation27_spill] sm:$0xff] }
 0x415   :  { %v2207_v3 = vpop.eup %2206 }
 0x416   :  { %v3201_v14 = vadd.f32 %v1248_v49, %v1246_v61  ;;  %v1242_v0 = vadd.f32 0.5, %v1236_v59  ;;  %v1249_v11 = vmul.f32 %v2205_v63, %v1241_v15  ;;  %v2209_v21 = vpop.eup %2208  ;;  %v1234_v4 = vmul.f32 0.5, %v2207_v3  ;;  %v3534_v63 = vld [vmem:[#allocation28_spill] sm:$0xff] }
 0x417   :  { %v1237_v6 = vmul.f32 0.5, %v2209_v21  ;;  %v3535_v21 = vld [vmem:[#allocation30_spill] sm:$0xff] }
 0x418   :  { %v1247_v2 = vmul.f32 %v1242_v0, %v3055_v38  ;;  %2210 = vtanh.f32 %v3201_v14  ;;  %v1240_v12 = vadd.f32 0.5, %v1234_v4  ;;  %v3233_v38 = vld [vmem:[%s3451_s2 + $0x40] ss:$16 sps:$4 sm:$0xff]  }
 0x419   :  { %v1243_v33 = vadd.f32 0.5, %v1237_v6 }
 0x41a   :  { %v3205_v31 = vadd.f32 %v1249_v11, %v1247_v2 }
 0x41c   :  { %2212 = vtanh.f32 %v3205_v31 }
 0x425   :  { %v2211_v5 = vpop.eup %2210 }
 0x426   :  { %v1254_v16 = vmul.f32 %v2211_v5, %v1240_v12  ;;  %v3536_v5 = vld [vmem:[#allocation31_spill] sm:$0xff] }
 0x429   :  { %v2213_v23 = vpop.eup %2212 }
 0x42a   :  { %v1255_v26 = vmul.f32 %v2213_v23, %v1243_v33  ;;  %v3537_v33 = vld [vmem:[#allocation25_spill] sm:$0xff] }
 0x42c   :  { %v1256_v32 = vpack.c.bf16 %v1255_v26, %v1254_v16  ;;  %v3538_v16 = vld [vmem:[#allocation29_spill] sm:$0xff] }
 0x42e   :  { %1290 = vmatmul.mubr.bf16.vlgmr.msra.gmra.mxu0 %v1256_v32  ;;  %1333 = vmatmul.mubr.bf16.vlgmr.msra.gmra.mxu1 %v1256_v32 }
 0x42f   :  { %1389 = vmatpush1.bf16.msra.mxu0 %v3061_v34  ;;  %1432 = vmatpush1.bf16.msra.mxu1 %v3067_v50 }
 0x430   :  { %1390 = vmatprep.subr.bf16.mxu0 %v3073_v51  ;;  %1433 = vmatprep.subr.bf16.mxu1 %v3079_v52 }
 0x431   :  { %1420 = vmatprep.mubr.bf16.mxu0 %v3510_v29  ;;  %1463 = vmatprep.mubr.bf16.mxu1 %v3510_v29 }
 0x433   :  { %1391 = vmatpush1.bf16.msra.mxu0 %v3087_v54  ;;  %1434 = vmatpush1.bf16.msra.mxu1 %v3093_v55 }
 0x434   :  { %1392 = vmatprep.subr.bf16.mxu0 %v3099_v56  ;;  %1435 = vmatprep.subr.bf16.mxu1 %v3105_v57 }
 0x437   :  { %1393 = vmatpush1.bf16.msra.mxu0 %v3111_v20  ;;  %1436 = vmatpush1.bf16.msra.mxu1 %v3117_v10 }
 0x438   :  { %1394 = vmatprep.subr.bf16.mxu0 %v3123_v9  ;;  %1437 = vmatprep.subr.bf16.mxu1 %v3129_v18 }
 0x43b   :  { %1395 = vmatpush1.bf16.msra.mxu0 %v3135_v1  ;;  %1438 = vmatpush1.bf16.msra.mxu1 %v3141_v44 }
 0x43c   :  { %1396 = vmatprep.subr.bf16.mxu0 %v3147_v19  ;;  %1439 = vmatprep.subr.bf16.mxu1 %v3153_v25 }
 0x43f   :  { %1397 = vmatpush1.bf16.msra.mxu0 %v3159_v53  ;;  %1440 = vmatpush1.bf16.msra.mxu1 %v3165_v13 }
 0x440   :  { %1398 = vmatprep.subr.bf16.mxu0 %v3171_v17  ;;  %1441 = vmatprep.subr.bf16.mxu1 %v3177_v8 }
 0x443   :  { %1399 = vmatpush1.bf16.msra.mxu0 %v3233_v38  ;;  %1442 = vmatpush1.bf16.msra.mxu1 %v3239_v27 }
 0x444   :  { %1400 = vmatprep.subr.bf16.mxu0 %v3245_v7  ;;  %1443 = vmatprep.subr.bf16.mxu1 %v3251_v22 }
 0x447   :  { %1401 = vmatpush1.bf16.msra.mxu0 %v3257_v62  ;;  %1444 = vmatpush1.bf16.msra.mxu1 %v3263_v24 }
 0x448   :  { %1402 = vmatprep.subr.bf16.mxu0 %v3269_v30  ;;  %1445 = vmatprep.subr.bf16.mxu1 %v3275_v35 }
 0x44b   :  { %1403 = vmatpush1.bf16.msra.mxu0 %v3281_v39  ;;  %1446 = vmatpush1.bf16.msra.mxu1 %v3287_v40 }
 0x44c   :  { %1519 = vmatprep.subr.bf16.mxu0 %v3033_v36  ;;  %1562 = vmatprep.subr.bf16.mxu1 %v3039_v37 }
 0x4ee   :  { %v1291_v41 = vpop.f32.mrf.mxu0  ;;  %v1334_v28 = vpop.f32.mrf.mxu1 }
 0x4ef   :  { %v1343_v43 = vadd.f32 %v1291_v41, %v3531_v42  ;;  %v1345_v23 = vadd.f32 %v1334_v28, %v3537_v33 }
 0x4f0   :  { %v1293_v45 = vpop.f32.mrf.mxu0  ;;  %v1336_v46 = vpop.f32.mrf.mxu1 }
 0x4f1   :  { %v1351_v47 = vmul.f32 0.5, %v1343_v43  ;;  %v1344_v49 = vadd.f32 %v1293_v45, %v3532_v48  ;;  %v1346_v60 = vadd.f32 %v1336_v46, %v3533_v58  ;;  %v1353_v43 = vmul.f32 0.5, %v1345_v23 }
 0x4f2   :  { %v1295_v61 = vpop.f32.mrf.mxu0  ;;  %v1338_v15 = vpop.f32.mrf.mxu1 }
 0x4f3   :  { %2214 = vtanh.f32 %v1351_v47  ;;  %v1352_v59 = vmul.f32 0.5, %v1344_v49  ;;  %v1347_v0 = vadd.f32 %v1295_v61, %v3534_v63  ;;  %v1349_v26 = vadd.f32 %v1338_v15, %v3538_v16 }
 0x4f4   :  { %v1297_v11 = vpop.f32.mrf.mxu0  ;;  %v1340_v2 = vpop.f32.mrf.mxu1 }
 0x4f5   :  { %2216 = vtanh.f32 %v1352_v59  ;;  %v1354_v3 = vmul.f32 0.5, %v1347_v0  ;;  %v1348_v4 = vadd.f32 %v1297_v11, %v3535_v21  ;;  %v1350_v12 = vadd.f32 %v1340_v2, %v3536_v5 }
 0x4f6   :  { %2218 = vtanh.f32 %v1346_v60  ;;  %v1356_v48 = vmul.f32 0.5, %v1349_v26 }
 0x4f7   :  { %2220 = vtanh.f32 %v1354_v3  ;;  %v1355_v6 = vmul.f32 0.5, %v1348_v4 }
 0x4f9   :  { %2222 = vtanh.f32 %v1355_v6 }
 0x4fa   :  { %2224 = vtanh.f32 %v1350_v12 }
 0x4fb   :  { %2226 = vtanh.f32 %v1353_v43 }
 0x4fc   :  { %2228 = vtanh.f32 %v1356_v48 }
 0x500   :  { %v2215_v32 = vpop.eup %2214 }
 0x501   :  { %v1363_v41 = vmul.f32 0.5, %v2215_v32 }
 0x502   :  { %v2217_v42 = vpop.eup %2216 }
 0x503   :  { %v2219_v45 = vpop.eup %2218  ;;  %v1369_v46 = vadd.f32 0.5, %v1363_v41  ;;  %v1364_v47 = vmul.f32 0.5, %v2217_v42 }
 0x504   :  { %v2221_v49 = vpop.eup %2220 }
 0x505   :  { %v1370_v58 = vadd.f32 0.5, %v1364_v47  ;;  %v1379_v60 = vmul.f32 %v2219_v45, %v1369_v46  ;;  %v1366_v61 = vmul.f32 0.5, %v2221_v49  ;;  %v3539_v45 = vld [vmem:[#allocation32_spill] sm:$0xff] }
 0x506   :  { %v2223_v59 = vpop.eup %2222 }
 0x507   :  { %v1377_v63 = vmul.f32 %v1370_v58, %v3201_v14  ;;  %v1372_v0 = vadd.f32 0.5, %v1366_v61  ;;  %v1367_v28 = vmul.f32 0.5, %v2223_v59  ;;  %v2225_v15 = vpop.eup %2224  ;;  %v3540_v58 = vld [vmem:[#allocation34_spill] sm:$0xff]  ;;  %v3541_v61 = vld [vmem:[#allocation35_spill] sm:$0xff] }
 0x508   :  { %v2227_v6 = vpop.eup %2226 }
 0x509   :  { %v3301_v11 = vadd.f32 %v1379_v60, %v1377_v63  ;;  %v1373_v2 = vadd.f32 0.5, %v1367_v28  ;;  %v1380_v3 = vmul.f32 %v2225_v15, %v1372_v0  ;;  %v2229_v5 = vpop.eup %2228  ;;  %v1365_v12 = vmul.f32 0.5, %v2227_v6  ;;  %v3542_v15 = vld [vmem:[#allocation36_spill] sm:$0xff] }
 0x50a   :  { %v1368_v14 = vmul.f32 0.5, %v2229_v5 }
 0x50b   :  { %v1378_v21 = vmul.f32 %v1373_v2, %v3205_v31  ;;  %2230 = vtanh.f32 %v3301_v11  ;;  %v1371_v23 = vadd.f32 0.5, %v1365_v12  ;;  %v3544_v12 = vld [vmem:[#allocation39_spill] sm:$0xff] }
 0x50c   :  { %v1374_v16 = vadd.f32 0.5, %v1368_v14 }
 0x50d   :  { %v3305_v4 = vadd.f32 %v1380_v3, %v1378_v21  ;;  %v3543_v21 = vld [vmem:[#allocation38_spill] sm:$0xff] }
 0x50f   :  { %2232 = vtanh.f32 %v3305_v4 }
 0x518   :  { %v2231_v33 = vpop.eup %2230 }
 0x519   :  { %v1385_v32 = vmul.f32 %v2231_v33, %v1371_v23  ;;  %v3545_v33 = vld [vmem:[#allocation33_spill] sm:$0xff] }
 0x51c   :  { %v2233_v26 = vpop.eup %2232 }
 0x51d   :  { %v1386_v41 = vmul.f32 %v2233_v26, %v1374_v16  ;;  %v3546_v16 = vld [vmem:[#allocation37_spill] sm:$0xff] }
 0x51f   :  { %v1387_v42 = vpack.c.bf16 %v1386_v41, %v1385_v32 }
 0x521   :  { %1421 = vmatmul.mubr.bf16.vlgmr.msra.gmra.mxu0 %v1387_v42  ;;  %1464 = vmatmul.mubr.bf16.vlgmr.msra.gmra.mxu1 %v1387_v42 }
 0x522   :  { %1520 = vmatpush1.bf16.msra.mxu0 %v3061_v34  ;;  %1563 = vmatpush1.bf16.msra.mxu1 %v3067_v50 }
 0x523   :  { %1521 = vmatprep.subr.bf16.mxu0 %v3073_v51  ;;  %1564 = vmatprep.subr.bf16.mxu1 %v3079_v52 }
 0x524   :  { %1551 = vmatprep.mubr.bf16.mxu0 %v3510_v29  ;;  %1594 = vmatprep.mubr.bf16.mxu1 %v3510_v29 }
 0x526   :  { %1522 = vmatpush1.bf16.msra.mxu0 %v3087_v54  ;;  %1565 = vmatpush1.bf16.msra.mxu1 %v3093_v55 }
 0x527   :  { %1523 = vmatprep.subr.bf16.mxu0 %v3099_v56  ;;  %1566 = vmatprep.subr.bf16.mxu1 %v3105_v57 }
 0x52a   :  { %1524 = vmatpush1.bf16.msra.mxu0 %v3111_v20  ;;  %1567 = vmatpush1.bf16.msra.mxu1 %v3117_v10 }
 0x52b   :  { %1525 = vmatprep.subr.bf16.mxu0 %v3123_v9  ;;  %1568 = vmatprep.subr.bf16.mxu1 %v3129_v18 }
 0x52e   :  { %1526 = vmatpush1.bf16.msra.mxu0 %v3135_v1  ;;  %1569 = vmatpush1.bf16.msra.mxu1 %v3141_v44 }
 0x52f   :  { %1527 = vmatprep.subr.bf16.mxu0 %v3147_v19  ;;  %1570 = vmatprep.subr.bf16.mxu1 %v3153_v25 }
 0x532   :  { %1528 = vmatpush1.bf16.msra.mxu0 %v3159_v53  ;;  %1571 = vmatpush1.bf16.msra.mxu1 %v3165_v13 }
 0x533   :  { %1529 = vmatprep.subr.bf16.mxu0 %v3171_v17  ;;  %1572 = vmatprep.subr.bf16.mxu1 %v3177_v8 }
 0x536   :  { %1530 = vmatpush1.bf16.msra.mxu0 %v3233_v38  ;;  %1573 = vmatpush1.bf16.msra.mxu1 %v3239_v27 }
 0x537   :  { %1531 = vmatprep.subr.bf16.mxu0 %v3245_v7  ;;  %1574 = vmatprep.subr.bf16.mxu1 %v3251_v22 }
 0x53a   :  { %1532 = vmatpush1.bf16.msra.mxu0 %v3257_v62  ;;  %1575 = vmatpush1.bf16.msra.mxu1 %v3263_v24 }
 0x53b   :  { %1533 = vmatprep.subr.bf16.mxu0 %v3269_v30  ;;  %1576 = vmatprep.subr.bf16.mxu1 %v3275_v35 }
 0x53e   :  { %1534 = vmatpush1.bf16.msra.mxu0 %v3281_v39  ;;  %1577 = vmatpush1.bf16.msra.mxu1 %v3287_v40 }
 0x53f   :  { %1650 = vmatprep.subr.bf16.mxu0 %v3033_v36  ;;  %1693 = vmatprep.subr.bf16.mxu1 %v3039_v37 }
 0x5e1   :  { %v1422_v31 = vpop.f32.mrf.mxu0  ;;  %v1465_v43 = vpop.f32.mrf.mxu1 }
 0x5e2   :  { %v1474_v46 = vadd.f32 %v1422_v31, %v3539_v45  ;;  %v1476_v23 = vadd.f32 %v1465_v43, %v3545_v33 }
 0x5e3   :  { %v1424_v47 = vpop.f32.mrf.mxu0  ;;  %v1467_v48 = vpop.f32.mrf.mxu1 }
 0x5e4   :  { %v1482_v49 = vmul.f32 0.5, %v1474_v46  ;;  %v1475_v60 = vadd.f32 %v1424_v47, %v3540_v58  ;;  %v1477_v59 = vadd.f32 %v1467_v48, %v3541_v61  ;;  %v1484_v31 = vmul.f32 0.5, %v1476_v23 }
 0x5e5   :  { %v1426_v63 = vpop.f32.mrf.mxu0  ;;  %v1469_v0 = vpop.f32.mrf.mxu1 }
 0x5e6   :  { %2234 = vtanh.f32 %v1482_v49  ;;  %v1483_v28 = vmul.f32 0.5, %v1475_v60  ;;  %v1478_v2 = vadd.f32 %v1426_v63, %v3542_v15  ;;  %v1480_v26 = vadd.f32 %v1469_v0, %v3546_v16 }
 0x5e7   :  { %v1428_v36 = vpop.f32.mrf.mxu0  ;;  %v1471_v3 = vpop.f32.mrf.mxu1 }
 0x5e8   :  { %2236 = vtanh.f32 %v1483_v28  ;;  %v1485_v37 = vmul.f32 0.5, %v1478_v2  ;;  %v1479_v6 = vadd.f32 %v1428_v36, %v3543_v21  ;;  %v1481_v14 = vadd.f32 %v1471_v3, %v3544_v12 }
 0x5e9   :  { %2238 = vtanh.f32 %v1477_v59  ;;  %v1487_v48 = vmul.f32 0.5, %v1480_v26 }
 0x5ea   :  { %2240 = vtanh.f32 %v1485_v37  ;;  %v1486_v5 = vmul.f32 0.5, %v1479_v6 }
 0x5ec   :  { %2242 = vtanh.f32 %v1486_v5 }
 0x5ed   :  { %2244 = vtanh.f32 %v1481_v14 }
 0x5ee   :  { %2246 = vtanh.f32 %v1484_v31 }
 0x5ef   :  { %2248 = vtanh.f32 %v1487_v48 }
 0x5f3   :  { %v2235_v32 = vpop.eup %2234 }
 0x5f4   :  { %v1494_v41 = vmul.f32 0.5, %v2235_v32 }
 0x5f5   :  { %v2237_v42 = vpop.eup %2236 }
 0x5f6   :  { %v2239_v45 = vpop.eup %2238  ;;  %v1500_v46 = vadd.f32 0.5, %v1494_v41  ;;  %v1495_v47 = vmul.f32 0.5, %v2237_v42 }
 0x5f7   :  { %v2241_v49 = vpop.eup %2240 }
 0x5f8   :  { %v1501_v58 = vadd.f32 0.5, %v1495_v47  ;;  %v1510_v60 = vmul.f32 %v2239_v45, %v1500_v46  ;;  %v1497_v61 = vmul.f32 0.5, %v2241_v49 }
 0x5f9   :  { %v2243_v59 = vpop.eup %2242 }
 0x5fa   :  { %v1508_v63 = vmul.f32 %v1501_v58, %v3301_v11  ;;  %v1503_v28 = vadd.f32 0.5, %v1497_v61  ;;  %v1498_v43 = vmul.f32 0.5, %v2243_v59  ;;  %v2245_v0 = vpop.eup %2244 }
 0x5fb   :  { %v2247_v21 = vpop.eup %2246 }
 0x5fc   :  { %v3351_v15 = vadd.f32 %v1510_v60, %v1508_v63  ;;  %v1504_v2 = vadd.f32 0.5, %v1498_v43  ;;  %v1511_v36 = vmul.f32 %v2245_v0, %v1503_v28  ;;  %v2249_v6 = vpop.eup %2248  ;;  %v1496_v5 = vmul.f32 0.5, %v2247_v21 }
 0x5fd   :  { %v1499_v11 = vmul.f32 0.5, %v2249_v6 }
 0x5fe   :  { %v1509_v3 = vmul.f32 %v1504_v2, %v3305_v4  ;;  %2250 = vtanh.f32 %v3351_v15  ;;  %v1502_v14 = vadd.f32 0.5, %v1496_v5 }
 0x5ff   :  { %v1505_v33 = vadd.f32 0.5, %v1499_v11 }
 0x600   :  { %v3355_v37 = vadd.f32 %v1511_v36, %v1509_v3 }
 0x602   :  { %2252 = vtanh.f32 %v3355_v37 }
 0x60b   :  { %v2251_v12 = vpop.eup %2250 }
 0x60c   :  { %v1516_v16 = vmul.f32 %v2251_v12, %v1502_v14 }
 0x60f   :  { %v2253_v23 = vpop.eup %2252 }
 0x610   :  { %v1517_v26 = vmul.f32 %v2253_v23, %v1505_v33 }
 0x612   :  { %v1518_v32 = vpack.c.bf16 %v1517_v26, %v1516_v16  ;;  %v2328_v26 = vmov 0.0  }
 0x614   :  { %1552 = vmatmul.mubr.bf16.vlgmr.msra.gmra.mxu0 %v1518_v32  ;;  %1595 = vmatmul.mubr.bf16.vlgmr.msra.gmra.mxu1 %v1518_v32  ;;  %v2127_v32 = vld [vmem:[%s3453_s4 + $0x30] sm:$0xff]  }
 0x615   :  { %1651 = vmatpush1.bf16.msra.mxu0 %v3061_v34  ;;  %1694 = vmatpush1.bf16.msra.mxu1 %v3067_v50  ;;  %v3547_v50 = vld [vmem:[#allocation40_spill] sm:$0xff] }
 0x616   :  { %1652 = vmatprep.subr.bf16.mxu0 %v3073_v51  ;;  %1695 = vmatprep.subr.bf16.mxu1 %v3079_v52 }
 0x617   :  { %1682 = vmatprep.mubr.bf16.mxu0 %v3510_v29  ;;  %1725 = vmatprep.mubr.bf16.mxu1 %v3510_v29 }
 0x619   :  { %1653 = vmatpush1.bf16.msra.mxu0 %v3087_v54  ;;  %1696 = vmatpush1.bf16.msra.mxu1 %v3093_v55 }
 0x61a   :  { %1654 = vmatprep.subr.bf16.mxu0 %v3099_v56  ;;  %1697 = vmatprep.subr.bf16.mxu1 %v3105_v57  ;;  %v3548_v56 = vld [vmem:[#allocation42_spill] sm:$0xff] }
 0x61d   :  { %1655 = vmatpush1.bf16.msra.mxu0 %v3111_v20  ;;  %1698 = vmatpush1.bf16.msra.mxu1 %v3117_v10  ;;  %v3549_v20 = vld [vmem:[#allocation43_spill] sm:$0xff] }
 0x61e   :  { %1656 = vmatprep.subr.bf16.mxu0 %v3123_v9  ;;  %1699 = vmatprep.subr.bf16.mxu1 %v3129_v18 }
 0x621   :  { %1657 = vmatpush1.bf16.msra.mxu0 %v3135_v1  ;;  %1700 = vmatpush1.bf16.msra.mxu1 %v3141_v44  ;;  %v3550_v44 = vld [vmem:[#allocation44_spill] sm:$0xff] }
 0x622   :  { %1658 = vmatprep.subr.bf16.mxu0 %v3147_v19  ;;  %1701 = vmatprep.subr.bf16.mxu1 %v3153_v25 }
 0x625   :  { %1659 = vmatpush1.bf16.msra.mxu0 %v3159_v53  ;;  %1702 = vmatpush1.bf16.msra.mxu1 %v3165_v13 }
 0x626   :  { %1660 = vmatprep.subr.bf16.mxu0 %v3171_v17  ;;  %1703 = vmatprep.subr.bf16.mxu1 %v3177_v8  ;;  %v3551_v17 = vld [vmem:[#allocation46_spill] sm:$0xff] }
 0x629   :  { %1661 = vmatpush1.bf16.msra.mxu0 %v3233_v38  ;;  %1704 = vmatpush1.bf16.msra.mxu1 %v3239_v27  ;;  %v3552_v27 = vld [vmem:[#allocation47_spill] sm:$0xff] }
 0x62a   :  { %1662 = vmatprep.subr.bf16.mxu0 %v3245_v7  ;;  %1705 = vmatprep.subr.bf16.mxu1 %v3251_v22  ;;  %v3553_v22 = vld [vmem:[#allocation41_spill] sm:$0xff] }
 0x62d   :  { %1663 = vmatpush1.bf16.msra.mxu0 %v3257_v62  ;;  %1706 = vmatpush1.bf16.msra.mxu1 %v3263_v24  ;;  %v3554_v24 = vld [vmem:[#allocation45_spill] sm:$0xff] }
 0x62e   :  { %1664 = vmatprep.subr.bf16.mxu0 %v3269_v30  ;;  %1707 = vmatprep.subr.bf16.mxu1 %v3275_v35 }
 0x631   :  { %1665 = vmatpush1.bf16.msra.mxu0 %v3281_v39  ;;  %1708 = vmatpush1.bf16.msra.mxu1 %v3287_v40 }
 0x632   :  { %1998 = vmatprep.subr.bf16.mxu0 %v2328_v26 }
 0x6d4   :  { %v1553_v29 = vpop.f32.mrf.mxu0  ;;  %v1596_v34 = vpop.f32.mrf.mxu1 }
 0x6d5   :  { %v1605_v51 = vadd.f32 %v1553_v29, %v3547_v50  ;;  %v1607_v62 = vadd.f32 %v1596_v34, %v3553_v22  ;;  %v2128_v29 = vld [vmem:[%s3453_s4 + $0x28] sm:$0xff]   ;;  %v2129_v34 = vld [vmem:[%s3453_s4 + $0x20] sm:$0xff]   ;;  %v2130_v50 = vld [vmem:[%s3453_s4 + $0x18] sm:$0xff]  }
 0x6d6   :  { %v1555_v52 = vpop.f32.mrf.mxu0  ;;  %v1598_v54 = vpop.f32.mrf.mxu1 }
 0x6d7   :  { %v1613_v55 = vmul.f32 0.5, %v1605_v51  ;;  %v1606_v57 = vadd.f32 %v1555_v52, %v3548_v56  ;;  %v1608_v10 = vadd.f32 %v1598_v54, %v3549_v20  ;;  %v1615_v4 = vmul.f32 0.5, %v1607_v62  ;;  %v2131_v51 = vld [vmem:[%s3453_s4 + $0x10] sm:$0xff]   ;;  %v2132_v52 = vld [vmem:[%s3453_s4 + $0x8] sm:$0xff]   ;;  %v2133_v54 = vld [vmem:[%s3453_s4] sm:$0xff]  }
 0x6d8   :  { %v1557_v9 = vpop.f32.mrf.mxu0  ;;  %v1600_v18 = vpop.f32.mrf.mxu1  ;;  %v3559_v62 = vld [vmem:[#allocation54_spill] sm:$0xff] }
 0x6d9   :  { %2254 = vtanh.f32 %v1613_v55  ;;  %v1614_v1 = vmul.f32 0.5, %v1606_v57  ;;  %v1609_v19 = vadd.f32 %v1557_v9, %v3550_v44  ;;  %v1611_v30 = vadd.f32 %v1600_v18, %v3554_v24  ;;  %v3555_v57 = vld [vmem:[#allocation48_spill] sm:$0xff] }
 0x6da   :  { %v1559_v25 = vpop.f32.mrf.mxu0  ;;  %v1602_v53 = vpop.f32.mrf.mxu1 }
 0x6db   :  { %2256 = vtanh.f32 %v1614_v1  ;;  %v1616_v13 = vmul.f32 0.5, %v1609_v19  ;;  %v1610_v8 = vadd.f32 %v1559_v25, %v3551_v17  ;;  %v1612_v7 = vadd.f32 %v1602_v53, %v3552_v27  ;;  %v3556_v1 = vld [vmem:[#allocation50_spill] sm:$0xff]  ;;  %v3557_v19 = vld [vmem:[#allocation51_spill] sm:$0xff] }
 0x6dc   :  { %2258 = vtanh.f32 %v1608_v10  ;;  %v1618_v45 = vmul.f32 0.5, %v1611_v30 }
 0x6dd   :  { %2260 = vtanh.f32 %v1616_v13  ;;  %v1617_v38 = vmul.f32 0.5, %v1610_v8  ;;  %v3558_v8 = vld [vmem:[#allocation52_spill] sm:$0xff] }
 0x6df   :  { %2262 = vtanh.f32 %v1617_v38 }
 0x6e0   :  { %2264 = vtanh.f32 %v1612_v7 }
 0x6e1   :  { %2266 = vtanh.f32 %v1615_v4 }
 0x6e2   :  { %2268 = vtanh.f32 %v1618_v45 }
 0x6e6   :  { %v2255_v35 = vpop.eup %2254 }
 0x6e7   :  { %v1625_v39 = vmul.f32 0.5, %v2255_v35  ;;  %v3560_v35 = vld [vmem:[#allocation55_spill] sm:$0xff] }
 0x6e8   :  { %v2257_v40 = vpop.eup %2256 }
 0x6e9   :  { %v2259_v41 = vpop.eup %2258  ;;  %v1631_v42 = vadd.f32 0.5, %v1625_v39  ;;  %v1626_v31 = vmul.f32 0.5, %v2257_v40  ;;  %v3561_v40 = vld [vmem:[#allocation49_spill] sm:$0xff] }
 0x6ea   :  { %v2261_v46 = vpop.eup %2260 }
 0x6eb   :  { %v1632_v47 = vadd.f32 0.5, %v1626_v31  ;;  %v1641_v48 = vmul.f32 %v2259_v41, %v1631_v42  ;;  %v1628_v49 = vmul.f32 0.5, %v2261_v46  ;;  %v3562_v42 = vld [vmem:[#allocation53_spill] sm:$0xff] }
 0x6ec   :  { %v2263_v58 = vpop.eup %2262 }
 0x6ed   :  { %v1639_v60 = vmul.f32 %v1632_v47, %v3351_v15  ;;  %v1634_v61 = vadd.f32 0.5, %v1628_v49  ;;  %v1629_v59 = vmul.f32 0.5, %v2263_v58  ;;  %v2265_v63 = vpop.eup %2264 }
 0x6ee   :  { %v2267_v3 = vpop.eup %2266 }
 0x6ef   :  { %v3399_v28 = vadd.f32 %v1641_v48, %v1639_v60  ;;  %v1635_v43 = vadd.f32 0.5, %v1629_v59  ;;  %v1642_v0 = vmul.f32 %v2265_v63, %v1634_v61  ;;  %v2269_v21 = vpop.eup %2268  ;;  %v1627_v6 = vmul.f32 0.5, %v2267_v3 }
 0x6f0   :  { %v1630_v15 = vmul.f32 0.5, %v2269_v21 }
 0x6f1   :  { %v1640_v2 = vmul.f32 %v1635_v43, %v3355_v37  ;;  %2270 = vtanh.f32 %v3399_v28  ;;  %v1633_v11 = vadd.f32 0.5, %v1627_v6  ;;  %v2126_v37 = vld [vmem:[%s3453_s4 + $0x38] sm:$0xff]  }
 0x6f2   :  { %v1636_v12 = vadd.f32 0.5, %v1630_v15 }
 0x6f3   :  { %v3403_v36 = vadd.f32 %v1642_v0, %v1640_v2 }
 0x6f5   :  { %2272 = vtanh.f32 %v3403_v36 }
 0x6fe   :  { %v2271_v5 = vpop.eup %2270 }
 0x6ff   :  { %v1647_v33 = vmul.f32 %v2271_v5, %v1633_v11 }
 0x702   :  { %v2273_v14 = vpop.eup %2272 }
 0x703   :  { %v1648_v23 = vmul.f32 %v2273_v14, %v1636_v12 }
 0x705   :  { %v1649_v16 = vpack.c.bf16 %v1648_v23, %v1647_v33 }
 0x707   :  { %1683 = vmatmul.mubr.bf16.vlgmr.msra.gmra.mxu0 %v1649_v16  ;;  %1726 = vmatmul.mubr.bf16.vlgmr.msra.gmra.mxu1 %v1649_v16 }
 0x708   :  { %1999 = vmatpush3.bf16.msra.mxu0 %v2126_v37  ;;  %2014 = vmatprep.mubr.msk.bf16.mxu0 %vm2329_vm0, %v2328_v26 }
 0x709   :  { %2000 = vmatprep.subr.bf16.mxu0 %v2328_v26 }
 0x70c   :  { %2001 = vmatpush3.bf16.msra.mxu0 %v2127_v32 }
 0x70d   :  { %2002 = vmatprep.subr.bf16.mxu0 %v2328_v26 }
 0x710   :  { %2003 = vmatpush3.bf16.msra.mxu0 %v2128_v29 }
 0x711   :  { %2004 = vmatprep.subr.bf16.mxu0 %v2328_v26 }
 0x714   :  { %2005 = vmatpush3.bf16.msra.mxu0 %v2129_v34 }
 0x715   :  { %2006 = vmatprep.subr.bf16.mxu0 %v2328_v26 }
 0x718   :  { %2007 = vmatpush3.bf16.msra.mxu0 %v2130_v50 }
 0x719   :  { %2008 = vmatprep.subr.bf16.mxu0 %v2328_v26 }
 0x71c   :  { %2009 = vmatpush3.bf16.msra.mxu0 %v2131_v51 }
 0x71d   :  { %2010 = vmatprep.subr.bf16.mxu0 %v2328_v26 }
 0x720   :  { %2011 = vmatpush3.bf16.msra.mxu0 %v2132_v52  ;;  %v1980_v52 = vld [vmem:[%s3454_s5] ss:$0 sm:$0xff] }
 0x721   :  { %2012 = vmatprep.subr.bf16.mxu0 %v2328_v26 }
 0x724   :  { %2013 = vmatpush3.bf16.msra.mxu0 %v2133_v54 }
 0x7c7   :  { %v1684_v55 = vpop.f32.mrf.mxu0  ;;  %v1727_v56 = vpop.f32.mrf.mxu1 }
 0x7c8   :  { %v1736_v20 = vadd.f32 %v1684_v55, %v3555_v57  ;;  %v1738_v4 = vadd.f32 %v1727_v56, %v3561_v40 }
 0x7c9   :  { %v1686_v10 = vpop.f32.mrf.mxu0  ;;  %v1729_v9 = vpop.f32.mrf.mxu1 }
 0x7ca   :  { %v1744_v18 = vmul.f32 0.5, %v1736_v20  ;;  %v1737_v44 = vadd.f32 %v1686_v10, %v3556_v1  ;;  %v1739_v25 = vadd.f32 %v1729_v9, %v3557_v19  ;;  %v1746_v41 = vmul.f32 0.5, %v1738_v4 }
 0x7cb   :  { %v1688_v53 = vpop.f32.mrf.mxu0  ;;  %v1731_v13 = vpop.f32.mrf.mxu1 }
 0x7cc   :  { %2274 = vtanh.f32 %v1744_v18  ;;  %v1745_v17 = vmul.f32 0.5, %v1737_v44  ;;  %v1740_v38 = vadd.f32 %v1688_v53, %v3558_v8  ;;  %v1742_v31 = vadd.f32 %v1731_v13, %v3562_v42 }
 0x7cd   :  { %v1690_v27 = vpop.f32.mrf.mxu0  ;;  %v1733_v7 = vpop.f32.mrf.mxu1 }
 0x7ce   :  { %2276 = vtanh.f32 %v1745_v17  ;;  %v1747_v22 = vmul.f32 0.5, %v1740_v38  ;;  %v1741_v24 = vadd.f32 %v1690_v27, %v3559_v62  ;;  %v1743_v39 = vadd.f32 %v1733_v7, %v3560_v35 }
 0x7cf   :  { %2278 = vtanh.f32 %v1739_v25  ;;  %v1749_v60 = vmul.f32 0.5, %v1742_v31 }
 0x7d0   :  { %2280 = vtanh.f32 %v1747_v22  ;;  %v1748_v30 = vmul.f32 0.5, %v1741_v24 }
 0x7d2   :  { %2282 = vtanh.f32 %v1748_v30 }
 0x7d3   :  { %2284 = vtanh.f32 %v1743_v39 }
 0x7d4   :  { %2286 = vtanh.f32 %v1746_v41 }
 0x7d5   :  { %2288 = vtanh.f32 %v1749_v60 }
 0x7d9   :  { %v2275_v45 = vpop.eup %2274 }
 0x7da   :  { %v1756_v46 = vmul.f32 0.5, %v2275_v45 }
 0x7db   :  { %v2277_v47 = vpop.eup %2276 }
 0x7dc   :  { %v2279_v48 = vpop.eup %2278  ;;  %v1762_v49 = vadd.f32 0.5, %v1756_v46  ;;  %v1757_v58 = vmul.f32 0.5, %v2277_v47 }
 0x7dd   :  { %v2281_v61 = vpop.eup %2280 }
 0x7de   :  { %v1763_v59 = vadd.f32 0.5, %v1757_v58  ;;  %v1772_v63 = vmul.f32 %v2279_v48, %v1762_v49  ;;  %v1759_v43 = vmul.f32 0.5, %v2281_v61 }
 0x7df   :  { %v2283_v0 = vpop.eup %2282 }
 0x7e0   :  { %v1770_v2 = vmul.f32 %v1763_v59, %v3399_v28  ;;  %v1765_v3 = vadd.f32 0.5, %v1759_v43  ;;  %v1760_v21 = vmul.f32 0.5, %v2283_v0  ;;  %v2285_v6 = vpop.eup %2284 }
 0x7e1   :  { %v2287_v33 = vpop.eup %2286 }
 0x7e2   :  { %v1774_v15 = vadd.f32 %v1772_v63, %v1770_v2  ;;  %v1766_v5 = vadd.f32 0.5, %v1760_v21  ;;  %v1773_v11 = vmul.f32 %v2285_v6, %v1765_v3  ;;  %v1758_v23 = vmul.f32 0.5, %v2287_v33  ;;  %v2289_v16 = vpop.eup %2288 }
 0x7e3   :  { %v1761_v26 = vmul.f32 0.5, %v2289_v16 }
 0x7e4   :  { %2290 = vtanh.f32 %v1774_v15  ;;  %v1771_v12 = vmul.f32 %v1766_v5, %v3403_v36  ;;  %v1764_v37 = vadd.f32 0.5, %v1758_v23 }
 0x7e5   :  { %v1767_v28 = vadd.f32 0.5, %v1761_v26 }
 0x7e6   :  { %v1775_v14 = vadd.f32 %v1773_v11, %v1771_v12 }
 0x7e8   :  { %2292 = vtanh.f32 %v1775_v14 }
 0x7f1   :  { %v2291_v32 = vpop.eup %2290 }
 0x7f2   :  { %v1778_v29 = vmul.f32 %v2291_v32, %v1764_v37 }
 0x7f5   :  { %v2293_v34 = vpop.eup %2292 }
 0x7f6   :  { %v1779_v50 = vmul.f32 %v2293_v34, %v1767_v28 }
 0x7f8   :  { %v1789_v51 = vpack.c.bf16 %v1779_v50, %v1778_v29 }
 0x7fa   :  { %2015 = vmatmul.mubr.bf16.vlgmr.msra.gmra.mxu0 %v1789_v51 }
 0x8ba   :  { %v1895_v54 = vpop.f32.mrf.mxu0 }
 0x8bb   :  { %v1896_v36 = vadd.f32 %v1980_v52, %v1895_v54 }
 0x8bc   :  { %v2016_v55 = vpop.f32.mrf.mxu0 }
 0x8bd   :  { %1902 = vst [vmem:[%s3455_s6] sm:$0xff] %v1896_v36 }
 0x8be   :  { %v1898_v56 = vpop.f32.mrf.mxu0 }
 0x8bf   :  { %v1899_v57 = vadd.f32 %v1980_v52, %v1898_v56 }
 0x8c0   :  { %v2017_v20 = vpop.f32.mrf.mxu0 }
 0x8c1   :  { %1903 = vst [vmem:[%s3455_s6 + $0x8] sm:$0xff] %v1899_v57 }

// kernel: lstm_forward.2
= control target key start
LH: loop header
LB: loop body
LE: loop exit
PB: predicated region body
PF: predicated region fallthrough
CT: control target
= control target key end

     0   :  { %9 = vsyncpa [#allocation5], 0  ;;  %s2112_s15 = smov [#allocation4]   ;;  %s2980_s0 = inlined_call_operand.vmem [shape: f32[8,16,16], index: 0, kind: input, shape index: {}]   ;;  %s2981_s1 = inlined_call_operand.vmem [shape: bf16[16,512], index: 1, kind: input, shape index: {}]   ;;  %s2982_s2 = inlined_call_operand.hbm [shape: bf16[128,512], index: 2, kind: input, shape index: {}]   ;;  %s2983_s3 = inlined_call_operand.vmem [shape: f32[1,512], index: 3, kind: input, shape index: {}]   ;;  %s2984_s4 = inlined_call_operand.vmem [shape: bf16[8,16,128], index: 4, kind: output, shape index: {}]  }
   0x1   :  { %s19_s16 = sshll.u32 %s2112_s15, 4  ;;  %s20_s16 = int_to_ptr.vmem [resolvable:$true] %s19_s16 }
   0x2   :  { %s2098_s17 = scalar_lea.vmem %s20_s16, 4096  ;;  %p2103_p1 = scmp.lt.s32.totalorder %s20_s16, %s20_s16 }
   0x3   :  { %p2099_p0 = scmp.ne.s32.totalorder %s20_s16, %s2098_s17  ;;  %p2104_p2 = scmp.lt.s32.totalorder %s2098_s17, %s2098_s17 }
   0x5   :  { %p2105_p3 = por %p2104_p2, %p2103_p1 }
   0x7   :  { %p2106_p4 = pnand %p2105_p3, %p2099_p0 }
   0x9   :  { %2109 = shalt.err (!%p2106_p4)
}
   0xa   :  { %s2113_s18 = smov 256   ;;  %s2114_s19 = smov 16  }
   0xb   :  { %25 = dma.hbm_to_vmem [thread:$0]  %s2982_s2, 4096, %s20_s16, [#allocation5], %s2113_s18, %s2113_s18, %s2114_s19  }
   0xc   :  { %2110 = dma.done.wait [#allocation5], 4096  }
   0xd   :  { %2111 = vsyncadd [#allocation5], 4294963200  ;;  %v2985_v0 = vmov 0   ;;  %v1844_v1 = vld [vmem:[%s2981_s1 + $0x4] ss:$16 sps:$4 sm:$0xff]   ;;  %v77_v6 = vld [vmem:[%s2980_s0 + $0x8] sm:$0xff]  ;;  %v102_v62 = vlaneseq }
   0xe   :  { %199 = vmatprep.mubr.bf16.mxu0 %v2985_v0  ;;  %312 = vmatprep.mubr.bf16.mxu1 %v2985_v0  ;;  %v1846_v2 = vld [vmem:[%s2981_s1 + $0xc] ss:$16 sps:$4 sm:$0xff]   ;;  %v1848_v3 = vld [vmem:[%s2981_s1] ss:$16 sps:$4 sm:$0xff]   ;;  %v1849_v4 = vld [vmem:[%s2981_s1 + $0x8] ss:$16 sps:$4 sm:$0xff]  }
   0xf   :  { %181 = vmatprep.subr.bf16.mxu0 %v1844_v1  ;;  %v76_v5 = vld [vmem:[%s2980_s0] sm:$0xff]  ;;  %294 = vmatprep.subr.bf16.mxu1 %v1846_v2  ;;  %vm142_vm0 = vcmask 130048   ;;  %v2169_v10 = vld [vmem:[#allocation4 + $0xec] ss:$16 sps:$4 sm:$0xff]   ;;  %v2171_v11 = vld [vmem:[#allocation4 + $0xe8] ss:$16 sps:$4 sm:$0xff]  }
  0x10   :  { %182 = vmatpush1.bf16.msra.mxu0 %v1848_v3  ;;  %295 = vmatpush1.bf16.msra.mxu1 %v1849_v4  ;;  %v92_v7 = vpack.c.bf16 %v77_v6, %v76_v5  ;;  %v2165_v8 = vld [vmem:[#allocation4 + $0xe4] ss:$16 sps:$4 sm:$0xff]   ;;  %v2167_v9 = vld [vmem:[#allocation4 + $0xe0] ss:$16 sps:$4 sm:$0xff]   ;;  %v79_v13 = vld [vmem:[%s2980_s0 + $0x18] sm:$0xff]  ;;  %v2116_v61 = vmov 0.0|0.0  }
  0x11   :  { %558 = vmatprep.subr.bf16.mxu0 %v2165_v8  ;;  %v78_v12 = vld [vmem:[%s2980_s0 + $0x10] sm:$0xff]  ;;  %601 = vmatprep.subr.bf16.mxu1 %v2169_v10  ;;  %v2188_v16 = vld [vmem:[#allocation4 + $0xcc] ss:$16 sps:$4 sm:$0xff]   ;;  %v2192_v17 = vld [vmem:[#allocation4 + $0xc8] ss:$16 sps:$4 sm:$0xff]   ;;  %v103_v63 = vshrl.u32 %v102_v62, 7 }
  0x12   :  { %v2182_v14 = vld [vmem:[#allocation4 + $0xc4] ss:$16 sps:$4 sm:$0xff]   ;;  %v2184_v15 = vld [vmem:[#allocation4 + $0xc0] ss:$16 sps:$4 sm:$0xff]   ;;  %v93_v19 = vpack.c.bf16 %v79_v13, %v78_v12  ;;  %v2203_v21 = vld [vmem:[#allocation4 + $0xac] ss:$16 sps:$4 sm:$0xff]  }
  0x13   :  { %1698 = vmatmul.mubr.msk.bf16.vlgmr.msra.gmra.mxu0 %vm142_vm0, %v92_v7  ;;  %1706 = vmatmul.mubr.msk.bf16.vlgmr.msra.gmra.mxu1 %vm142_vm0, %v92_v7  ;;  %v2196_v18 = vld [vmem:[#allocation4 + $0xa4] ss:$16 sps:$4 sm:$0xff]   ;;  %v2200_v20 = vld [vmem:[#allocation4 + $0xa0] ss:$16 sps:$4 sm:$0xff]   ;;  %v2206_v22 = vld [vmem:[#allocation4 + $0xa8] ss:$16 sps:$4 sm:$0xff]  }
  0x14   :  { %559 = vmatpush1.bf16.msra.mxu0 %v2167_v9  ;;  %209 = vmatprep.mubr.bf16.mxu0 %v2985_v0  ;;  %v2208_v23 = vld [vmem:[#allocation4 + $0x84] ss:$16 sps:$4 sm:$0xff]   ;;  %v2212_v24 = vld [vmem:[#allocation4 + $0x8c] ss:$16 sps:$4 sm:$0xff]   ;;  %v2224_v27 = vld [vmem:[#allocation4 + $0x80] ss:$16 sps:$4 sm:$0xff]  }
  0x15   :  { %322 = vmatprep.mubr.bf16.mxu1 %v2985_v0  ;;  %602 = vmatpush1.bf16.msra.mxu1 %v2171_v11  ;;  %v80_v25 = vld [vmem:[%s2980_s0 + $0x20] sm:$0xff]  ;;  %v81_v26 = vld [vmem:[%s2980_s0 + $0x28] sm:$0xff]  ;;  %v82_v36 = vld [vmem:[%s2980_s0 + $0x30] sm:$0xff]  ;;  %v104_v5 = vsub.s32 0, %v103_v63  ;;  %v112_v6 = vsub.s32 2, %v103_v63 }
  0x16   :  { %560 = vmatprep.subr.bf16.mxu0 %v2182_v14  ;;  %603 = vmatprep.subr.bf16.mxu1 %v2188_v16  ;;  %v2226_v28 = vld [vmem:[#allocation4 + $0x88] ss:$16 sps:$4 sm:$0xff]   ;;  %v2230_v29 = vld [vmem:[#allocation4 + $0x64] ss:$16 sps:$4 sm:$0xff]   ;;  %v94_v30 = vpack.c.bf16 %v81_v26, %v80_v25  ;;  %v2233_v31 = vld [vmem:[#allocation4 + $0x60] ss:$16 sps:$4 sm:$0xff]  }
  0x17   :  { %v2236_v32 = vld [vmem:[#allocation4 + $0x6c] ss:$16 sps:$4 sm:$0xff]   ;;  %v2240_v33 = vld [vmem:[#allocation4 + $0x68] ss:$16 sps:$4 sm:$0xff]   ;;  %v2242_v34 = vld [vmem:[#allocation4 + $0x44] ss:$16 sps:$4 sm:$0xff]  }
  0x18   :  { %561 = vmatpush1.bf16.msra.mxu0 %v2184_v15  ;;  %v2246_v35 = vld [vmem:[#allocation4 + $0x4c] ss:$16 sps:$4 sm:$0xff]   ;;  %v2258_v38 = vld [vmem:[#allocation4 + $0x40] ss:$16 sps:$4 sm:$0xff]   ;;  %v2262_v39 = vld [vmem:[#allocation4 + $0x48] ss:$16 sps:$4 sm:$0xff]  }
  0x19   :  { %562 = vmatprep.subr.bf16.mxu0 %v2196_v18  ;;  %604 = vmatpush1.bf16.msra.mxu1 %v2192_v17  ;;  %v83_v37 = vld [vmem:[%s2980_s0 + $0x38] sm:$0xff]  ;;  %v2264_v40 = vld [vmem:[#allocation4 + $0x24] ss:$16 sps:$4 sm:$0xff]   ;;  %v2268_v42 = vld [vmem:[#allocation4 + $0x20] ss:$16 sps:$4 sm:$0xff]   ;;  %v116_v25 = vsub.s32 3, %v103_v63 }
  0x1a   :  { %605 = vmatprep.subr.bf16.mxu1 %v2203_v21  ;;  %v95_v41 = vpack.c.bf16 %v83_v37, %v82_v36  ;;  %v2270_v43 = vld [vmem:[#allocation4 + $0x2c] ss:$16 sps:$4 sm:$0xff]   ;;  %v2274_v44 = vld [vmem:[#allocation4 + $0x28] ss:$16 sps:$4 sm:$0xff]   ;;  %v2276_v45 = vld [vmem:[#allocation4 + $0x4] ss:$16 sps:$4 sm:$0xff]  }
  0x1b   :  { %1699 = vmatmul.mubr.msk.bf16.gmra.mxu0 %vm142_vm0, %v93_v19  ;;  %1707 = vmatmul.mubr.msk.bf16.gmra.mxu1 %vm142_vm0, %v93_v19  ;;  %v2280_v46 = vld [vmem:[#allocation4 + $0xc] ss:$16 sps:$4 sm:$0xff]   ;;  %v84_v47 = vld [vmem:[%s2980_s0 + $0x40] sm:$0xff]  ;;  %v2296_v50 = vld [vmem:[#allocation4 + $0x8] ss:$16 sps:$4 sm:$0xff]   ;;  %v108_v19 = vsub.s32 1, %v103_v63 }
  0x1c   :  { %219 = vmatprep.mubr.bf16.mxu0 %v2985_v0  ;;  %332 = vmatprep.mubr.bf16.mxu1 %v2985_v0  ;;  %v85_v48 = vld [vmem:[%s2980_s0 + $0x48] sm:$0xff]  ;;  %v2292_v49 = vld [vmem:[#allocation4] ss:$16 sps:$4 sm:$0xff]   ;;  %v87_v53 = vld [vmem:[%s2980_s0 + $0x58] sm:$0xff] }
  0x1d   :  { %563 = vmatpush1.bf16.msra.mxu0 %v2200_v20  ;;  %606 = vmatpush1.bf16.msra.mxu1 %v2206_v22  ;;  %v96_v51 = vpack.c.bf16 %v85_v48, %v84_v47  ;;  %v86_v52 = vld [vmem:[%s2980_s0 + $0x50] sm:$0xff]  ;;  %v88_v55 = vld [vmem:[%s2980_s0 + $0x60] sm:$0xff]  ;;  %v89_v56 = vld [vmem:[%s2980_s0 + $0x68] sm:$0xff] }
  0x1e   :  { %564 = vmatprep.subr.bf16.mxu0 %v2208_v23  ;;  %607 = vmatprep.subr.bf16.mxu1 %v2212_v24  ;;  %v97_v54 = vpack.c.bf16 %v87_v53, %v86_v52  ;;  %v98_v57 = vpack.c.bf16 %v89_v56, %v88_v55  ;;  %v90_v58 = vld [vmem:[%s2980_s0 + $0x70] sm:$0xff]  ;;  %v91_v59 = vld [vmem:[%s2980_s0 + $0x78] sm:$0xff]  ;;  %v100_v7 = vld [vmem:[%s2983_s3] sm:$0xf] }
  0x1f   :  { %v99_v60 = vpack.c.bf16 %v91_v59, %v90_v58  ;;  %v2390_v36 = vrot.slane %v100_v7, %v104_v5  ;;  %v2392_v37 = vrot.slane %v100_v7, %v112_v6  ;;  %v2394_v48 = vrot.slane %v100_v7, %v108_v19 }
  0x21   :  { %565 = vmatpush1.bf16.msra.mxu0 %v2224_v27  ;;  %608 = vmatpush1.bf16.msra.mxu1 %v2226_v28 }
  0x22   :  { %566 = vmatprep.subr.bf16.mxu0 %v2230_v29  ;;  %609 = vmatprep.subr.bf16.mxu1 %v2236_v32 }
  0x23   :  { %1700 = vmatmul.mubr.msk.bf16.gmra.mxu0 %vm142_vm0, %v94_v30  ;;  %1708 = vmatmul.mubr.msk.bf16.gmra.mxu1 %vm142_vm0, %v94_v30 }
  0x24   :  { %229 = vmatprep.mubr.bf16.mxu0 %v2985_v0  ;;  %342 = vmatprep.mubr.bf16.mxu1 %v2985_v0 }
  0x25   :  { %567 = vmatpush1.bf16.msra.mxu0 %v2233_v31  ;;  %610 = vmatpush1.bf16.msra.mxu1 %v2240_v33 }
  0x26   :  { %568 = vmatprep.subr.bf16.mxu0 %v2242_v34  ;;  %611 = vmatprep.subr.bf16.mxu1 %v2246_v35 }
  0x29   :  { %569 = vmatpush1.bf16.msra.mxu0 %v2258_v38  ;;  %612 = vmatpush1.bf16.msra.mxu1 %v2262_v39 }
  0x2a   :  { %570 = vmatprep.subr.bf16.mxu0 %v2264_v40  ;;  %613 = vmatprep.subr.bf16.mxu1 %v2270_v43 }
  0x2b   :  { %1701 = vmatmul.mubr.msk.bf16.gmra.mxu0 %vm142_vm0, %v95_v41  ;;  %1709 = vmatmul.mubr.msk.bf16.gmra.mxu1 %vm142_vm0, %v95_v41 }
  0x2c   :  { %239 = vmatprep.mubr.bf16.mxu0 %v2985_v0  ;;  %352 = vmatprep.mubr.bf16.mxu1 %v2985_v0 }
  0x2d   :  { %571 = vmatpush1.bf16.msra.mxu0 %v2268_v42  ;;  %614 = vmatpush1.bf16.msra.mxu1 %v2274_v44 }
  0x2e   :  { %572 = vmatprep.subr.bf16.mxu0 %v2276_v45  ;;  %615 = vmatprep.subr.bf16.mxu1 %v2280_v46 }
  0x31   :  { %573 = vmatpush1.bf16.msra.mxu0 %v2292_v49  ;;  %616 = vmatpush1.bf16.msra.mxu1 %v2296_v50 }
  0x32   :  { %698 = vmatprep.subr.bf16.mxu0 %v2165_v8  ;;  %741 = vmatprep.subr.bf16.mxu1 %v2169_v10 }
  0x33   :  { %1702 = vmatmul.mubr.msk.bf16.gmra.mxu0 %vm142_vm0, %v96_v51  ;;  %1710 = vmatmul.mubr.msk.bf16.gmra.mxu1 %vm142_vm0, %v96_v51  ;;  %v2396_v51 = vrot.slane %v100_v7, %v116_v25 }
  0x34   :  { %249 = vmatprep.mubr.bf16.mxu0 %v2985_v0  ;;  %362 = vmatprep.mubr.bf16.mxu1 %v2985_v0 }
  0x3b   :  { %1703 = vmatmul.mubr.msk.bf16.gmra.mxu0 %vm142_vm0, %v97_v54  ;;  %1711 = vmatmul.mubr.msk.bf16.gmra.mxu1 %vm142_vm0, %v97_v54 }
  0x3c   :  { %259 = vmatprep.mubr.bf16.mxu0 %v2985_v0  ;;  %372 = vmatprep.mubr.bf16.mxu1 %v2985_v0 }
  0x43   :  { %1704 = vmatmul.mubr.msk.bf16.gmra.mxu0 %vm142_vm0, %v98_v57  ;;  %1712 = vmatmul.mubr.msk.bf16.gmra.mxu1 %vm142_vm0, %v98_v57 }
  0x44   :  { %269 = vmatprep.mubr.bf16.mxu0 %v2985_v0  ;;  %382 = vmatprep.mubr.bf16.mxu1 %v2985_v0 }
  0x4b   :  { %1705 = vmatmul.mubr.msk.bf16.gmra.mxu0 %vm142_vm0, %v99_v60  ;;  %1713 = vmatmul.mubr.msk.bf16.gmra.mxu1 %vm142_vm0, %v99_v60 }
  0x4c   :  { %590 = vmatprep.mubr.bf16.mxu0 %v2985_v0  ;;  %633 = vmatprep.mubr.bf16.mxu1 %v2985_v0 }
  0x53   :  { %591 = vmatmul.mubr.bf16.vlgmr.msra.gmra.mxu0 %v2116_v61  ;;  %634 = vmatmul.mubr.bf16.vlgmr.msra.gmra.mxu1 %v2116_v61 }
  0x54   :  { %699 = vmatpush1.bf16.msra.mxu0 %v2167_v9  ;;  %742 = vmatpush1.bf16.msra.mxu1 %v2171_v11 }
  0x55   :  { %700 = vmatprep.subr.bf16.mxu0 %v2182_v14  ;;  %743 = vmatprep.subr.bf16.mxu1 %v2188_v16 }
  0x56   :  { %730 = vmatprep.mubr.bf16.mxu0 %v2985_v0  ;;  %773 = vmatprep.mubr.bf16.mxu1 %v2985_v0 }
  0x58   :  { %701 = vmatpush1.bf16.msra.mxu0 %v2184_v15  ;;  %744 = vmatpush1.bf16.msra.mxu1 %v2192_v17 }
  0x59   :  { %702 = vmatprep.subr.bf16.mxu0 %v2196_v18  ;;  %745 = vmatprep.subr.bf16.mxu1 %v2203_v21 }
  0x5c   :  { %703 = vmatpush1.bf16.msra.mxu0 %v2200_v20  ;;  %746 = vmatpush1.bf16.msra.mxu1 %v2206_v22 }
  0x5d   :  { %704 = vmatprep.subr.bf16.mxu0 %v2208_v23  ;;  %747 = vmatprep.subr.bf16.mxu1 %v2212_v24 }
  0x60   :  { %705 = vmatpush1.bf16.msra.mxu0 %v2224_v27  ;;  %748 = vmatpush1.bf16.msra.mxu1 %v2226_v28 }
  0x61   :  { %706 = vmatprep.subr.bf16.mxu0 %v2230_v29  ;;  %749 = vmatprep.subr.bf16.mxu1 %v2236_v32 }
  0x64   :  { %707 = vmatpush1.bf16.msra.mxu0 %v2233_v31  ;;  %750 = vmatpush1.bf16.msra.mxu1 %v2240_v33 }
  0x65   :  { %708 = vmatprep.subr.bf16.mxu0 %v2242_v34  ;;  %751 = vmatprep.subr.bf16.mxu1 %v2246_v35 }
  0x68   :  { %709 = vmatpush1.bf16.msra.mxu0 %v2258_v38  ;;  %752 = vmatpush1.bf16.msra.mxu1 %v2262_v39 }
  0x69   :  { %710 = vmatprep.subr.bf16.mxu0 %v2264_v40  ;;  %753 = vmatprep.subr.bf16.mxu1 %v2270_v43 }
  0x6c   :  { %711 = vmatpush1.bf16.msra.mxu0 %v2268_v42  ;;  %754 = vmatpush1.bf16.msra.mxu1 %v2274_v44 }
  0x6d   :  { %712 = vmatprep.subr.bf16.mxu0 %v2276_v45  ;;  %755 = vmatprep.subr.bf16.mxu1 %v2280_v46 }
  0x70   :  { %713 = vmatpush1.bf16.msra.mxu0 %v2292_v49  ;;  %756 = vmatpush1.bf16.msra.mxu1 %v2296_v50 }
  0x71   :  { %839 = vmatprep.subr.bf16.mxu0 %v2165_v8  ;;  %882 = vmatprep.subr.bf16.mxu1 %v2169_v10 }
  0xd3   :  { %v2371_v1 = vpop.f32.mrf.mxu0  ;;  %v2373_v2 = vpop.f32.mrf.mxu1 }
  0xd5   :  { %v2375_v3 = vpop.f32.mrf.mxu0  ;;  %v2377_v4 = vpop.f32.mrf.mxu1 }
  0xd7   :  { %v2382_v12 = vpop.f32.mrf.mxu0  ;;  %v2384_v13 = vpop.f32.mrf.mxu1 }
  0xd9   :  { %v2386_v26 = vpop.f32.mrf.mxu0  ;;  %v2388_v30 = vpop.f32.mrf.mxu1 }
  0xdb   :  { %v211_v41 = vpop.f32.mrf.mxu0  ;;  %v324_v47 = vpop.f32.mrf.mxu1 }
  0xdc   :  { %v2399_v52 = vadd.f32 %v211_v41, %v2390_v36  ;;  %v2402_v53 = vadd.f32 %v324_v47, %v2392_v37 }
  0xdd   :  { %v213_v54 = vpop.f32.mrf.mxu0  ;;  %v326_v55 = vpop.f32.mrf.mxu1 }
  0xde   :  { %2987 = vst [vmem:[#allocation7_spill] sm:$0xff] %v2402_v53  ;;  %v2405_v56 = vadd.f32 %v213_v54, %v2394_v48  ;;  %v2408_v57 = vadd.f32 %v326_v55, %v2396_v51 }
  0xdf   :  { %v215_v58 = vpop.f32.mrf.mxu0  ;;  %v328_v59 = vpop.f32.mrf.mxu1 }
  0xe0   :  { %v2411_v60 = vadd.f32 %v215_v58, %v2390_v36  ;;  %v2414_v61 = vadd.f32 %v328_v59, %v2392_v37 }
  0xe1   :  { %v217_v62 = vpop.f32.mrf.mxu0  ;;  %v330_v63 = vpop.f32.mrf.mxu1 }
  0xe2   :  { %2988 = vst [vmem:[#allocation8_spill] sm:$0xff] %v2414_v61  ;;  %v2417_v5 = vadd.f32 %v217_v62, %v2394_v48  ;;  %v2420_v6 = vadd.f32 %v330_v63, %v2396_v51 }
  0xe3   :  { %v221_v7 = vpop.f32.mrf.mxu0  ;;  %v334_v19 = vpop.f32.mrf.mxu1 }
  0xe4   :  { %2989 = vst [vmem:[#allocation9_spill] sm:$0xff] %v2417_v5  ;;  %2990 = vst [vmem:[#allocation10_spill] sm:$0xff] %v2420_v6  ;;  %v2423_v25 = vadd.f32 %v221_v7, %v2390_v36  ;;  %v2426_v41 = vadd.f32 %v334_v19, %v2392_v37 }
  0xe5   :  { %v223_v47 = vpop.f32.mrf.mxu0  ;;  %v336_v54 = vpop.f32.mrf.mxu1 }
  0xe6   :  { %2991 = vst [vmem:[#allocation11_spill] sm:$0xff] %v2423_v25  ;;  %2992 = vst [vmem:[#allocation12_spill] sm:$0xff] %v2426_v41  ;;  %v2429_v55 = vadd.f32 %v223_v47, %v2394_v48  ;;  %v2432_v58 = vadd.f32 %v336_v54, %v2396_v51 }
  0xe7   :  { %v225_v59 = vpop.f32.mrf.mxu0  ;;  %v338_v62 = vpop.f32.mrf.mxu1 }
  0xe8   :  { %2993 = vst [vmem:[#allocation13_spill] sm:$0xff] %v2429_v55  ;;  %2994 = vst [vmem:[#allocation14_spill] sm:$0xff] %v2432_v58  ;;  %v2435_v63 = vadd.f32 %v225_v59, %v2390_v36  ;;  %v2438_v0 = vadd.f32 %v338_v62, %v2392_v37 }
  0xe9   :  { %v227_v7 = vpop.f32.mrf.mxu0  ;;  %v340_v25 = vpop.f32.mrf.mxu1 }
  0xea   :  { %2995 = vst [vmem:[#allocation15_spill] sm:$0xff] %v2435_v63  ;;  %2996 = vst [vmem:[#allocation16_spill] sm:$0xff] %v2438_v0  ;;  %v2441_v19 = vadd.f32 %v227_v7, %v2394_v48  ;;  %v2444_v41 = vadd.f32 %v340_v25, %v2396_v51 }
  0xeb   :  { %v231_v47 = vpop.f32.mrf.mxu0  ;;  %v344_v55 = vpop.f32.mrf.mxu1 }
  0xec   :  { %2997 = vst [vmem:[#allocation17_spill] sm:$0xff] %v2441_v19  ;;  %2998 = vst [vmem:[#allocation18_spill] sm:$0xff] %v2444_v41  ;;  %v2447_v54 = vadd.f32 %v231_v47, %v2390_v36  ;;  %v2450_v58 = vadd.f32 %v344_v55, %v2392_v37 }
  0xed   :  { %v233_v59 = vpop.f32.mrf.mxu0  ;;  %v346_v63 = vpop.f32.mrf.mxu1 }
  0xee   :  { %2999 = vst [vmem:[#allocation19_spill] sm:$0xff] %v2447_v54  ;;  %3000 = vst [vmem:[#allocation20_spill] sm:$0xff] %v2450_v58  ;;  %v2453_v62 = vadd.f32 %v233_v59, %v2394_v48  ;;  %v2456_v0 = vadd.f32 %v346_v63, %v2396_v51 }
  0xef   :  { %v235_v7 = vpop.f32.mrf.mxu0  ;;  %v348_v19 = vpop.f32.mrf.mxu1 }
  0xf0   :  { %3001 = vst [vmem:[#allocation21_spill] sm:$0xff] %v2453_v62  ;;  %3002 = vst [vmem:[#allocation22_spill] sm:$0xff] %v2456_v0  ;;  %v2459_v25 = vadd.f32 %v235_v7, %v2390_v36  ;;  %v2462_v41 = vadd.f32 %v348_v19, %v2392_v37 }
  0xf1   :  { %v237_v47 = vpop.f32.mrf.mxu0  ;;  %v350_v54 = vpop.f32.mrf.mxu1 }
  0xf2   :  { %3003 = vst [vmem:[#allocation23_spill] sm:$0xff] %v2459_v25  ;;  %3004 = vst [vmem:[#allocation24_spill] sm:$0xff] %v2462_v41  ;;  %v2465_v55 = vadd.f32 %v237_v47, %v2394_v48  ;;  %v2468_v58 = vadd.f32 %v350_v54, %v2396_v51 }
  0xf3   :  { %v241_v59 = vpop.f32.mrf.mxu0  ;;  %v354_v62 = vpop.f32.mrf.mxu1 }
  0xf4   :  { %3005 = vst [vmem:[#allocation25_spill] sm:$0xff] %v2465_v55  ;;  %3006 = vst [vmem:[#allocation26_spill] sm:$0xff] %v2468_v58  ;;  %v2471_v63 = vadd.f32 %v241_v59, %v2390_v36  ;;  %v2474_v0 = vadd.f32 %v354_v62, %v2392_v37 }
  0xf5   :  { %v243_v7 = vpop.f32.mrf.mxu0  ;;  %v356_v25 = vpop.f32.mrf.mxu1 }
  0xf6   :  { %3007 = vst [vmem:[#allocation27_spill] sm:$0xff] %v2471_v63  ;;  %3008 = vst [vmem:[#allocation28_spill] sm:$0xff] %v2474_v0  ;;  %v2477_v19 = vadd.f32 %v243_v7, %v2394_v48  ;;  %v2480_v41 = vadd.f32 %v356_v25, %v2396_v51 }
  0xf7   :  { %v245_v47 = vpop.f32.mrf.mxu0  ;;  %v358_v55 = vpop.f32.mrf.mxu1 }
  0xf8   :  { %3009 = vst [vmem:[#allocation29_spill] sm:$0xff] %v2477_v19  ;;  %3010 = vst [vmem:[#allocation30_spill] sm:$0xff] %v2480_v41  ;;  %v2483_v54 = vadd.f32 %v245_v47, %v2390_v36  ;;  %v2486_v58 = vadd.f32 %v358_v55, %v2392_v37 }
  0xf9   :  { %v247_v59 = vpop.f32.mrf.mxu0  ;;  %v360_v63 = vpop.f32.mrf.mxu1 }
  0xfa   :  { %3011 = vst [vmem:[#allocation31_spill] sm:$0xff] %v2483_v54  ;;  %3012 = vst [vmem:[#allocation32_spill] sm:$0xff] %v2486_v58  ;;  %v2489_v62 = vadd.f32 %v247_v59, %v2394_v48  ;;  %v2492_v0 = vadd.f32 %v360_v63, %v2396_v51 }
  0xfb   :  { %v251_v7 = vpop.f32.mrf.mxu0  ;;  %v364_v19 = vpop.f32.mrf.mxu1 }
  0xfc   :  { %3013 = vst [vmem:[#allocation33_spill] sm:$0xff] %v2489_v62  ;;  %3014 = vst [vmem:[#allocation34_spill] sm:$0xff] %v2492_v0  ;;  %v2495_v25 = vadd.f32 %v251_v7, %v2390_v36  ;;  %v2498_v41 = vadd.f32 %v364_v19, %v2392_v37 }
  0xfd   :  { %v253_v47 = vpop.f32.mrf.mxu0  ;;  %v366_v54 = vpop.f32.mrf.mxu1 }
  0xfe   :  { %3015 = vst [vmem:[#allocation35_spill] sm:$0xff] %v2495_v25  ;;  %3016 = vst [vmem:[#allocation36_spill] sm:$0xff] %v2498_v41  ;;  %v2501_v55 = vadd.f32 %v253_v47, %v2394_v48  ;;  %v2504_v58 = vadd.f32 %v366_v54, %v2396_v51 }
  0xff   :  { %v255_v59 = vpop.f32.mrf.mxu0  ;;  %v368_v62 = vpop.f32.mrf.mxu1 }
 0x100   :  { %3017 = vst [vmem:[#allocation37_spill] sm:$0xff] %v2501_v55  ;;  %3018 = vst [vmem:[#allocation38_spill] sm:$0xff] %v2504_v58  ;;  %v2507_v63 = vadd.f32 %v255_v59, %v2390_v36  ;;  %v2510_v0 = vadd.f32 %v368_v62, %v2392_v37 }
 0x101   :  { %v257_v7 = vpop.f32.mrf.mxu0  ;;  %v370_v25 = vpop.f32.mrf.mxu1 }
 0x102   :  { %3019 = vst [vmem:[#allocation39_spill] sm:$0xff] %v2507_v63  ;;  %3020 = vst [vmem:[#allocation40_spill] sm:$0xff] %v2510_v0  ;;  %v2513_v19 = vadd.f32 %v257_v7, %v2394_v48  ;;  %v2516_v41 = vadd.f32 %v370_v25, %v2396_v51 }
 0x103   :  { %v261_v47 = vpop.f32.mrf.mxu0  ;;  %v374_v55 = vpop.f32.mrf.mxu1 }
 0x104   :  { %3021 = vst [vmem:[#allocation41_spill] sm:$0xff] %v2513_v19  ;;  %3022 = vst [vmem:[#allocation42_spill] sm:$0xff] %v2516_v41  ;;  %v2519_v54 = vadd.f32 %v261_v47, %v2390_v36  ;;  %v2522_v58 = vadd.f32 %v374_v55, %v2392_v37 }
 0x105   :  { %v263_v59 = vpop.f32.mrf.mxu0  ;;  %v376_v63 = vpop.f32.mrf.mxu1 }
 0x106   :  { %3023 = vst [vmem:[#allocation43_spill] sm:$0xff] %v2519_v54  ;;  %3024 = vst [vmem:[#allocation44_spill] sm:$0xff] %v2522_v58  ;;  %v2525_v62 = vadd.f32 %v263_v59, %v2394_v48  ;;  %v2528_v0 = vadd.f32 %v376_v63, %v2396_v51 }
 0x107   :  { %v265_v7 = vpop.f32.mrf.mxu0  ;;  %v378_v19 = vpop.f32.mrf.mxu1 }
 0x108   :  { %3025 = vst [vmem:[#allocation45_spill] sm:$0xff] %v2525_v62  ;;  %3026 = vst [vmem:[#allocation46_spill] sm:$0xff] %v2528_v0  ;;  %v2531_v25 = vadd.f32 %v265_v7, %v2390_v36  ;;  %v2534_v41 = vadd.f32 %v378_v19, %v2392_v37 }
 0x109   :  { %v267_v47 = vpop.f32.mrf.mxu0  ;;  %v380_v54 = vpop.f32.mrf.mxu1 }
 0x10a   :  { %3027 = vst [vmem:[#allocation47_spill] sm:$0xff] %v2531_v25  ;;  %3028 = vst [vmem:[#allocation48_spill] sm:$0xff] %v2534_v41  ;;  %v2537_v55 = vadd.f32 %v267_v47, %v2394_v48  ;;  %v2540_v58 = vadd.f32 %v380_v54, %v2396_v51 }
 0x10b   :  { %v271_v59 = vpop.f32.mrf.mxu0  ;;  %v384_v62 = vpop.f32.mrf.mxu1 }
 0x10c   :  { %3029 = vst [vmem:[#allocation49_spill] sm:$0xff] %v2537_v55  ;;  %3030 = vst [vmem:[#allocation50_spill] sm:$0xff] %v2540_v58  ;;  %v2543_v63 = vadd.f32 %v271_v59, %v2390_v36  ;;  %v2546_v0 = vadd.f32 %v384_v62, %v2392_v37  ;;  %v202_v62 = vadd.f32 %v2371_v1, %v2390_v36 }
 0x10d   :  { %v273_v7 = vpop.f32.mrf.mxu0  ;;  %v386_v25 = vpop.f32.mrf.mxu1  ;;  %v206_v1 = vadd.f32 %v2382_v12, %v2390_v36  ;;  %v321_v12 = vadd.f32 %v2388_v30, %v2396_v51 }
 0x10e   :  { %3031 = vst [vmem:[#allocation51_spill] sm:$0xff] %v2543_v63  ;;  %3032 = vst [vmem:[#allocation52_spill] sm:$0xff] %v2546_v0  ;;  %v2549_v19 = vadd.f32 %v273_v7, %v2394_v48  ;;  %v2552_v41 = vadd.f32 %v386_v25, %v2396_v51 }
 0x10f   :  { %v275_v47 = vpop.f32.mrf.mxu0  ;;  %v388_v55 = vpop.f32.mrf.mxu1 }
 0x110   :  { %3033 = vst [vmem:[#allocation53_spill] sm:$0xff] %v2549_v19  ;;  %3034 = vst [vmem:[#allocation54_spill] sm:$0xff] %v2552_v41  ;;  %v2555_v54 = vadd.f32 %v275_v47, %v2390_v36  ;;  %v2558_v58 = vadd.f32 %v388_v55, %v2392_v37  ;;  %v204_v47 = vadd.f32 %v2375_v3, %v2394_v48 }
 0x111   :  { %v277_v59 = vpop.f32.mrf.mxu0  ;;  %v390_v63 = vpop.f32.mrf.mxu1  ;;  %v317_v55 = vadd.f32 %v2377_v4, %v2396_v51 }
 0x112   :  { %3035 = vst [vmem:[#allocation55_spill] sm:$0xff] %v2555_v54  ;;  %3036 = vst [vmem:[#allocation56_spill] sm:$0xff] %v2558_v58  ;;  %v2563_v0 = vadd.f32 %v277_v59, %v2394_v48  ;;  %v2566_v7 = vadd.f32 %v390_v63, %v2396_v51 }
 0x113   :  { %v592_v25 = vpop.f32.mrf.mxu0  ;;  %v635_v41 = vpop.f32.mrf.mxu1 }
 0x114   :  { %3037 = vst [vmem:[#allocation57_spill] sm:$0xff] %v2563_v0  ;;  %3038 = vst [vmem:[#allocation58_spill] sm:$0xff] %v2566_v7  ;;  %v644_v54 = vadd.f32 %v592_v25, %v202_v62  ;;  %v208_v7 = vadd.f32 %v2386_v26, %v2394_v48  ;;  %v319_v26 = vadd.f32 %v2384_v13, %v2392_v37 }
 0x115   :  { %v594_v58 = vpop.f32.mrf.mxu0  ;;  %v637_v19 = vpop.f32.mrf.mxu1 }
 0x116   :  { %v652_v61 = vmul.f32 0.5, %v644_v54  ;;  %v645_v59 = vadd.f32 %v594_v58, %v204_v47  ;;  %v647_v0 = vadd.f32 %v637_v19, %v317_v55  ;;  %v315_v19 = vadd.f32 %v2373_v2, %v2392_v37 }
 0x117   :  { %v596_v53 = vpop.f32.mrf.mxu0  ;;  %v639_v63 = vpop.f32.mrf.mxu1 }
 0x118   :  { %1898 = vtanh.f32 %v652_v61  ;;  %v653_v6 = vmul.f32 0.5, %v645_v59  ;;  %v648_v3 = vadd.f32 %v596_v53, %v206_v1  ;;  %v646_v48 = vadd.f32 %v635_v41, %v315_v19 }
 0x119   :  { %v598_v62 = vpop.f32.mrf.mxu0  ;;  %v641_v5 = vpop.f32.mrf.mxu1  ;;  %v650_v53 = vadd.f32 %v639_v63, %v319_v26 }
 0x11a   :  { %1900 = vtanh.f32 %v653_v6  ;;  %v655_v25 = vmul.f32 0.5, %v648_v3  ;;  %v649_v4 = vadd.f32 %v598_v62, %v208_v7  ;;  %v651_v58 = vadd.f32 %v641_v5, %v321_v12 }
 0x11b   :  { %1902 = vtanh.f32 %v647_v0  ;;  %v654_v54 = vmul.f32 0.5, %v646_v48  ;;  %v657_v51 = vmul.f32 0.5, %v650_v53 }
 0x11c   :  { %1904 = vtanh.f32 %v655_v25  ;;  %v656_v36 = vmul.f32 0.5, %v649_v4 }
 0x11e   :  { %1906 = vtanh.f32 %v656_v36 }
 0x11f   :  { %1908 = vtanh.f32 %v651_v58 }
 0x120   :  { %1910 = vtanh.f32 %v654_v54 }
 0x121   :  { %1912 = vtanh.f32 %v657_v51 }
 0x125   :  { %v1899_v61 = vpop.eup %1898 }
 0x126   :  { %v664_v6 = vmul.f32 0.5, %v1899_v61 }
 0x127   :  { %v1901_v0 = vpop.eup %1900 }
 0x128   :  { %v1903_v7 = vpop.eup %1902  ;;  %v670_v47 = vadd.f32 0.5, %v664_v6  ;;  %v665_v30 = vmul.f32 0.5, %v1901_v0 }
 0x129   :  { %v1905_v55 = vpop.eup %1904 }
 0x12a   :  { %v671_v1 = vadd.f32 0.5, %v665_v30  ;;  %v680_v5 = vmul.f32 %v1903_v7, %v670_v47  ;;  %v667_v59 = vmul.f32 0.5, %v1905_v55  ;;  %v3039_v47 = vmov 0  }
 0x12b   :  { %v1907_v3 = vpop.eup %1906 }
 0x12c   :  { %v678_v2 = vmul.f32 0.0, %v671_v1  ;;  %v673_v62 = vadd.f32 0.5, %v667_v59  ;;  %v668_v13 = vmul.f32 0.5, %v1907_v3  ;;  %v1909_v63 = vpop.eup %1908 }
 0x12d   :  { %v1911_v36 = vpop.eup %1910 }
 0x12e   :  { %v2582_v37 = vadd.f32 %v680_v5, %v678_v2  ;;  %v674_v41 = vadd.f32 0.5, %v668_v13  ;;  %v681_v4 = vmul.f32 %v1909_v63, %v673_v62  ;;  %v1913_v58 = vpop.eup %1912  ;;  %v666_v19 = vmul.f32 0.5, %v1911_v36 }
 0x12f   :  { %v669_v26 = vmul.f32 0.5, %v1913_v58  ;;  %v3041_v58 = vld [vmem:[#allocation10_spill] sm:$0xff] }
 0x130   :  { %v679_v25 = vmul.f32 0.0, %v674_v41  ;;  %1914 = vtanh.f32 %v2582_v37  ;;  %v672_v53 = vadd.f32 0.5, %v666_v19 }
 0x131   :  { %v675_v61 = vadd.f32 0.5, %v669_v26  ;;  %v3043_v26 = vld [vmem:[#allocation8_spill] sm:$0xff] }
 0x132   :  { %v2585_v12 = vadd.f32 %v681_v4, %v679_v25  ;;  %v3040_v4 = vld [vmem:[#allocation9_spill] sm:$0xff] }
 0x134   :  { %1916 = vtanh.f32 %v2585_v12 }
 0x13d   :  { %v1915_v48 = vpop.eup %1914 }
 0x13e   :  { %v686_v0 = vmul.f32 %v1915_v48, %v672_v53 }
 0x141   :  { %v1917_v6 = vpop.eup %1916 }
 0x142   :  { %v687_v54 = vmul.f32 %v1917_v6, %v675_v61 }
 0x144   :  { %v688_v7 = vpack.c.bf16 %v687_v54, %v686_v0 }
 0x146   :  { %1796 = vst [vmem:[%s2984_s4] sm:$0xff] %v688_v7   ;;  %731 = vmatmul.mubr.bf16.vlgmr.msra.gmra.mxu0 %v688_v7  ;;  %774 = vmatmul.mubr.bf16.vlgmr.msra.gmra.mxu1 %v688_v7 }
 0x147   :  { %840 = vmatpush1.bf16.msra.mxu0 %v2167_v9  ;;  %883 = vmatpush1.bf16.msra.mxu1 %v2171_v11 }
 0x148   :  { %841 = vmatprep.subr.bf16.mxu0 %v2182_v14  ;;  %884 = vmatprep.subr.bf16.mxu1 %v2188_v16 }
 0x149   :  { %871 = vmatprep.mubr.bf16.mxu0 %v3039_v47  ;;  %914 = vmatprep.mubr.bf16.mxu1 %v3039_v47 }
 0x14b   :  { %842 = vmatpush1.bf16.msra.mxu0 %v2184_v15  ;;  %885 = vmatpush1.bf16.msra.mxu1 %v2192_v17 }
 0x14c   :  { %843 = vmatprep.subr.bf16.mxu0 %v2196_v18  ;;  %886 = vmatprep.subr.bf16.mxu1 %v2203_v21 }
 0x14f   :  { %844 = vmatpush1.bf16.msra.mxu0 %v2200_v20  ;;  %887 = vmatpush1.bf16.msra.mxu1 %v2206_v22 }
 0x150   :  { %845 = vmatprep.subr.bf16.mxu0 %v2208_v23  ;;  %888 = vmatprep.subr.bf16.mxu1 %v2212_v24 }
 0x153   :  { %846 = vmatpush1.bf16.msra.mxu0 %v2224_v27  ;;  %889 = vmatpush1.bf16.msra.mxu1 %v2226_v28 }
 0x154   :  { %847 = vmatprep.subr.bf16.mxu0 %v2230_v29  ;;  %890 = vmatprep.subr.bf16.mxu1 %v2236_v32 }
 0x157   :  { %848 = vmatpush1.bf16.msra.mxu0 %v2233_v31  ;;  %891 = vmatpush1.bf16.msra.mxu1 %v2240_v33 }
 0x158   :  { %849 = vmatprep.subr.bf16.mxu0 %v2242_v34  ;;  %892 = vmatprep.subr.bf16.mxu1 %v2246_v35 }
 0x15b   :  { %850 = vmatpush1.bf16.msra.mxu0 %v2258_v38  ;;  %893 = vmatpush1.bf16.msra.mxu1 %v2262_v39 }
 0x15c   :  { %851 = vmatprep.subr.bf16.mxu0 %v2264_v40  ;;  %894 = vmatprep.subr.bf16.mxu1 %v2270_v43 }
 0x15f   :  { %852 = vmatpush1.bf16.msra.mxu0 %v2268_v42  ;;  %895 = vmatpush1.bf16.msra.mxu1 %v2274_v44 }
 0x160   :  { %853 = vmatprep.subr.bf16.mxu0 %v2276_v45  ;;  %896 = vmatprep.subr.bf16.mxu1 %v2280_v46 }
 0x163   :  { %854 = vmatpush1.bf16.msra.mxu0 %v2292_v49  ;;  %897 = vmatpush1.bf16.msra.mxu1 %v2296_v50 }
 0x164   :  { %980 = vmatprep.subr.bf16.mxu0 %v2165_v8  ;;  %1023 = vmatprep.subr.bf16.mxu1 %v2169_v10 }
 0x206   :  { %v732_v30 = vpop.f32.mrf.mxu0  ;;  %v775_v51 = vpop.f32.mrf.mxu1 }
 0x207   :  { %v784_v55 = vadd.f32 %v732_v30, %v2399_v52 }
 0x208   :  { %v734_v1 = vpop.f32.mrf.mxu0  ;;  %v777_v5 = vpop.f32.mrf.mxu1 }
 0x209   :  { %v792_v59 = vmul.f32 0.5, %v784_v55  ;;  %v785_v3 = vadd.f32 %v734_v1, %v2405_v56  ;;  %v787_v2 = vadd.f32 %v777_v5, %v2408_v57  ;;  %v3042_v56 = vld [vmem:[#allocation7_spill] sm:$0xff] }
 0x20a   :  { %v736_v62 = vpop.f32.mrf.mxu0  ;;  %v779_v13 = vpop.f32.mrf.mxu1  ;;  %v786_v57 = vadd.f32 %v775_v51, %v3042_v56 }
 0x20b   :  { %1918 = vtanh.f32 %v792_v59  ;;  %v793_v41 = vmul.f32 0.5, %v785_v3  ;;  %v788_v63 = vadd.f32 %v736_v62, %v2411_v60  ;;  %v790_v48 = vadd.f32 %v779_v13, %v3043_v26 }
 0x20c   :  { %v738_v8 = vpop.f32.mrf.mxu0  ;;  %v781_v25 = vpop.f32.mrf.mxu1  ;;  %v794_v6 = vmul.f32 0.5, %v786_v57 }
 0x20d   :  { %1920 = vtanh.f32 %v793_v41  ;;  %v795_v10 = vmul.f32 0.5, %v788_v63  ;;  %v789_v36 = vadd.f32 %v738_v8, %v3040_v4  ;;  %v791_v19 = vadd.f32 %v781_v25, %v3041_v58 }
 0x20e   :  { %1922 = vtanh.f32 %v787_v2  ;;  %v797_v30 = vmul.f32 0.5, %v790_v48 }
 0x20f   :  { %1924 = vtanh.f32 %v795_v10  ;;  %v796_v52 = vmul.f32 0.5, %v789_v36 }
 0x211   :  { %1926 = vtanh.f32 %v796_v52 }
 0x212   :  { %1928 = vtanh.f32 %v791_v19 }
 0x213   :  { %1930 = vtanh.f32 %v794_v6 }
 0x214   :  { %1932 = vtanh.f32 %v797_v30 }
 0x218   :  { %v1919_v53 = vpop.eup %1918 }
 0x219   :  { %v804_v61 = vmul.f32 0.5, %v1919_v53 }
 0x21a   :  { %v1921_v60 = vpop.eup %1920 }
 0x21b   :  { %v1923_v0 = vpop.eup %1922  ;;  %v810_v54 = vadd.f32 0.5, %v804_v61  ;;  %v805_v7 = vmul.f32 0.5, %v1921_v60 }
 0x21c   :  { %v1925_v55 = vpop.eup %1924 }
 0x21d   :  { %v811_v1 = vadd.f32 0.5, %v805_v7  ;;  %v820_v5 = vmul.f32 %v1923_v0, %v810_v54  ;;  %v807_v59 = vmul.f32 0.5, %v1925_v55 }
 0x21e   :  { %v1927_v3 = vpop.eup %1926 }
 0x21f   :  { %v818_v2 = vmul.f32 %v811_v1, %v2582_v37  ;;  %v813_v62 = vadd.f32 0.5, %v807_v59  ;;  %v808_v51 = vmul.f32 0.5, %v1927_v3  ;;  %v1929_v13 = vpop.eup %1928 }
 0x220   :  { %v1931_v4 = vpop.eup %1930 }
 0x221   :  { %v2634_v41 = vadd.f32 %v820_v5, %v818_v2  ;;  %v814_v63 = vadd.f32 0.5, %v808_v51  ;;  %v821_v8 = vmul.f32 %v1929_v13, %v813_v62  ;;  %v1933_v36 = vpop.eup %1932  ;;  %v806_v52 = vmul.f32 0.5, %v1931_v4 }
 0x222   :  { %v809_v37 = vmul.f32 0.5, %v1933_v36 }
 0x223   :  { %v819_v25 = vmul.f32 %v814_v63, %v2585_v12  ;;  %1934 = vtanh.f32 %v2634_v41  ;;  %v812_v19 = vadd.f32 0.5, %v806_v52  ;;  %v3051_v12 = vld [vmem:[#allocation16_spill] sm:$0xff] }
 0x224   :  { %v815_v56 = vadd.f32 0.5, %v809_v37 }
 0x225   :  { %v2638_v10 = vadd.f32 %v821_v8, %v819_v25 }
 0x227   :  { %1936 = vtanh.f32 %v2638_v10 }
 0x230   :  { %v1935_v58 = vpop.eup %1934 }
 0x231   :  { %v826_v26 = vmul.f32 %v1935_v58, %v812_v19 }
 0x234   :  { %v1937_v57 = vpop.eup %1936 }
 0x235   :  { %v827_v48 = vmul.f32 %v1937_v57, %v815_v56 }
 0x237   :  { %v828_v53 = vpack.c.bf16 %v827_v48, %v826_v26 }
 0x239   :  { %1832 = vst [vmem:[%s2984_s4 + $0x8] sm:$0xff] %v828_v53   ;;  %872 = vmatmul.mubr.bf16.vlgmr.msra.gmra.mxu0 %v828_v53  ;;  %915 = vmatmul.mubr.bf16.vlgmr.msra.gmra.mxu1 %v828_v53 }
 0x23a   :  { %981 = vmatpush1.bf16.msra.mxu0 %v2167_v9  ;;  %1024 = vmatpush1.bf16.msra.mxu1 %v2171_v11  ;;  %v2676_v9 = vld [vmem:[#allocation4 + $0xe4] ss:$16 sps:$4 sm:$0xff]   ;;  %v2679_v11 = vld [vmem:[#allocation4 + $0xec] ss:$16 sps:$4 sm:$0xff]  }
 0x23b   :  { %982 = vmatprep.subr.bf16.mxu0 %v2182_v14  ;;  %1025 = vmatprep.subr.bf16.mxu1 %v2188_v16  ;;  %v3044_v16 = vld [vmem:[#allocation11_spill] sm:$0xff] }
 0x23c   :  { %1012 = vmatprep.mubr.bf16.mxu0 %v3039_v47  ;;  %1055 = vmatprep.mubr.bf16.mxu1 %v3039_v47 }
 0x23e   :  { %983 = vmatpush1.bf16.msra.mxu0 %v2184_v15  ;;  %1026 = vmatpush1.bf16.msra.mxu1 %v2192_v17 }
 0x23f   :  { %984 = vmatprep.subr.bf16.mxu0 %v2196_v18  ;;  %1027 = vmatprep.subr.bf16.mxu1 %v2203_v21 }
 0x242   :  { %985 = vmatpush1.bf16.msra.mxu0 %v2200_v20  ;;  %1028 = vmatpush1.bf16.msra.mxu1 %v2206_v22  ;;  %v3045_v22 = vld [vmem:[#allocation13_spill] sm:$0xff] }
 0x243   :  { %986 = vmatprep.subr.bf16.mxu0 %v2208_v23  ;;  %1029 = vmatprep.subr.bf16.mxu1 %v2212_v24  ;;  %v3046_v24 = vld [vmem:[#allocation14_spill] sm:$0xff] }
 0x246   :  { %987 = vmatpush1.bf16.msra.mxu0 %v2224_v27  ;;  %1030 = vmatpush1.bf16.msra.mxu1 %v2226_v28 }
 0x247   :  { %988 = vmatprep.subr.bf16.mxu0 %v2230_v29  ;;  %1031 = vmatprep.subr.bf16.mxu1 %v2236_v32  ;;  %v3047_v32 = vld [vmem:[#allocation15_spill] sm:$0xff] }
 0x24a   :  { %989 = vmatpush1.bf16.msra.mxu0 %v2233_v31  ;;  %1032 = vmatpush1.bf16.msra.mxu1 %v2240_v33 }
 0x24b   :  { %990 = vmatprep.subr.bf16.mxu0 %v2242_v34  ;;  %1033 = vmatprep.subr.bf16.mxu1 %v2246_v35 }
 0x24e   :  { %991 = vmatpush1.bf16.msra.mxu0 %v2258_v38  ;;  %1034 = vmatpush1.bf16.msra.mxu1 %v2262_v39  ;;  %v3048_v39 = vld [vmem:[#allocation17_spill] sm:$0xff] }
 0x24f   :  { %992 = vmatprep.subr.bf16.mxu0 %v2264_v40  ;;  %1035 = vmatprep.subr.bf16.mxu1 %v2270_v43  ;;  %v3049_v43 = vld [vmem:[#allocation18_spill] sm:$0xff] }
 0x252   :  { %993 = vmatpush1.bf16.msra.mxu0 %v2268_v42  ;;  %1036 = vmatpush1.bf16.msra.mxu1 %v2274_v44 }
 0x253   :  { %994 = vmatprep.subr.bf16.mxu0 %v2276_v45  ;;  %1037 = vmatprep.subr.bf16.mxu1 %v2280_v46  ;;  %v3050_v45 = vld [vmem:[#allocation12_spill] sm:$0xff] }
 0x256   :  { %995 = vmatpush1.bf16.msra.mxu0 %v2292_v49  ;;  %1038 = vmatpush1.bf16.msra.mxu1 %v2296_v50 }
 0x257   :  { %1121 = vmatprep.subr.bf16.mxu0 %v2676_v9  ;;  %1164 = vmatprep.subr.bf16.mxu1 %v2679_v11 }
 0x2f9   :  { %v873_v14 = vpop.f32.mrf.mxu0  ;;  %v916_v15 = vpop.f32.mrf.mxu1 }
 0x2fa   :  { %v925_v17 = vadd.f32 %v873_v14, %v3044_v16  ;;  %v927_v46 = vadd.f32 %v916_v15, %v3050_v45  ;;  %v2769_v45 = vld [vmem:[#allocation4 + $0x24] ss:$16 sps:$4 sm:$0xff]  }
 0x2fb   :  { %v875_v18 = vpop.f32.mrf.mxu0  ;;  %v918_v20 = vpop.f32.mrf.mxu1 }
 0x2fc   :  { %v933_v21 = vmul.f32 0.5, %v925_v17  ;;  %v926_v23 = vadd.f32 %v875_v18, %v3045_v22  ;;  %v928_v27 = vadd.f32 %v918_v20, %v3046_v24  ;;  %v935_v54 = vmul.f32 0.5, %v927_v46  ;;  %v2704_v17 = vld [vmem:[#allocation4 + $0xe8] ss:$16 sps:$4 sm:$0xff]   ;;  %v2707_v18 = vld [vmem:[#allocation4 + $0xc4] ss:$16 sps:$4 sm:$0xff]  }
 0x2fd   :  { %v877_v28 = vpop.f32.mrf.mxu0  ;;  %v920_v29 = vpop.f32.mrf.mxu1  ;;  %v2710_v20 = vld [vmem:[#allocation4 + $0xcc] ss:$16 sps:$4 sm:$0xff]   ;;  %v2718_v22 = vld [vmem:[#allocation4 + $0xc8] ss:$16 sps:$4 sm:$0xff]  }
 0x2fe   :  { %1938 = vtanh.f32 %v933_v21  ;;  %v934_v31 = vmul.f32 0.5, %v926_v23  ;;  %v929_v33 = vadd.f32 %v877_v28, %v3047_v32  ;;  %v931_v61 = vadd.f32 %v920_v29, %v3051_v12  ;;  %v2715_v21 = vld [vmem:[#allocation4 + $0xc0] ss:$16 sps:$4 sm:$0xff]   ;;  %v2721_v23 = vld [vmem:[#allocation4 + $0xa4] ss:$16 sps:$4 sm:$0xff]  }
 0x2ff   :  { %v879_v34 = vpop.f32.mrf.mxu0  ;;  %v922_v35 = vpop.f32.mrf.mxu1  ;;  %v2724_v24 = vld [vmem:[#allocation4 + $0xac] ss:$16 sps:$4 sm:$0xff]   ;;  %v2730_v28 = vld [vmem:[#allocation4 + $0xa8] ss:$16 sps:$4 sm:$0xff]   ;;  %v2733_v29 = vld [vmem:[#allocation4 + $0x84] ss:$16 sps:$4 sm:$0xff]  }
 0x300   :  { %1940 = vtanh.f32 %v934_v31  ;;  %v936_v38 = vmul.f32 0.5, %v929_v33  ;;  %v930_v40 = vadd.f32 %v879_v34, %v3048_v39  ;;  %v932_v44 = vadd.f32 %v922_v35, %v3049_v43  ;;  %v2736_v31 = vld [vmem:[#allocation4 + $0x8c] ss:$16 sps:$4 sm:$0xff]   ;;  %v2739_v32 = vld [vmem:[#allocation4 + $0x80] ss:$16 sps:$4 sm:$0xff]  }
 0x301   :  { %1942 = vtanh.f32 %v928_v27  ;;  %v938_v1 = vmul.f32 0.5, %v931_v61  ;;  %v2727_v27 = vld [vmem:[#allocation4 + $0xa0] ss:$16 sps:$4 sm:$0xff]   ;;  %v2742_v33 = vld [vmem:[#allocation4 + $0x88] ss:$16 sps:$4 sm:$0xff]  }
 0x302   :  { %1944 = vtanh.f32 %v936_v38  ;;  %v937_v42 = vmul.f32 0.5, %v930_v40  ;;  %v2745_v34 = vld [vmem:[#allocation4 + $0x64] ss:$16 sps:$4 sm:$0xff]   ;;  %v2748_v35 = vld [vmem:[#allocation4 + $0x6c] ss:$16 sps:$4 sm:$0xff]  }
 0x303   :  { %v2751_v38 = vld [vmem:[#allocation4 + $0x60] ss:$16 sps:$4 sm:$0xff]   ;;  %v2754_v39 = vld [vmem:[#allocation4 + $0x68] ss:$16 sps:$4 sm:$0xff]   ;;  %v2757_v40 = vld [vmem:[#allocation4 + $0x44] ss:$16 sps:$4 sm:$0xff]  }
 0x304   :  { %1946 = vtanh.f32 %v937_v42  ;;  %v2760_v42 = vld [vmem:[#allocation4 + $0x4c] ss:$16 sps:$4 sm:$0xff]   ;;  %v2763_v43 = vld [vmem:[#allocation4 + $0x40] ss:$16 sps:$4 sm:$0xff]   ;;  %v2778_v61 = vld [vmem:[#allocation4 + $0x28] ss:$16 sps:$4 sm:$0xff]  }
 0x305   :  { %1948 = vtanh.f32 %v932_v44  ;;  %v2766_v44 = vld [vmem:[#allocation4 + $0x48] ss:$16 sps:$4 sm:$0xff]   ;;  %v2772_v46 = vld [vmem:[#allocation4 + $0x2c] ss:$16 sps:$4 sm:$0xff]   ;;  %v2775_v12 = vld [vmem:[#allocation4 + $0x20] ss:$16 sps:$4 sm:$0xff]  }
 0x306   :  { %1950 = vtanh.f32 %v935_v54 }
 0x307   :  { %1952 = vtanh.f32 %v938_v1 }
 0x30b   :  { %v1939_v60 = vpop.eup %1938 }
 0x30c   :  { %v945_v6 = vmul.f32 0.5, %v1939_v60  ;;  %v2781_v60 = vld [vmem:[#allocation4 + $0x4] ss:$16 sps:$4 sm:$0xff]  }
 0x30d   :  { %v1941_v0 = vpop.eup %1940 }
 0x30e   :  { %v1943_v7 = vpop.eup %1942  ;;  %v951_v30 = vadd.f32 0.5, %v945_v6  ;;  %v946_v55 = vmul.f32 0.5, %v1941_v0  ;;  %v2784_v6 = vld [vmem:[#allocation4 + $0xc] ss:$16 sps:$4 sm:$0xff]  }
 0x30f   :  { %v1945_v5 = vpop.eup %1944 }
 0x310   :  { %v952_v59 = vadd.f32 0.5, %v946_v55  ;;  %v961_v3 = vmul.f32 %v1943_v7, %v951_v30  ;;  %v948_v2 = vmul.f32 0.5, %v1945_v5  ;;  %v3052_v7 = vld [vmem:[#allocation19_spill] sm:$0xff] }
 0x311   :  { %v1947_v62 = vpop.eup %1946 }
 0x312   :  { %v959_v51 = vmul.f32 %v952_v59, %v2634_v41  ;;  %v954_v13 = vadd.f32 0.5, %v948_v2  ;;  %v949_v63 = vmul.f32 0.5, %v1947_v62  ;;  %v1949_v8 = vpop.eup %1948  ;;  %v3053_v59 = vld [vmem:[#allocation21_spill] sm:$0xff]  ;;  %v3054_v2 = vld [vmem:[#allocation22_spill] sm:$0xff] }
 0x313   :  { %v1951_v58 = vpop.eup %1950 }
 0x314   :  { %v2691_v25 = vadd.f32 %v961_v3, %v959_v51  ;;  %v955_v4 = vadd.f32 0.5, %v949_v63  ;;  %v962_v36 = vmul.f32 %v1949_v8, %v954_v13  ;;  %v1953_v19 = vpop.eup %1952  ;;  %v947_v56 = vmul.f32 0.5, %v1951_v58 }
 0x315   :  { %v950_v41 = vmul.f32 0.5, %v1953_v19 }
 0x316   :  { %v960_v52 = vmul.f32 %v955_v4, %v2638_v10  ;;  %1954 = vtanh.f32 %v2691_v25  ;;  %v953_v26 = vadd.f32 0.5, %v947_v56  ;;  %v2701_v10 = vld [vmem:[#allocation4 + $0xe0] ss:$16 sps:$4 sm:$0xff]   ;;  %v3057_v56 = vld [vmem:[#allocation26_spill] sm:$0xff] }
 0x317   :  { %v956_v48 = vadd.f32 0.5, %v950_v41 }
 0x318   :  { %v2695_v37 = vadd.f32 %v962_v36, %v960_v52  ;;  %v3056_v52 = vld [vmem:[#allocation25_spill] sm:$0xff] }
 0x31a   :  { %1956 = vtanh.f32 %v2695_v37 }
 0x323   :  { %v1955_v57 = vpop.eup %1954 }
 0x324   :  { %v967_v14 = vmul.f32 %v1955_v57, %v953_v26  ;;  %v3058_v57 = vld [vmem:[#allocation20_spill] sm:$0xff] }
 0x327   :  { %v1957_v53 = vpop.eup %1956 }
 0x328   :  { %v968_v15 = vmul.f32 %v1957_v53, %v956_v48  ;;  %v3059_v48 = vld [vmem:[#allocation24_spill] sm:$0xff] }
 0x32a   :  { %v969_v16 = vpack.c.bf16 %v968_v15, %v967_v14 }
 0x32c   :  { %1833 = vst [vmem:[%s2984_s4 + $0x10] sm:$0xff] %v969_v16   ;;  %1013 = vmatmul.mubr.bf16.vlgmr.msra.gmra.mxu0 %v969_v16  ;;  %1056 = vmatmul.mubr.bf16.vlgmr.msra.gmra.mxu1 %v969_v16 }
 0x32d   :  { %1122 = vmatpush1.bf16.msra.mxu0 %v2701_v10  ;;  %1165 = vmatpush1.bf16.msra.mxu1 %v2704_v17 }
 0x32e   :  { %1123 = vmatprep.subr.bf16.mxu0 %v2707_v18  ;;  %1166 = vmatprep.subr.bf16.mxu1 %v2710_v20 }
 0x32f   :  { %1153 = vmatprep.mubr.bf16.mxu0 %v3039_v47  ;;  %1196 = vmatprep.mubr.bf16.mxu1 %v3039_v47 }
 0x331   :  { %1124 = vmatpush1.bf16.msra.mxu0 %v2715_v21  ;;  %1167 = vmatpush1.bf16.msra.mxu1 %v2718_v22 }
 0x332   :  { %1125 = vmatprep.subr.bf16.mxu0 %v2721_v23  ;;  %1168 = vmatprep.subr.bf16.mxu1 %v2724_v24 }
 0x335   :  { %1126 = vmatpush1.bf16.msra.mxu0 %v2727_v27  ;;  %1169 = vmatpush1.bf16.msra.mxu1 %v2730_v28 }
 0x336   :  { %1127 = vmatprep.subr.bf16.mxu0 %v2733_v29  ;;  %1170 = vmatprep.subr.bf16.mxu1 %v2736_v31 }
 0x339   :  { %1128 = vmatpush1.bf16.msra.mxu0 %v2739_v32  ;;  %1171 = vmatpush1.bf16.msra.mxu1 %v2742_v33 }
 0x33a   :  { %1129 = vmatprep.subr.bf16.mxu0 %v2745_v34  ;;  %1172 = vmatprep.subr.bf16.mxu1 %v2748_v35 }
 0x33d   :  { %1130 = vmatpush1.bf16.msra.mxu0 %v2751_v38  ;;  %1173 = vmatpush1.bf16.msra.mxu1 %v2754_v39 }
 0x33e   :  { %1131 = vmatprep.subr.bf16.mxu0 %v2757_v40  ;;  %1174 = vmatprep.subr.bf16.mxu1 %v2760_v42 }
 0x341   :  { %1132 = vmatpush1.bf16.msra.mxu0 %v2763_v43  ;;  %1175 = vmatpush1.bf16.msra.mxu1 %v2766_v44 }
 0x342   :  { %1133 = vmatprep.subr.bf16.mxu0 %v2769_v45  ;;  %1176 = vmatprep.subr.bf16.mxu1 %v2772_v46 }
 0x345   :  { %1134 = vmatpush1.bf16.msra.mxu0 %v2775_v12  ;;  %1177 = vmatpush1.bf16.msra.mxu1 %v2778_v61 }
 0x346   :  { %1135 = vmatprep.subr.bf16.mxu0 %v2781_v60  ;;  %1178 = vmatprep.subr.bf16.mxu1 %v2784_v6 }
 0x349   :  { %1136 = vmatpush1.bf16.msra.mxu0 %v2292_v49  ;;  %1179 = vmatpush1.bf16.msra.mxu1 %v2296_v50  ;;  %v3055_v50 = vld [vmem:[#allocation23_spill] sm:$0xff] }
 0x34a   :  { %1262 = vmatprep.subr.bf16.mxu0 %v2676_v9  ;;  %1305 = vmatprep.subr.bf16.mxu1 %v2679_v11 }
 0x3ec   :  { %v1014_v0 = vpop.f32.mrf.mxu0  ;;  %v1057_v54 = vpop.f32.mrf.mxu1 }
 0x3ed   :  { %v1066_v30 = vadd.f32 %v1014_v0, %v3052_v7  ;;  %v1068_v26 = vadd.f32 %v1057_v54, %v3058_v57 }
 0x3ee   :  { %v1016_v55 = vpop.f32.mrf.mxu0  ;;  %v1059_v1 = vpop.f32.mrf.mxu1 }
 0x3ef   :  { %v1074_v5 = vmul.f32 0.5, %v1066_v30  ;;  %v1067_v3 = vadd.f32 %v1016_v55, %v3053_v59  ;;  %v1069_v62 = vadd.f32 %v1059_v1, %v3054_v2  ;;  %v1076_v0 = vmul.f32 0.5, %v1068_v26 }
 0x3f0   :  { %v1018_v51 = vpop.f32.mrf.mxu0  ;;  %v1061_v13 = vpop.f32.mrf.mxu1 }
 0x3f1   :  { %1958 = vtanh.f32 %v1074_v5  ;;  %v1075_v49 = vmul.f32 0.5, %v1067_v3  ;;  %v1070_v63 = vadd.f32 %v1018_v51, %v3055_v50  ;;  %v1072_v53 = vadd.f32 %v1061_v13, %v3059_v48 }
 0x3f2   :  { %v1020_v8 = vpop.f32.mrf.mxu0  ;;  %v1063_v4 = vpop.f32.mrf.mxu1 }
 0x3f3   :  { %1960 = vtanh.f32 %v1075_v49  ;;  %v1077_v36 = vmul.f32 0.5, %v1070_v63  ;;  %v1071_v58 = vadd.f32 %v1020_v8, %v3056_v52  ;;  %v1073_v41 = vadd.f32 %v1063_v4, %v3057_v56 }
 0x3f4   :  { %1962 = vtanh.f32 %v1069_v62  ;;  %v1079_v1 = vmul.f32 0.5, %v1072_v53 }
 0x3f5   :  { %1964 = vtanh.f32 %v1077_v36  ;;  %v1078_v19 = vmul.f32 0.5, %v1071_v58 }
 0x3f7   :  { %1966 = vtanh.f32 %v1078_v19 }
 0x3f8   :  { %1968 = vtanh.f32 %v1073_v41 }
 0x3f9   :  { %1970 = vtanh.f32 %v1076_v0 }
 0x3fa   :  { %1972 = vtanh.f32 %v1079_v1 }
 0x3fe   :  { %v1959_v14 = vpop.eup %1958 }
 0x3ff   :  { %v1086_v15 = vmul.f32 0.5, %v1959_v14 }
 0x400   :  { %v1961_v16 = vpop.eup %1960 }
 0x401   :  { %v1963_v7 = vpop.eup %1962  ;;  %v1092_v30 = vadd.f32 0.5, %v1086_v15  ;;  %v1087_v55 = vmul.f32 0.5, %v1961_v16  ;;  %v2843_v15 = vld [vmem:[#allocation4 + $0x8] ss:$16 sps:$4 sm:$0xff]  }
 0x402   :  { %v1965_v5 = vpop.eup %1964 }
 0x403   :  { %v1093_v59 = vadd.f32 0.5, %v1087_v55  ;;  %v1102_v3 = vmul.f32 %v1963_v7, %v1092_v30  ;;  %v1089_v2 = vmul.f32 0.5, %v1965_v5  ;;  %v3060_v7 = vld [vmem:[#allocation27_spill] sm:$0xff] }
 0x404   :  { %v1967_v62 = vpop.eup %1966 }
 0x405   :  { %v1100_v51 = vmul.f32 %v1093_v59, %v2691_v25  ;;  %v1095_v49 = vadd.f32 0.5, %v1089_v2  ;;  %v1090_v54 = vmul.f32 0.5, %v1967_v62  ;;  %v1969_v13 = vpop.eup %1968  ;;  %v3061_v59 = vld [vmem:[#allocation29_spill] sm:$0xff]  ;;  %v3062_v2 = vld [vmem:[#allocation30_spill] sm:$0xff] }
 0x406   :  { %v1971_v52 = vpop.eup %1970 }
 0x407   :  { %v2800_v50 = vadd.f32 %v1102_v3, %v1100_v51  ;;  %v1096_v63 = vadd.f32 0.5, %v1090_v54  ;;  %v1103_v8 = vmul.f32 %v1969_v13, %v1095_v49  ;;  %v1973_v58 = vpop.eup %1972  ;;  %v1088_v19 = vmul.f32 0.5, %v1971_v52  ;;  %v3063_v13 = vld [vmem:[#allocation31_spill] sm:$0xff] }
 0x408   :  { %v1091_v25 = vmul.f32 0.5, %v1973_v58  ;;  %v3064_v58 = vld [vmem:[#allocation33_spill] sm:$0xff] }
 0x409   :  { %v1101_v4 = vmul.f32 %v1096_v63, %v2695_v37  ;;  %1974 = vtanh.f32 %v2800_v50  ;;  %v1094_v41 = vadd.f32 0.5, %v1088_v19  ;;  %v2840_v37 = vld [vmem:[#allocation4] ss:$16 sps:$4 sm:$0xff]  }
 0x40a   :  { %v1097_v57 = vadd.f32 0.5, %v1091_v25 }
 0x40b   :  { %v2804_v36 = vadd.f32 %v1103_v8, %v1101_v4 }
 0x40d   :  { %1976 = vtanh.f32 %v2804_v36 }
 0x416   :  { %v1975_v56 = vpop.eup %1974 }
 0x417   :  { %v1108_v48 = vmul.f32 %v1975_v56, %v1094_v41  ;;  %v3065_v56 = vld [vmem:[#allocation34_spill] sm:$0xff] }
 0x41a   :  { %v1977_v26 = vpop.eup %1976 }
 0x41b   :  { %v1109_v53 = vmul.f32 %v1977_v26, %v1097_v57  ;;  %v3066_v57 = vld [vmem:[#allocation28_spill] sm:$0xff] }
 0x41d   :  { %v1110_v14 = vpack.c.bf16 %v1109_v53, %v1108_v48  ;;  %v3067_v48 = vld [vmem:[#allocation32_spill] sm:$0xff] }
 0x41f   :  { %1834 = vst [vmem:[%s2984_s4 + $0x18] sm:$0xff] %v1110_v14   ;;  %1154 = vmatmul.mubr.bf16.vlgmr.msra.gmra.mxu0 %v1110_v14  ;;  %1197 = vmatmul.mubr.bf16.vlgmr.msra.gmra.mxu1 %v1110_v14 }
 0x420   :  { %1263 = vmatpush1.bf16.msra.mxu0 %v2701_v10  ;;  %1306 = vmatpush1.bf16.msra.mxu1 %v2704_v17 }
 0x421   :  { %1264 = vmatprep.subr.bf16.mxu0 %v2707_v18  ;;  %1307 = vmatprep.subr.bf16.mxu1 %v2710_v20 }
 0x422   :  { %1294 = vmatprep.mubr.bf16.mxu0 %v3039_v47  ;;  %1337 = vmatprep.mubr.bf16.mxu1 %v3039_v47 }
 0x424   :  { %1265 = vmatpush1.bf16.msra.mxu0 %v2715_v21  ;;  %1308 = vmatpush1.bf16.msra.mxu1 %v2718_v22 }
 0x425   :  { %1266 = vmatprep.subr.bf16.mxu0 %v2721_v23  ;;  %1309 = vmatprep.subr.bf16.mxu1 %v2724_v24 }
 0x428   :  { %1267 = vmatpush1.bf16.msra.mxu0 %v2727_v27  ;;  %1310 = vmatpush1.bf16.msra.mxu1 %v2730_v28 }
 0x429   :  { %1268 = vmatprep.subr.bf16.mxu0 %v2733_v29  ;;  %1311 = vmatprep.subr.bf16.mxu1 %v2736_v31 }
 0x42c   :  { %1269 = vmatpush1.bf16.msra.mxu0 %v2739_v32  ;;  %1312 = vmatpush1.bf16.msra.mxu1 %v2742_v33 }
 0x42d   :  { %1270 = vmatprep.subr.bf16.mxu0 %v2745_v34  ;;  %1313 = vmatprep.subr.bf16.mxu1 %v2748_v35 }
 0x430   :  { %1271 = vmatpush1.bf16.msra.mxu0 %v2751_v38  ;;  %1314 = vmatpush1.bf16.msra.mxu1 %v2754_v39 }
 0x431   :  { %1272 = vmatprep.subr.bf16.mxu0 %v2757_v40  ;;  %1315 = vmatprep.subr.bf16.mxu1 %v2760_v42 }
 0x434   :  { %1273 = vmatpush1.bf16.msra.mxu0 %v2763_v43  ;;  %1316 = vmatpush1.bf16.msra.mxu1 %v2766_v44 }
 0x435   :  { %1274 = vmatprep.subr.bf16.mxu0 %v2769_v45  ;;  %1317 = vmatprep.subr.bf16.mxu1 %v2772_v46 }
 0x438   :  { %1275 = vmatpush1.bf16.msra.mxu0 %v2775_v12  ;;  %1318 = vmatpush1.bf16.msra.mxu1 %v2778_v61 }
 0x439   :  { %1276 = vmatprep.subr.bf16.mxu0 %v2781_v60  ;;  %1319 = vmatprep.subr.bf16.mxu1 %v2784_v6 }
 0x43c   :  { %1277 = vmatpush1.bf16.msra.mxu0 %v2840_v37  ;;  %1320 = vmatpush1.bf16.msra.mxu1 %v2843_v15 }
 0x43d   :  { %1403 = vmatprep.subr.bf16.mxu0 %v2676_v9  ;;  %1446 = vmatprep.subr.bf16.mxu1 %v2679_v11 }
 0x4df   :  { %v1155_v16 = vpop.f32.mrf.mxu0  ;;  %v1198_v0 = vpop.f32.mrf.mxu1 }
 0x4e0   :  { %v1207_v30 = vadd.f32 %v1155_v16, %v3060_v7  ;;  %v1209_v26 = vadd.f32 %v1198_v0, %v3066_v57 }
 0x4e1   :  { %v1157_v55 = vpop.f32.mrf.mxu0  ;;  %v1200_v1 = vpop.f32.mrf.mxu1 }
 0x4e2   :  { %v1215_v5 = vmul.f32 0.5, %v1207_v30  ;;  %v1208_v3 = vadd.f32 %v1157_v55, %v3061_v59  ;;  %v1210_v62 = vadd.f32 %v1200_v1, %v3062_v2  ;;  %v1217_v30 = vmul.f32 0.5, %v1209_v26 }
 0x4e3   :  { %v1159_v51 = vpop.f32.mrf.mxu0  ;;  %v1202_v49 = vpop.f32.mrf.mxu1 }
 0x4e4   :  { %1978 = vtanh.f32 %v1215_v5  ;;  %v1216_v54 = vmul.f32 0.5, %v1208_v3  ;;  %v1211_v63 = vadd.f32 %v1159_v51, %v3063_v13  ;;  %v1213_v53 = vadd.f32 %v1202_v49, %v3067_v48 }
 0x4e5   :  { %v1161_v8 = vpop.f32.mrf.mxu0  ;;  %v1204_v4 = vpop.f32.mrf.mxu1 }
 0x4e6   :  { %1980 = vtanh.f32 %v1216_v54  ;;  %v1218_v52 = vmul.f32 0.5, %v1211_v63  ;;  %v1212_v19 = vadd.f32 %v1161_v8, %v3064_v58  ;;  %v1214_v41 = vadd.f32 %v1204_v4, %v3065_v56 }
 0x4e7   :  { %1982 = vtanh.f32 %v1210_v62  ;;  %v1220_v59 = vmul.f32 0.5, %v1213_v53 }
 0x4e8   :  { %1984 = vtanh.f32 %v1218_v52  ;;  %v1219_v25 = vmul.f32 0.5, %v1212_v19 }
 0x4ea   :  { %1986 = vtanh.f32 %v1219_v25 }
 0x4eb   :  { %1988 = vtanh.f32 %v1214_v41 }
 0x4ec   :  { %1990 = vtanh.f32 %v1217_v30 }
 0x4ed   :  { %1992 = vtanh.f32 %v1220_v59 }
 0x4f1   :  { %v1979_v14 = vpop.eup %1978 }
 0x4f2   :  { %v1227_v16 = vmul.f32 0.5, %v1979_v14 }
 0x4f3   :  { %v1981_v7 = vpop.eup %1980 }
 0x4f4   :  { %v1983_v55 = vpop.eup %1982  ;;  %v1233_v1 = vadd.f32 0.5, %v1227_v16  ;;  %v1228_v5 = vmul.f32 0.5, %v1981_v7 }
 0x4f5   :  { %v1985_v3 = vpop.eup %1984 }
 0x4f6   :  { %v1234_v2 = vadd.f32 0.5, %v1228_v5  ;;  %v1243_v62 = vmul.f32 %v1983_v55, %v1233_v1  ;;  %v1230_v51 = vmul.f32 0.5, %v1985_v3  ;;  %v3068_v55 = vld [vmem:[#allocation35_spill] sm:$0xff] }
 0x4f7   :  { %v1987_v54 = vpop.eup %1986 }
 0x4f8   :  { %v1241_v13 = vmul.f32 %v1234_v2, %v2800_v50  ;;  %v1236_v63 = vadd.f32 0.5, %v1230_v51  ;;  %v1231_v0 = vmul.f32 0.5, %v1987_v54  ;;  %v1989_v49 = vpop.eup %1988  ;;  %v3069_v2 = vld [vmem:[#allocation37_spill] sm:$0xff]  ;;  %v3070_v51 = vld [vmem:[#allocation38_spill] sm:$0xff] }
 0x4f9   :  { %v1991_v25 = vpop.eup %1990 }
 0x4fa   :  { %v2857_v8 = vadd.f32 %v1243_v62, %v1241_v13  ;;  %v1237_v4 = vadd.f32 0.5, %v1231_v0  ;;  %v1244_v52 = vmul.f32 %v1989_v49, %v1236_v63  ;;  %v1993_v56 = vpop.eup %1992  ;;  %v1229_v41 = vmul.f32 0.5, %v1991_v25  ;;  %v3071_v49 = vld [vmem:[#allocation39_spill] sm:$0xff] }
 0x4fb   :  { %v1232_v50 = vmul.f32 0.5, %v1993_v56 }
 0x4fc   :  { %v1242_v58 = vmul.f32 %v1237_v4, %v2804_v36  ;;  %1994 = vtanh.f32 %v2857_v8  ;;  %v1235_v26 = vadd.f32 0.5, %v1229_v41  ;;  %v3073_v41 = vld [vmem:[#allocation42_spill] sm:$0xff] }
 0x4fd   :  { %v1238_v48 = vadd.f32 0.5, %v1232_v50 }
 0x4fe   :  { %v2861_v19 = vadd.f32 %v1244_v52, %v1242_v58  ;;  %v3072_v58 = vld [vmem:[#allocation41_spill] sm:$0xff] }
 0x500   :  { %1996 = vtanh.f32 %v2861_v19 }
 0x509   :  { %v1995_v57 = vpop.eup %1994 }
 0x50a   :  { %v1249_v14 = vmul.f32 %v1995_v57, %v1235_v26  ;;  %v3074_v57 = vld [vmem:[#allocation36_spill] sm:$0xff] }
 0x50d   :  { %v1997_v53 = vpop.eup %1996 }
 0x50e   :  { %v1250_v16 = vmul.f32 %v1997_v53, %v1238_v48  ;;  %v3075_v48 = vld [vmem:[#allocation40_spill] sm:$0xff] }
 0x510   :  { %v1251_v7 = vpack.c.bf16 %v1250_v16, %v1249_v14 }
 0x512   :  { %1835 = vst [vmem:[%s2984_s4 + $0x20] sm:$0xff] %v1251_v7   ;;  %1295 = vmatmul.mubr.bf16.vlgmr.msra.gmra.mxu0 %v1251_v7  ;;  %1338 = vmatmul.mubr.bf16.vlgmr.msra.gmra.mxu1 %v1251_v7 }
 0x513   :  { %1404 = vmatpush1.bf16.msra.mxu0 %v2701_v10  ;;  %1447 = vmatpush1.bf16.msra.mxu1 %v2704_v17 }
 0x514   :  { %1405 = vmatprep.subr.bf16.mxu0 %v2707_v18  ;;  %1448 = vmatprep.subr.bf16.mxu1 %v2710_v20 }
 0x515   :  { %1435 = vmatprep.mubr.bf16.mxu0 %v3039_v47  ;;  %1478 = vmatprep.mubr.bf16.mxu1 %v3039_v47 }
 0x517   :  { %1406 = vmatpush1.bf16.msra.mxu0 %v2715_v21  ;;  %1449 = vmatpush1.bf16.msra.mxu1 %v2718_v22 }
 0x518   :  { %1407 = vmatprep.subr.bf16.mxu0 %v2721_v23  ;;  %1450 = vmatprep.subr.bf16.mxu1 %v2724_v24 }
 0x51b   :  { %1408 = vmatpush1.bf16.msra.mxu0 %v2727_v27  ;;  %1451 = vmatpush1.bf16.msra.mxu1 %v2730_v28 }
 0x51c   :  { %1409 = vmatprep.subr.bf16.mxu0 %v2733_v29  ;;  %1452 = vmatprep.subr.bf16.mxu1 %v2736_v31 }
 0x51f   :  { %1410 = vmatpush1.bf16.msra.mxu0 %v2739_v32  ;;  %1453 = vmatpush1.bf16.msra.mxu1 %v2742_v33 }
 0x520   :  { %1411 = vmatprep.subr.bf16.mxu0 %v2745_v34  ;;  %1454 = vmatprep.subr.bf16.mxu1 %v2748_v35 }
 0x523   :  { %1412 = vmatpush1.bf16.msra.mxu0 %v2751_v38  ;;  %1455 = vmatpush1.bf16.msra.mxu1 %v2754_v39 }
 0x524   :  { %1413 = vmatprep.subr.bf16.mxu0 %v2757_v40  ;;  %1456 = vmatprep.subr.bf16.mxu1 %v2760_v42 }
 0x527   :  { %1414 = vmatpush1.bf16.msra.mxu0 %v2763_v43  ;;  %1457 = vmatpush1.bf16.msra.mxu1 %v2766_v44 }
 0x528   :  { %1415 = vmatprep.subr.bf16.mxu0 %v2769_v45  ;;  %1458 = vmatprep.subr.bf16.mxu1 %v2772_v46 }
 0x52b   :  { %1416 = vmatpush1.bf16.msra.mxu0 %v2775_v12  ;;  %1459 = vmatpush1.bf16.msra.mxu1 %v2778_v61 }
 0x52c   :  { %1417 = vmatprep.subr.bf16.mxu0 %v2781_v60  ;;  %1460 = vmatprep.subr.bf16.mxu1 %v2784_v6 }
 0x52f   :  { %1418 = vmatpush1.bf16.msra.mxu0 %v2840_v37  ;;  %1461 = vmatpush1.bf16.msra.mxu1 %v2843_v15 }
 0x530   :  { %1544 = vmatprep.subr.bf16.mxu0 %v2676_v9  ;;  %1587 = vmatprep.subr.bf16.mxu1 %v2679_v11 }
 0x5d2   :  { %v1296_v36 = vpop.f32.mrf.mxu0  ;;  %v1339_v30 = vpop.f32.mrf.mxu1 }
 0x5d3   :  { %v1348_v1 = vadd.f32 %v1296_v36, %v3068_v55  ;;  %v1350_v26 = vadd.f32 %v1339_v30, %v3074_v57 }
 0x5d4   :  { %v1298_v5 = vpop.f32.mrf.mxu0  ;;  %v1341_v59 = vpop.f32.mrf.mxu1 }
 0x5d5   :  { %v1356_v3 = vmul.f32 0.5, %v1348_v1  ;;  %v1349_v62 = vadd.f32 %v1298_v5, %v3069_v2  ;;  %v1351_v54 = vadd.f32 %v1341_v59, %v3070_v51  ;;  %v1358_v36 = vmul.f32 0.5, %v1350_v26 }
 0x5d6   :  { %v1300_v13 = vpop.f32.mrf.mxu0  ;;  %v1343_v63 = vpop.f32.mrf.mxu1 }
 0x5d7   :  { %1998 = vtanh.f32 %v1356_v3  ;;  %v1357_v0 = vmul.f32 0.5, %v1349_v62  ;;  %v1352_v4 = vadd.f32 %v1300_v13, %v3071_v49  ;;  %v1354_v53 = vadd.f32 %v1343_v63, %v3075_v48 }
 0x5d8   :  { %v1302_v9 = vpop.f32.mrf.mxu0  ;;  %v1345_v52 = vpop.f32.mrf.mxu1 }
 0x5d9   :  { %2000 = vtanh.f32 %v1357_v0  ;;  %v1359_v11 = vmul.f32 0.5, %v1352_v4  ;;  %v1353_v25 = vadd.f32 %v1302_v9, %v3072_v58  ;;  %v1355_v50 = vadd.f32 %v1345_v52, %v3073_v41 }
 0x5da   :  { %2002 = vtanh.f32 %v1351_v54  ;;  %v1361_v59 = vmul.f32 0.5, %v1354_v53 }
 0x5db   :  { %2004 = vtanh.f32 %v1359_v11  ;;  %v1360_v56 = vmul.f32 0.5, %v1353_v25 }
 0x5dd   :  { %2006 = vtanh.f32 %v1360_v56 }
 0x5de   :  { %2008 = vtanh.f32 %v1355_v50 }
 0x5df   :  { %2010 = vtanh.f32 %v1358_v36 }
 0x5e0   :  { %2012 = vtanh.f32 %v1361_v59 }
 0x5e4   :  { %v1999_v14 = vpop.eup %1998 }
 0x5e5   :  { %v1368_v16 = vmul.f32 0.5, %v1999_v14 }
 0x5e6   :  { %v2001_v7 = vpop.eup %2000 }
 0x5e7   :  { %v2003_v55 = vpop.eup %2002  ;;  %v1374_v1 = vadd.f32 0.5, %v1368_v16  ;;  %v1369_v5 = vmul.f32 0.5, %v2001_v7 }
 0x5e8   :  { %v2005_v3 = vpop.eup %2004 }
 0x5e9   :  { %v1375_v2 = vadd.f32 0.5, %v1369_v5  ;;  %v1384_v62 = vmul.f32 %v2003_v55, %v1374_v1  ;;  %v1371_v51 = vmul.f32 0.5, %v2005_v3 }
 0x5ea   :  { %v2007_v54 = vpop.eup %2006 }
 0x5eb   :  { %v1382_v13 = vmul.f32 %v1375_v2, %v2857_v8  ;;  %v1377_v0 = vadd.f32 0.5, %v1371_v51  ;;  %v1372_v30 = vmul.f32 0.5, %v2007_v54  ;;  %v2009_v63 = vpop.eup %2008 }
 0x5ec   :  { %v2011_v58 = vpop.eup %2010 }
 0x5ed   :  { %v2910_v49 = vadd.f32 %v1384_v62, %v1382_v13  ;;  %v1378_v4 = vadd.f32 0.5, %v1372_v30  ;;  %v1385_v9 = vmul.f32 %v2009_v63, %v1377_v0  ;;  %v2013_v25 = vpop.eup %2012  ;;  %v1370_v56 = vmul.f32 0.5, %v2011_v58 }
 0x5ee   :  { %v1373_v8 = vmul.f32 0.5, %v2013_v25 }
 0x5ef   :  { %v1383_v52 = vmul.f32 %v1378_v4, %v2861_v19  ;;  %2014 = vtanh.f32 %v2910_v49  ;;  %v1376_v50 = vadd.f32 0.5, %v1370_v56 }
 0x5f0   :  { %v1379_v57 = vadd.f32 0.5, %v1373_v8 }
 0x5f1   :  { %v2914_v11 = vadd.f32 %v1385_v9, %v1383_v52 }
 0x5f3   :  { %2016 = vtanh.f32 %v2914_v11 }
 0x5fc   :  { %v2015_v41 = vpop.eup %2014 }
 0x5fd   :  { %v1390_v48 = vmul.f32 %v2015_v41, %v1376_v50 }
 0x600   :  { %v2017_v26 = vpop.eup %2016 }
 0x601   :  { %v1391_v53 = vmul.f32 %v2017_v26, %v1379_v57 }
 0x603   :  { %v1392_v14 = vpack.c.bf16 %v1391_v53, %v1390_v48 }
 0x605   :  { %1836 = vst [vmem:[%s2984_s4 + $0x28] sm:$0xff] %v1392_v14   ;;  %1436 = vmatmul.mubr.bf16.vlgmr.msra.gmra.mxu0 %v1392_v14  ;;  %1479 = vmatmul.mubr.bf16.vlgmr.msra.gmra.mxu1 %v1392_v14  ;;  %v3084_v14 = vld [vmem:[#allocation51_spill] sm:$0xff] }
 0x606   :  { %1545 = vmatpush1.bf16.msra.mxu0 %v2701_v10  ;;  %1588 = vmatpush1.bf16.msra.mxu1 %v2704_v17  ;;  %v3076_v17 = vld [vmem:[#allocation43_spill] sm:$0xff] }
 0x607   :  { %1546 = vmatprep.subr.bf16.mxu0 %v2707_v18  ;;  %1589 = vmatprep.subr.bf16.mxu1 %v2710_v20 }
 0x608   :  { %1576 = vmatprep.mubr.bf16.mxu0 %v3039_v47  ;;  %1619 = vmatprep.mubr.bf16.mxu1 %v3039_v47 }
 0x60a   :  { %1547 = vmatpush1.bf16.msra.mxu0 %v2715_v21  ;;  %1590 = vmatpush1.bf16.msra.mxu1 %v2718_v22 }
 0x60b   :  { %1548 = vmatprep.subr.bf16.mxu0 %v2721_v23  ;;  %1591 = vmatprep.subr.bf16.mxu1 %v2724_v24  ;;  %v3077_v23 = vld [vmem:[#allocation45_spill] sm:$0xff] }
 0x60e   :  { %1549 = vmatpush1.bf16.msra.mxu0 %v2727_v27  ;;  %1592 = vmatpush1.bf16.msra.mxu1 %v2730_v28  ;;  %v3078_v27 = vld [vmem:[#allocation46_spill] sm:$0xff] }
 0x60f   :  { %1550 = vmatprep.subr.bf16.mxu0 %v2733_v29  ;;  %1593 = vmatprep.subr.bf16.mxu1 %v2736_v31 }
 0x612   :  { %1551 = vmatpush1.bf16.msra.mxu0 %v2739_v32  ;;  %1594 = vmatpush1.bf16.msra.mxu1 %v2742_v33  ;;  %v3079_v33 = vld [vmem:[#allocation47_spill] sm:$0xff] }
 0x613   :  { %1552 = vmatprep.subr.bf16.mxu0 %v2745_v34  ;;  %1595 = vmatprep.subr.bf16.mxu1 %v2748_v35 }
 0x616   :  { %1553 = vmatpush1.bf16.msra.mxu0 %v2751_v38  ;;  %1596 = vmatpush1.bf16.msra.mxu1 %v2754_v39 }
 0x617   :  { %1554 = vmatprep.subr.bf16.mxu0 %v2757_v40  ;;  %1597 = vmatprep.subr.bf16.mxu1 %v2760_v42  ;;  %v3080_v40 = vld [vmem:[#allocation49_spill] sm:$0xff] }
 0x61a   :  { %1555 = vmatpush1.bf16.msra.mxu0 %v2763_v43  ;;  %1598 = vmatpush1.bf16.msra.mxu1 %v2766_v44  ;;  %v3081_v44 = vld [vmem:[#allocation50_spill] sm:$0xff] }
 0x61b   :  { %1556 = vmatprep.subr.bf16.mxu0 %v2769_v45  ;;  %1599 = vmatprep.subr.bf16.mxu1 %v2772_v46  ;;  %v3082_v46 = vld [vmem:[#allocation44_spill] sm:$0xff] }
 0x61e   :  { %1557 = vmatpush1.bf16.msra.mxu0 %v2775_v12  ;;  %1600 = vmatpush1.bf16.msra.mxu1 %v2778_v61  ;;  %v3083_v61 = vld [vmem:[#allocation48_spill] sm:$0xff] }
 0x61f   :  { %1558 = vmatprep.subr.bf16.mxu0 %v2781_v60  ;;  %1601 = vmatprep.subr.bf16.mxu1 %v2784_v6 }
 0x622   :  { %1559 = vmatpush1.bf16.msra.mxu0 %v2840_v37  ;;  %1602 = vmatpush1.bf16.msra.mxu1 %v2843_v15 }
 0x6c5   :  { %v1437_v47 = vpop.f32.mrf.mxu0  ;;  %v1480_v10 = vpop.f32.mrf.mxu1 }
 0x6c6   :  { %v1489_v18 = vadd.f32 %v1437_v47, %v3076_v17  ;;  %v1491_v12 = vadd.f32 %v1480_v10, %v3082_v46  ;;  %v3091_v46 = vld [vmem:[#allocation56_spill] sm:$0xff] }
 0x6c7   :  { %v1439_v20 = vpop.f32.mrf.mxu0  ;;  %v1482_v21 = vpop.f32.mrf.mxu1 }
 0x6c8   :  { %v1497_v22 = vmul.f32 0.5, %v1489_v18  ;;  %v1490_v24 = vadd.f32 %v1439_v20, %v3077_v23  ;;  %v1492_v28 = vadd.f32 %v1482_v21, %v3078_v27  ;;  %v1499_v19 = vmul.f32 0.5, %v1491_v12  ;;  %v3085_v20 = vld [vmem:[#allocation53_spill] sm:$0xff] }
 0x6c9   :  { %v1441_v29 = vpop.f32.mrf.mxu0  ;;  %v1484_v31 = vpop.f32.mrf.mxu1 }
 0x6ca   :  { %2018 = vtanh.f32 %v1497_v22  ;;  %v1498_v32 = vmul.f32 0.5, %v1490_v24  ;;  %v1493_v34 = vadd.f32 %v1441_v29, %v3079_v33  ;;  %v1495_v60 = vadd.f32 %v1484_v31, %v3083_v61  ;;  %v3086_v22 = vld [vmem:[#allocation54_spill] sm:$0xff]  ;;  %v3087_v29 = vld [vmem:[#allocation55_spill] sm:$0xff] }
 0x6cb   :  { %v1443_v35 = vpop.f32.mrf.mxu0  ;;  %v1486_v38 = vpop.f32.mrf.mxu1 }
 0x6cc   :  { %2020 = vtanh.f32 %v1498_v32  ;;  %v1500_v39 = vmul.f32 0.5, %v1493_v34  ;;  %v1494_v42 = vadd.f32 %v1443_v35, %v3080_v40  ;;  %v1496_v45 = vadd.f32 %v1486_v38, %v3081_v44  ;;  %v3088_v35 = vld [vmem:[#allocation57_spill] sm:$0xff]  ;;  %v3089_v40 = vld [vmem:[#allocation58_spill] sm:$0xff] }
 0x6cd   :  { %2022 = vtanh.f32 %v1492_v28  ;;  %v1502_v55 = vmul.f32 0.5, %v1495_v60 }
 0x6ce   :  { %2024 = vtanh.f32 %v1500_v39  ;;  %v1501_v43 = vmul.f32 0.5, %v1494_v42 }
 0x6d0   :  { %2026 = vtanh.f32 %v1501_v43  ;;  %v3090_v43 = vld [vmem:[#allocation52_spill] sm:$0xff] }
 0x6d1   :  { %2028 = vtanh.f32 %v1496_v45 }
 0x6d2   :  { %2030 = vtanh.f32 %v1499_v19 }
 0x6d3   :  { %2032 = vtanh.f32 %v1502_v55 }
 0x6d7   :  { %v2019_v6 = vpop.eup %2018 }
 0x6d8   :  { %v1509_v37 = vmul.f32 0.5, %v2019_v6 }
 0x6d9   :  { %v2021_v15 = vpop.eup %2020 }
 0x6da   :  { %v2023_v16 = vpop.eup %2022  ;;  %v1515_v7 = vadd.f32 0.5, %v1509_v37  ;;  %v1510_v36 = vmul.f32 0.5, %v2021_v15 }
 0x6db   :  { %v2025_v1 = vpop.eup %2024 }
 0x6dc   :  { %v1516_v5 = vadd.f32 0.5, %v1510_v36  ;;  %v1525_v59 = vmul.f32 %v2023_v16, %v1515_v7  ;;  %v1512_v3 = vmul.f32 0.5, %v2025_v1 }
 0x6dd   :  { %v2027_v2 = vpop.eup %2026 }
 0x6de   :  { %v1523_v62 = vmul.f32 %v1516_v5, %v2910_v49  ;;  %v1518_v51 = vadd.f32 0.5, %v1512_v3  ;;  %v1513_v54 = vmul.f32 0.5, %v2027_v2  ;;  %v2029_v13 = vpop.eup %2028 }
 0x6df   :  { %v2031_v52 = vpop.eup %2030 }
 0x6e0   :  { %v1527_v0 = vadd.f32 %v1525_v59, %v1523_v62  ;;  %v1519_v30 = vadd.f32 0.5, %v1513_v54  ;;  %v1526_v63 = vmul.f32 %v2029_v13, %v1518_v51  ;;  %v2033_v58 = vpop.eup %2032  ;;  %v1511_v25 = vmul.f32 0.5, %v2031_v52 }
 0x6e1   :  { %v1514_v56 = vmul.f32 0.5, %v2033_v58 }
 0x6e2   :  { %v1524_v4 = vmul.f32 %v1519_v30, %v2914_v11  ;;  %2034 = vtanh.f32 %v1527_v0  ;;  %v1517_v49 = vadd.f32 0.5, %v1511_v25 }
 0x6e3   :  { %v1520_v41 = vadd.f32 0.5, %v1514_v56 }
 0x6e4   :  { %v2962_v9 = vadd.f32 %v1526_v63, %v1524_v4 }
 0x6e6   :  { %2036 = vtanh.f32 %v2962_v9 }
 0x6ef   :  { %v2035_v8 = vpop.eup %2034 }
 0x6f0   :  { %v1531_v57 = vmul.f32 %v2035_v8, %v1517_v49 }
 0x6f3   :  { %v2037_v50 = vpop.eup %2036 }
 0x6f4   :  { %v1532_v26 = vmul.f32 %v2037_v50, %v1520_v41 }
 0x6f6   :  { %v1533_v48 = vpack.c.bf16 %v1532_v26, %v1531_v57 }
 0x6f8   :  { %1837 = vst [vmem:[%s2984_s4 + $0x30] sm:$0xff] %v1533_v48   ;;  %1577 = vmatmul.mubr.bf16.vlgmr.msra.gmra.mxu0 %v1533_v48  ;;  %1620 = vmatmul.mubr.bf16.vlgmr.msra.gmra.mxu1 %v1533_v48 }
 0x7b8   :  { %v1578_v11 = vpop.f32.mrf.mxu0  ;;  %v1621_v53 = vpop.f32.mrf.mxu1 }
 0x7b9   :  { %v1630_v47 = vadd.f32 %v1578_v11, %v3084_v14  ;;  %v1632_v44 = vadd.f32 %v1621_v53, %v3090_v43 }
 0x7ba   :  { %v1580_v10 = vpop.f32.mrf.mxu0  ;;  %v1623_v17 = vpop.f32.mrf.mxu1 }
 0x7bb   :  { %v1638_v18 = vmul.f32 0.5, %v1630_v47  ;;  %v1631_v21 = vadd.f32 %v1580_v10, %v3085_v20  ;;  %v1633_v23 = vadd.f32 %v1623_v17, %v3086_v22  ;;  %v1640_v45 = vmul.f32 0.5, %v1632_v44 }
 0x7bc   :  { %v1582_v24 = vpop.f32.mrf.mxu0  ;;  %v1625_v27 = vpop.f32.mrf.mxu1 }
 0x7bd   :  { %2038 = vtanh.f32 %v1638_v18  ;;  %v1639_v28 = vmul.f32 0.5, %v1631_v21  ;;  %v1634_v31 = vadd.f32 %v1582_v24, %v3087_v29  ;;  %v1636_v12 = vadd.f32 %v1625_v27, %v3091_v46 }
 0x7be   :  { %v1584_v32 = vpop.f32.mrf.mxu0  ;;  %v1627_v33 = vpop.f32.mrf.mxu1 }
 0x7bf   :  { %2040 = vtanh.f32 %v1639_v28  ;;  %v1641_v34 = vmul.f32 0.5, %v1634_v31  ;;  %v1635_v38 = vadd.f32 %v1584_v32, %v3088_v35  ;;  %v1637_v42 = vadd.f32 %v1627_v33, %v3089_v40 }
 0x7c0   :  { %2042 = vtanh.f32 %v1633_v23  ;;  %v1643_v16 = vmul.f32 0.5, %v1636_v12 }
 0x7c1   :  { %2044 = vtanh.f32 %v1641_v34  ;;  %v1642_v39 = vmul.f32 0.5, %v1635_v38 }
 0x7c3   :  { %2046 = vtanh.f32 %v1642_v39 }
 0x7c4   :  { %2048 = vtanh.f32 %v1637_v42 }
 0x7c5   :  { %2050 = vtanh.f32 %v1640_v45 }
 0x7c6   :  { %2052 = vtanh.f32 %v1643_v16 }
 0x7ca   :  { %v2039_v61 = vpop.eup %2038 }
 0x7cb   :  { %v1650_v60 = vmul.f32 0.5, %v2039_v61 }
 0x7cc   :  { %v2041_v6 = vpop.eup %2040 }
 0x7cd   :  { %v2043_v37 = vpop.eup %2042  ;;  %v1656_v15 = vadd.f32 0.5, %v1650_v60  ;;  %v1651_v19 = vmul.f32 0.5, %v2041_v6 }
 0x7ce   :  { %v2045_v7 = vpop.eup %2044 }
 0x7cf   :  { %v1657_v36 = vadd.f32 0.5, %v1651_v19  ;;  %v1666_v55 = vmul.f32 %v2043_v37, %v1656_v15  ;;  %v1653_v1 = vmul.f32 0.5, %v2045_v7 }
 0x7d0   :  { %v2047_v5 = vpop.eup %2046 }
 0x7d1   :  { %v1664_v59 = vmul.f32 %v1657_v36, %v1527_v0  ;;  %v1659_v3 = vadd.f32 0.5, %v1653_v1  ;;  %v1654_v2 = vmul.f32 0.5, %v2047_v5  ;;  %v2049_v62 = vpop.eup %2048 }
 0x7d2   :  { %v2051_v4 = vpop.eup %2050 }
 0x7d3   :  { %v1668_v51 = vadd.f32 %v1666_v55, %v1664_v59  ;;  %v1660_v54 = vadd.f32 0.5, %v1654_v2  ;;  %v1667_v13 = vmul.f32 %v2049_v62, %v1659_v3  ;;  %v1652_v52 = vmul.f32 0.5, %v2051_v4  ;;  %v2053_v58 = vpop.eup %2052 }
 0x7d4   :  { %v1655_v56 = vmul.f32 0.5, %v2053_v58 }
 0x7d5   :  { %2054 = vtanh.f32 %v1668_v51  ;;  %v1665_v30 = vmul.f32 %v1660_v54, %v2962_v9  ;;  %v1658_v25 = vadd.f32 0.5, %v1652_v52 }
 0x7d6   :  { %v1661_v0 = vadd.f32 0.5, %v1655_v56 }
 0x7d7   :  { %v1669_v63 = vadd.f32 %v1667_v13, %v1665_v30 }
 0x7d9   :  { %2056 = vtanh.f32 %v1669_v63 }
 0x7e2   :  { %v2055_v8 = vpop.eup %2054 }
 0x7e3   :  { %v1672_v49 = vmul.f32 %v2055_v8, %v1658_v25 }
 0x7e6   :  { %v2057_v41 = vpop.eup %2056 }
 0x7e7   :  { %v1673_v50 = vmul.f32 %v2057_v41, %v1661_v0 }
 0x7e9   :  { %v1830_v57 = vpack.c.bf16 %v1673_v50, %v1672_v49 }
 0x7eb   :  { %1838 = vst [vmem:[%s2984_s4 + $0x38] sm:$0xff] %v1830_v57  }
 0x7ec   :  { %1693 = vsyncpa [#allocation5], 1 }

</bundles_post_ra>
